<compile_context>
chip_gen: v7x
topology: tpu7x:2x2x1
jax: 0.10.0
libtpu: 0.0.40
codegen_flags: <defaults>
</compile_context>

<pallas_src>
import numpy as np
import jax
import jax.numpy as jnp
from jax.experimental import pallas as pl
from jax.experimental.pallas import tpu as pltpu

NUM_LAYERS = 13            # embeddings + 12 transformer layers
NUM_PROJ = NUM_LAYERS - 1  # layers 1..12 actually feed the head


def _ernie_head_kernel(*refs):
    """Refs (per batch tile):
       refs[0:12]:  (Bt, H)      CLS hidden state of layer i+1
       pool_ref:    (Bt, H)      pooler output tile
       cw_ref:      (12, H, LBP) folded fc_i @ label_w_i weights (lane-padded)
       cb_ref:      (1, LBP)     folded bias (label_b + sum_i fc_b_i @ W_i), f32
       logits_ref:  (Bt, LBP)    padded logits tile (f32)
       norm_ref:    (Bt, H)      L2-normalized pooler tile
       acc_ref:     (Bt, LBP)    f32 VMEM scratch accumulator
    """
    cls_refs = refs[:NUM_PROJ]
    pool_ref, cw_ref, cb_ref, logits_ref, norm_ref, acc_ref = refs[NUM_PROJ:]

    # logits = sum_i cls[i] @ C[i] + bias_eff — 12 lane-dense MXU matmuls,
    # accumulated in a VMEM f32 scratch ref (keeps vreg pressure low at large
    # batch tiles; no intermediate (Bt, Hd) tensors).
    acc_ref[...] = jnp.dot(cls_refs[0][...], cw_ref[0],
                           preferred_element_type=jnp.float32)
    for i in range(1, NUM_PROJ):
        acc_ref[...] += jnp.dot(cls_refs[i][...], cw_ref[i],
                                preferred_element_type=jnp.float32)
    logits_ref[...] = (acc_ref[...] + cb_ref[...]).astype(logits_ref.dtype)

    # supcon_fea_cls = F.normalize(pool, dim=1)  (rsqrt -> EUP slot)
    pool = pool_ref[...].astype(jnp.float32)
    ss = jnp.sum(pool * pool, axis=1, keepdims=True)
    inv = jax.lax.rsqrt(jnp.maximum(ss, 1e-24))   # == 1 / max(||pool||, 1e-12)
    norm_ref[...] = (pool * inv).astype(norm_ref.dtype)


def _estimate_vmem_bytes(bt, hidden, lbp, act_bytes, w_bytes):
    """Double-buffered footprint of one grid step (inputs, outputs, scratch)."""
    acts = 2 * bt * (NUM_PROJ * hidden * act_bytes   # 12 CLS tiles
                     + hidden * act_bytes            # pooler tile
                     + lbp * 4                       # padded-logits tile (f32)
                     + hidden * act_bytes)           # normalized-pool tile
    weights = 2 * (NUM_PROJ * hidden * lbp * w_bytes + lbp * 4)
    scratch = bt * lbp * 4
    return acts + weights + scratch


def _vmem_budget_bytes():
    # Generation-aware: ~55% of physical VMEM (128 MiB on v5e/v6e -> big tiles,
    # 64 MiB on v7x -> conservative tiles), with a safe fallback.
    try:
        cap = int(pltpu.get_tpu_info().vmem_capacity_bytes)
    except Exception:  # pragma: no cover - conservative fallback
        cap = 64 * 1024 * 1024
    budget = max(24 * 1024 * 1024, min(int(cap * 0.55), 96 * 1024 * 1024))
    return cap, budget


def _pick_batch_tile(batch, hidden, lbp, act_bytes, w_bytes, budget,
                     requested=None):
    # dtype-aware sublane alignment: f32 -> 8, bf16 -> 16, int8/fp8 -> 32
    align = {4: 8, 2: 16, 1: 32}.get(act_bytes, 8)
    if requested is not None:
        assert batch % requested == 0, "batch_tile must divide the batch"
        assert requested % align == 0 or requested == batch, (
            f"batch_tile must be a multiple of {align} for {act_bytes}-byte "
            "activations (or the full batch)")
        return requested
    cands = [c for c in (1024, 512, 384, 256, 192, 128, 96, 64, 48, 32, 16, 8)
             if c <= batch and batch % c == 0 and c % align == 0]
    if not cands:
        return batch   # full batch: block == array dim is always legal
    fitting = [c for c in cands
               if _estimate_vmem_bytes(c, hidden, lbp, act_bytes, w_bytes)
               <= budget]
    if not fitting:
        fitting = [cands[-1]]
    # Prefer an even grid >= 2 so both v7x TensorCores are busy under
    # dimension_semantics=("parallel",); candidates are descending so [0] is
    # the largest tile satisfying the preference.
    even = [c for c in fitting if (batch // c) >= 2 and (batch // c) % 2 == 0]
    return (even or fitting)[0]


def _cls_index_map(layer):
    def index_map(b):
        return (layer, b, 0)
    return index_map


def ernie_mlayers_forward(all_hidden_states, pool, params, batch_tile=None):
    """all_hidden_states: (13, B, S, H), pool: (B, H) -> (logits, norm_pool)."""
    L, B, S, H = all_hidden_states.shape
    assert L == NUM_LAYERS
    Hd = params["fc_w"].shape[2]
    label = params["label_w"].shape[1]
    # lane-dense logits width; pad to 256 if the head ever grows past 128
    lbp = 128 if label <= 128 else ((label + 255) // 256) * 256

    act_dtype = all_hidden_states.dtype
    act_bytes = np.dtype(act_dtype).itemsize
    w_bytes = act_bytes   # folded weights are cast to the activation dtype
    vmem_cap, budget = _vmem_budget_bytes()
    bt = _pick_batch_tile(B, H, lbp, act_bytes, w_bytes, budget, batch_tile)
    grid = (B // bt,)
    est = _estimate_vmem_bytes(bt, H, lbp, act_bytes, w_bytes)
    vmem_limit = max(16 * 1024 * 1024,
                     min(int(est * 1.25) + 2 * 1024 * 1024,
                         vmem_cap - 4 * 1024 * 1024))

    # ---- fold fc_i / label into one per-layer contraction (weights only, f32
    #      HIGHEST fold done once per jit), then cast to activation dtype so
    #      the in-kernel matmuls are bf16-native when the backbone is bf16 ----
    f32 = jnp.float32
    hi = jax.lax.Precision.HIGHEST
    w_lab = params["label_w"].astype(f32).reshape(NUM_PROJ, Hd, label)
    cw = jnp.einsum("ihd,idk->ihk", params["fc_w"].astype(f32), w_lab,
                    precision=hi)                                 # (12, H, label)
    cb = params["label_b"].astype(f32).reshape(1, label) + \
        jnp.einsum("id,idk->k", params["fc_b"].astype(f32)[:, 0, :], w_lab,
                   precision=hi)[None, :]                         # (1, label)
    cw = jnp.pad(cw, ((0, 0), (0, 0), (0, lbp - label))).astype(act_dtype)
    cb = jnp.pad(cb, ((0, 0), (0, lbp - label)))                  # bias stays f32

    # ---- present CLS rows so the BlockSpecs DMA only seq position 0 ----
    if S == 1 or H % 128 == 0:
        # trailing-dim merge is a free reshape; the block column range [0:H)
        # of the (L, B, S*H) view == all_hidden_states[:, :, 0, :]
        cls_src = all_hidden_states.reshape(L, B, S * H)
    else:
        # TODO(synk): unaligned H -> fall back to an XLA slice (one extra HBM
        # round trip of the (13,B,H) CLS slab); an in-kernel strided DMA of
        # seq position 0 would remove it.
        cls_src = all_hidden_states[:, :, 0, :]

    # One BlockSpec per used layer (1..12): layer 0 (embeddings) is never
    # DMA'd. Pure Blocked indexing with a constant layer block index.
    cls_specs = [pl.BlockSpec((None, bt, H), _cls_index_map(layer))
                 for layer in range(1, NUM_LAYERS)]

    logits_pad, norm_pool = pl.pallas_call(
        _ernie_head_kernel,
        grid=grid,
        in_specs=cls_specs + [
            pl.BlockSpec((bt, H), lambda b: (b, 0)),                # pooler
            pl.BlockSpec((NUM_PROJ, H, lbp), lambda b: (0, 0, 0)),  # folded W (resident)
            pl.BlockSpec((1, lbp), lambda b: (0, 0)),               # folded bias
        ],
        out_specs=(
            pl.BlockSpec((bt, lbp), lambda b: (b, 0)),
            pl.BlockSpec((bt, H), lambda b: (b, 0)),
        ),
        out_shape=(
            jax.ShapeDtypeStruct((B, lbp), jnp.float32),
            jax.ShapeDtypeStruct((B, H), pool.dtype),
        ),
        scratch_shapes=[pltpu.VMEM((bt, lbp), jnp.float32)],
        compiler_params=pltpu.CompilerParams(
            dimension_semantics=("parallel",),
            vmem_limit_bytes=vmem_limit,
        ),
    )(*([cls_src] * NUM_PROJ), pool, cw, cb)

    return logits_pad[:, :label], norm_pool


def _reference(all_hidden_states, pool, params):
    """Pure-JAX mirror of the PyTorch forward (returned values only;
    atten/feature are computed but never returned by the module)."""
    L, B, S, H = all_hidden_states.shape
    cls = all_hidden_states[:, :, 0, :]
    hs = []
    for i in range(1, L):
        hs.append(cls[i] @ params["fc_w"][i - 1] + params["fc_b"][i - 1, 0])
    hs = jnp.concatenate(hs, axis=1)
    logits = hs @ params["label_w"] + params["label_b"][0]
    nrm = jnp.linalg.norm(pool, axis=1, keepdims=True)
    return logits, pool / jnp.maximum(nrm, 1e-12)


if __name__ == "__main__":
    # Small but TPU-friendly shapes: H must be divisible by 12 (fcs: H -> H//12);
    # H = 384 (multiple of 128) exercises the direct-from-HBM CLS DMA path.
    B, S, H = 16, 8, 384
    Hd = H // 12
    label_size = 2

    key = jax.random.PRNGKey(0)
    k = jax.random.split(key, 7)
    all_hidden_states = jax.random.normal(k[0], (NUM_LAYERS, B, S, H), jnp.float32)
    pool = jax.random.normal(k[1], (B, H), jnp.float32)

    bound = 1.0 / np.sqrt(H)
    params = {
        # nn.Parameter(torch.rand(13, 1)) — only feeds the dead `feature`
        # branch of the PyTorch forward; kept for parity, unused by the kernel.
        "layer_weights": jax.random.uniform(k[2], (NUM_LAYERS, 1), jnp.float32),
        # 12 Linear(H, H // 12) layers (index 0 of self.fcs is skipped)
        "fc_w": jax.random.uniform(k[3], (NUM_LAYERS - 1, H, Hd),
                                   jnp.float32, -bound, bound),
        "fc_b": jax.random.uniform(k[4], (NUM_LAYERS - 1, 1, Hd),
                                   jnp.float32, -bound, bound),
        # Linear(H, label_size)
        "label_w": jax.random.uniform(k[5], (H, label_size),
                                      jnp.float32, -bound, bound),
        "label_b": jax.random.uniform(k[6], (1, label_size),
                                      jnp.float32, -bound, bound),
    }

    fwd = jax.jit(lambda a, p, prm: ernie_mlayers_forward(a, p, prm))
    logits, norm_pool = fwd(all_hidden_states, pool, params)
    jax.block_until_ready((logits, norm_pool))

    ref_logits, ref_norm = _reference(all_hidden_states, pool, params)
    # f32 activations -> folded weights stay f32, so tight tolerances hold; a
    # bf16 backbone would need looser tolerances (expected precision change).
    assert np.allclose(np.asarray(logits), np.asarray(ref_logits),
                       rtol=1e-4, atol=1e-4), "logits mismatch"
    assert np.allclose(np.asarray(norm_pool), np.asarray(ref_norm),
                       rtol=1e-4, atol=1e-4), "norm_pool mismatch"
    print("KERNEL_OK")
</pallas_src>

<mosaic_0001>
module attributes {stable_mosaic.version = 11 : i64} {
  func.func @_ernie_head_kernel(%arg0: i32, %arg1: memref<1x8x384xf32, #tpu.memory_space<vmem>>, %arg2: memref<1x8x384xf32, #tpu.memory_space<vmem>>, %arg3: memref<1x8x384xf32, #tpu.memory_space<vmem>>, %arg4: memref<1x8x384xf32, #tpu.memory_space<vmem>>, %arg5: memref<1x8x384xf32, #tpu.memory_space<vmem>>, %arg6: memref<1x8x384xf32, #tpu.memory_space<vmem>>, %arg7: memref<1x8x384xf32, #tpu.memory_space<vmem>>, %arg8: memref<1x8x384xf32, #tpu.memory_space<vmem>>, %arg9: memref<1x8x384xf32, #tpu.memory_space<vmem>>, %arg10: memref<1x8x384xf32, #tpu.memory_space<vmem>>, %arg11: memref<1x8x384xf32, #tpu.memory_space<vmem>>, %arg12: memref<1x8x384xf32, #tpu.memory_space<vmem>>, %arg13: memref<8x384xf32, #tpu.memory_space<vmem>>, %arg14: memref<12x384x128xf32, #tpu.memory_space<vmem>>, %arg15: memref<1x128xf32, #tpu.memory_space<vmem>>, %arg16: memref<8x128xf32, #tpu.memory_space<vmem>>, %arg17: memref<8x384xf32, #tpu.memory_space<vmem>>, %arg18: memref<8x128xf32, #tpu.memory_space<vmem>>) attributes {dimension_semantics = [#tpu.dimension_semantics<parallel>], iteration_bounds = array<i64: 2>, scalar_prefetch = 0 : i64, scratch_operands = 1 : i64, tpu.core_type = #tpu.core_type<tc>, window_params = [{transform_indices = @transform_0, window_bounds = array<i64: 1, 8, 384>}, {transform_indices = @transform_1, window_bounds = array<i64: 1, 8, 384>}, {transform_indices = @transform_2, window_bounds = array<i64: 1, 8, 384>}, {transform_indices = @transform_3, window_bounds = array<i64: 1, 8, 384>}, {transform_indices = @transform_4, window_bounds = array<i64: 1, 8, 384>}, {transform_indices = @transform_5, window_bounds = array<i64: 1, 8, 384>}, {transform_indices = @transform_6, window_bounds = array<i64: 1, 8, 384>}, {transform_indices = @transform_7, window_bounds = array<i64: 1, 8, 384>}, {transform_indices = @transform_8, window_bounds = array<i64: 1, 8, 384>}, {transform_indices = @transform_9, window_bounds = array<i64: 1, 8, 384>}, {transform_indices = @transform_10, window_bounds = array<i64: 1, 8, 384>}, {transform_indices = @transform_11, window_bounds = array<i64: 1, 8, 384>}, {transform_indices = @transform_12, window_bounds = array<i64: 8, 384>}, {pipeline_mode = #tpu.pipeline_mode<synchronous>, transform_indices = @transform_13, window_bounds = array<i64: 12, 384, 128>}, {pipeline_mode = #tpu.pipeline_mode<synchronous>, transform_indices = @transform_14, window_bounds = array<i64: 1, 128>}, {transform_indices = @transform_15, window_bounds = array<i64: 8, 128>}, {transform_indices = @transform_16, window_bounds = array<i64: 8, 384>}]} {
    %c0 = arith.constant 0 : index
    %c0_0 = arith.constant 0 : index
    %c0_1 = arith.constant 0 : index
    %0 = vector.load %arg1[%c0, %c0_0, %c0_1] : memref<1x8x384xf32, #tpu.memory_space<vmem>>, vector<1x8x384xf32>
    %1 = vector.shape_cast %0 : vector<1x8x384xf32> to vector<8x384xf32>
    %c0_2 = arith.constant 0 : index
    %c0_3 = arith.constant 0 : index
    %c0_4 = arith.constant 0 : index
    %2 = vector.load %arg14[%c0_2, %c0_3, %c0_4] : memref<12x384x128xf32, #tpu.memory_space<vmem>>, vector<1x384x128xf32>
    %3 = vector.shape_cast %2 : vector<1x384x128xf32> to vector<384x128xf32>
    %cst = arith.constant dense<0.000000e+00> : vector<8x128xf32>
    %4 = tpu.matmul %1, %3, %cst {dimension_numbers = #tpu.dot_dimension_numbers<[1], [0], [0], [1], [0, 0, 1, 1], [], []>} : vector<8x384xf32>, vector<384x128xf32>, vector<8x128xf32> -> vector<8x128xf32>
    %c0_5 = arith.constant 0 : index
    %c0_6 = arith.constant 0 : index
    %5 = vector.load %arg18[%c0_5, %c0_6] : memref<8x128xf32, #tpu.memory_space<vmem>>, vector<8x128xf32>
    tpu.vector_store %arg18[%c0_5, %c0_6], %4 {strides = array<i32>} : memref<8x128xf32, #tpu.memory_space<vmem>>, vector<8x128xf32>,
    %c0_7 = arith.constant 0 : index
    %c0_8 = arith.constant 0 : index
    %6 = vector.load %arg18[%c0_7, %c0_8] : memref<8x128xf32, #tpu.memory_space<vmem>>, vector<8x128xf32>
    %c0_9 = arith.constant 0 : index
    %c0_10 = arith.constant 0 : index
    %c0_11 = arith.constant 0 : index
    %7 = vector.load %arg2[%c0_9, %c0_10, %c0_11] : memref<1x8x384xf32, #tpu.memory_space<vmem>>, vector<1x8x384xf32>
    %8 = vector.shape_cast %7 : vector<1x8x384xf32> to vector<8x384xf32>
    %c1 = arith.constant 1 : index
    %c0_12 = arith.constant 0 : index
    %c0_13 = arith.constant 0 : index
    %9 = vector.load %arg14[%c1, %c0_12, %c0_13] : memref<12x384x128xf32, #tpu.memory_space<vmem>>, vector<1x384x128xf32>
    %10 = vector.shape_cast %9 : vector<1x384x128xf32> to vector<384x128xf32>
    %cst_14 = arith.constant dense<0.000000e+00> : vector<8x128xf32>
    %11 = tpu.matmul %8, %10, %cst_14 {dimension_numbers = #tpu.dot_dimension_numbers<[1], [0], [0], [1], [0, 0, 1, 1], [], []>} : vector<8x384xf32>, vector<384x128xf32>, vector<8x128xf32> -> vector<8x128xf32>
    %12 = arith.addf %6, %11 : vector<8x128xf32>
    %c0_15 = arith.constant 0 : index
    %c0_16 = arith.constant 0 : index
    %13 = vector.load %arg18[%c0_15, %c0_16] : memref<8x128xf32, #tpu.memory_space<vmem>>, vector<8x128xf32>
    tpu.vector_store %arg18[%c0_15, %c0_16], %12 {strides = array<i32>} : memref<8x128xf32, #tpu.memory_space<vmem>>, vector<8x128xf32>,
    %c0_17 = arith.constant 0 : index
    %c0_18 = arith.constant 0 : index
    %14 = vector.load %arg18[%c0_17, %c0_18] : memref<8x128xf32, #tpu.memory_space<vmem>>, vector<8x128xf32>
    %c0_19 = arith.constant 0 : index
    %c0_20 = arith.constant 0 : index
    %c0_21 = arith.constant 0 : index
    %15 = vector.load %arg3[%c0_19, %c0_20, %c0_21] : memref<1x8x384xf32, #tpu.memory_space<vmem>>, vector<1x8x384xf32>
    %16 = vector.shape_cast %15 : vector<1x8x384xf32> to vector<8x384xf32>
    %c2 = arith.constant 2 : index
    %c0_22 = arith.constant 0 : index
    %c0_23 = arith.constant 0 : index
    %17 = vector.load %arg14[%c2, %c0_22, %c0_23] : memref<12x384x128xf32, #tpu.memory_space<vmem>>, vector<1x384x128xf32>
    %18 = vector.shape_cast %17 : vector<1x384x128xf32> to vector<384x128xf32>
    %cst_24 = arith.constant dense<0.000000e+00> : vector<8x128xf32>
    %19 = tpu.matmul %16, %18, %cst_24 {dimension_numbers = #tpu.dot_dimension_numbers<[1], [0], [0], [1], [0, 0, 1, 1], [], []>} : vector<8x384xf32>, vector<384x128xf32>, vector<8x128xf32> -> vector<8x128xf32>
    %20 = arith.addf %14, %19 : vector<8x128xf32>
    %c0_25 = arith.constant 0 : index
    %c0_26 = arith.constant 0 : index
    %21 = vector.load %arg18[%c0_25, %c0_26] : memref<8x128xf32, #tpu.memory_space<vmem>>, vector<8x128xf32>
    tpu.vector_store %arg18[%c0_25, %c0_26], %20 {strides = array<i32>} : memref<8x128xf32, #tpu.memory_space<vmem>>, vector<8x128xf32>,
    %c0_27 = arith.constant 0 : index
    %c0_28 = arith.constant 0 : index
    %22 = vector.load %arg18[%c0_27, %c0_28] : memref<8x128xf32, #tpu.memory_space<vmem>>, vector<8x128xf32>
    %c0_29 = arith.constant 0 : index
    %c0_30 = arith.constant 0 : index
    %c0_31 = arith.constant 0 : index
    %23 = vector.load %arg4[%c0_29, %c0_30, %c0_31] : memref<1x8x384xf32, #tpu.memory_space<vmem>>, vector<1x8x384xf32>
    %24 = vector.shape_cast %23 : vector<1x8x384xf32> to vector<8x384xf32>
    %c3 = arith.constant 3 : index
    %c0_32 = arith.constant 0 : index
    %c0_33 = arith.constant 0 : index
    %25 = vector.load %arg14[%c3, %c0_32, %c0_33] : memref<12x384x128xf32, #tpu.memory_space<vmem>>, vector<1x384x128xf32>
    %26 = vector.shape_cast %25 : vector<1x384x128xf32> to vector<384x128xf32>
    %cst_34 = arith.constant dense<0.000000e+00> : vector<8x128xf32>
    %27 = tpu.matmul %24, %26, %cst_34 {dimension_numbers = #tpu.dot_dimension_numbers<[1], [0], [0], [1], [0, 0, 1, 1], [], []>} : vector<8x384xf32>, vector<384x128xf32>, vector<8x128xf32> -> vector<8x128xf32>
    %28 = arith.addf %22, %27 : vector<8x128xf32>
    %c0_35 = arith.constant 0 : index
    %c0_36 = arith.constant 0 : index
    %29 = vector.load %arg18[%c0_35, %c0_36] : memref<8x128xf32, #tpu.memory_space<vmem>>, vector<8x128xf32>
    tpu.vector_store %arg18[%c0_35, %c0_36], %28 {strides = array<i32>} : memref<8x128xf32, #tpu.memory_space<vmem>>, vector<8x128xf32>,
    %c0_37 = arith.constant 0 : index
    %c0_38 = arith.constant 0 : index
    %30 = vector.load %arg18[%c0_37, %c0_38] : memref<8x128xf32, #tpu.memory_space<vmem>>, vector<8x128xf32>
    %c0_39 = arith.constant 0 : index
    %c0_40 = arith.constant 0 : index
    %c0_41 = arith.constant 0 : index
    %31 = vector.load %arg5[%c0_39, %c0_40, %c0_41] : memref<1x8x384xf32, #tpu.memory_space<vmem>>, vector<1x8x384xf32>
    %32 = vector.shape_cast %31 : vector<1x8x384xf32> to vector<8x384xf32>
    %c4 = arith.constant 4 : index
    %c0_42 = arith.constant 0 : index
    %c0_43 = arith.constant 0 : index
    %33 = vector.load %arg14[%c4, %c0_42, %c0_43] : memref<12x384x128xf32, #tpu.memory_space<vmem>>, vector<1x384x128xf32>
    %34 = vector.shape_cast %33 : vector<1x384x128xf32> to vector<384x128xf32>
    %cst_44 = arith.constant dense<0.000000e+00> : vector<8x128xf32>
    %35 = tpu.matmul %32, %34, %cst_44 {dimension_numbers = #tpu.dot_dimension_numbers<[1], [0], [0], [1], [0, 0, 1, 1], [], []>} : vector<8x384xf32>, vector<384x128xf32>, vector<8x128xf32> -> vector<8x128xf32>
    %36 = arith.addf %30, %35 : vector<8x128xf32>
    %c0_45 = arith.constant 0 : index
    %c0_46 = arith.constant 0 : index
    %37 = vector.load %arg18[%c0_45, %c0_46] : memref<8x128xf32, #tpu.memory_space<vmem>>, vector<8x128xf32>
    tpu.vector_store %arg18[%c0_45, %c0_46], %36 {strides = array<i32>} : memref<8x128xf32, #tpu.memory_space<vmem>>, vector<8x128xf32>,
    %c0_47 = arith.constant 0 : index
    %c0_48 = arith.constant 0 : index
    %38 = vector.load %arg18[%c0_47, %c0_48] : memref<8x128xf32, #tpu.memory_space<vmem>>, vector<8x128xf32>
    %c0_49 = arith.constant 0 : index
    %c0_50 = arith.constant 0 : index
    %c0_51 = arith.constant 0 : index
    %39 = vector.load %arg6[%c0_49, %c0_50, %c0_51] : memref<1x8x384xf32, #tpu.memory_space<vmem>>, vector<1x8x384xf32>
    %40 = vector.shape_cast %39 : vector<1x8x384xf32> to vector<8x384xf32>
    %c5 = arith.constant 5 : index
    %c0_52 = arith.constant 0 : index
    %c0_53 = arith.constant 0 : index
    %41 = vector.load %arg14[%c5, %c0_52, %c0_53] : memref<12x384x128xf32, #tpu.memory_space<vmem>>, vector<1x384x128xf32>
    %42 = vector.shape_cast %41 : vector<1x384x128xf32> to vector<384x128xf32>
    %cst_54 = arith.constant dense<0.000000e+00> : vector<8x128xf32>
    %43 = tpu.matmul %40, %42, %cst_54 {dimension_numbers = #tpu.dot_dimension_numbers<[1], [0], [0], [1], [0, 0, 1, 1], [], []>} : vector<8x384xf32>, vector<384x128xf32>, vector<8x128xf32> -> vector<8x128xf32>
    %44 = arith.addf %38, %43 : vector<8x128xf32>
    %c0_55 = arith.constant 0 : index
    %c0_56 = arith.constant 0 : index
    %45 = vector.load %arg18[%c0_55, %c0_56] : memref<8x128xf32, #tpu.memory_space<vmem>>, vector<8x128xf32>
    tpu.vector_store %arg18[%c0_55, %c0_56], %44 {strides = array<i32>} : memref<8x128xf32, #tpu.memory_space<vmem>>, vector<8x128xf32>,
    %c0_57 = arith.constant 0 : index
    %c0_58 = arith.constant 0 : index
    %46 = vector.load %arg18[%c0_57, %c0_58] : memref<8x128xf32, #tpu.memory_space<vmem>>, vector<8x128xf32>
    %c0_59 = arith.constant 0 : index
    %c0_60 = arith.constant 0 : index
    %c0_61 = arith.constant 0 : index
    %47 = vector.load %arg7[%c0_59, %c0_60, %c0_61] : memref<1x8x384xf32, #tpu.memory_space<vmem>>, vector<1x8x384xf32>
    %48 = vector.shape_cast %47 : vector<1x8x384xf32> to vector<8x384xf32>
    %c6 = arith.constant 6 : index
    %c0_62 = arith.constant 0 : index
    %c0_63 = arith.constant 0 : index
    %49 = vector.load %arg14[%c6, %c0_62, %c0_63] : memref<12x384x128xf32, #tpu.memory_space<vmem>>, vector<1x384x128xf32>
    %50 = vector.shape_cast %49 : vector<1x384x128xf32> to vector<384x128xf32>
    %cst_64 = arith.constant dense<0.000000e+00> : vector<8x128xf32>
    %51 = tpu.matmul %48, %50, %cst_64 {dimension_numbers = #tpu.dot_dimension_numbers<[1], [0], [0], [1], [0, 0, 1, 1], [], []>} : vector<8x384xf32>, vector<384x128xf32>, vector<8x128xf32> -> vector<8x128xf32>
    %52 = arith.addf %46, %51 : vector<8x128xf32>
    %c0_65 = arith.constant 0 : index
    %c0_66 = arith.constant 0 : index
    %53 = vector.load %arg18[%c0_65, %c0_66] : memref<8x128xf32, #tpu.memory_space<vmem>>, vector<8x128xf32>
    tpu.vector_store %arg18[%c0_65, %c0_66], %52 {strides = array<i32>} : memref<8x128xf32, #tpu.memory_space<vmem>>, vector<8x128xf32>,
    %c0_67 = arith.constant 0 : index
    %c0_68 = arith.constant 0 : index
    %54 = vector.load %arg18[%c0_67, %c0_68] : memref<8x128xf32, #tpu.memory_space<vmem>>, vector<8x128xf32>
    %c0_69 = arith.constant 0 : index
    %c0_70 = arith.constant 0 : index
    %c0_71 = arith.constant 0 : index
    %55 = vector.load %arg8[%c0_69, %c0_70, %c0_71] : memref<1x8x384xf32, #tpu.memory_space<vmem>>, vector<1x8x384xf32>
    %56 = vector.shape_cast %55 : vector<1x8x384xf32> to vector<8x384xf32>
    %c7 = arith.constant 7 : index
    %c0_72 = arith.constant 0 : index
    %c0_73 = arith.constant 0 : index
    %57 = vector.load %arg14[%c7, %c0_72, %c0_73] : memref<12x384x128xf32, #tpu.memory_space<vmem>>, vector<1x384x128xf32>
    %58 = vector.shape_cast %57 : vector<1x384x128xf32> to vector<384x128xf32>
    %cst_74 = arith.constant dense<0.000000e+00> : vector<8x128xf32>
    %59 = tpu.matmul %56, %58, %cst_74 {dimension_numbers = #tpu.dot_dimension_numbers<[1], [0], [0], [1], [0, 0, 1, 1], [], []>} : vector<8x384xf32>, vector<384x128xf32>, vector<8x128xf32> -> vector<8x128xf32>
    %60 = arith.addf %54, %59 : vector<8x128xf32>
    %c0_75 = arith.constant 0 : index
    %c0_76 = arith.constant 0 : index
    %61 = vector.load %arg18[%c0_75, %c0_76] : memref<8x128xf32, #tpu.memory_space<vmem>>, vector<8x128xf32>
    tpu.vector_store %arg18[%c0_75, %c0_76], %60 {strides = array<i32>} : memref<8x128xf32, #tpu.memory_space<vmem>>, vector<8x128xf32>,
    %c0_77 = arith.constant 0 : index
    %c0_78 = arith.constant 0 : index
    %62 = vector.load %arg18[%c0_77, %c0_78] : memref<8x128xf32, #tpu.memory_space<vmem>>, vector<8x128xf32>
    %c0_79 = arith.constant 0 : index
    %c0_80 = arith.constant 0 : index
    %c0_81 = arith.constant 0 : index
    %63 = vector.load %arg9[%c0_79, %c0_80, %c0_81] : memref<1x8x384xf32, #tpu.memory_space<vmem>>, vector<1x8x384xf32>
    %64 = vector.shape_cast %63 : vector<1x8x384xf32> to vector<8x384xf32>
    %c8 = arith.constant 8 : index
    %c0_82 = arith.constant 0 : index
    %c0_83 = arith.constant 0 : index
    %65 = vector.load %arg14[%c8, %c0_82, %c0_83] : memref<12x384x128xf32, #tpu.memory_space<vmem>>, vector<1x384x128xf32>
    %66 = vector.shape_cast %65 : vector<1x384x128xf32> to vector<384x128xf32>
    %cst_84 = arith.constant dense<0.000000e+00> : vector<8x128xf32>
    %67 = tpu.matmul %64, %66, %cst_84 {dimension_numbers = #tpu.dot_dimension_numbers<[1], [0], [0], [1], [0, 0, 1, 1], [], []>} : vector<8x384xf32>, vector<384x128xf32>, vector<8x128xf32> -> vector<8x128xf32>
    %68 = arith.addf %62, %67 : vector<8x128xf32>
    %c0_85 = arith.constant 0 : index
    %c0_86 = arith.constant 0 : index
    %69 = vector.load %arg18[%c0_85, %c0_86] : memref<8x128xf32, #tpu.memory_space<vmem>>, vector<8x128xf32>
    tpu.vector_store %arg18[%c0_85, %c0_86], %68 {strides = array<i32>} : memref<8x128xf32, #tpu.memory_space<vmem>>, vector<8x128xf32>,
    %c0_87 = arith.constant 0 : index
    %c0_88 = arith.constant 0 : index
    %70 = vector.load %arg18[%c0_87, %c0_88] : memref<8x128xf32, #tpu.memory_space<vmem>>, vector<8x128xf32>
    %c0_89 = arith.constant 0 : index
    %c0_90 = arith.constant 0 : index
    %c0_91 = arith.constant 0 : index
    %71 = vector.load %arg10[%c0_89, %c0_90, %c0_91] : memref<1x8x384xf32, #tpu.memory_space<vmem>>, vector<1x8x384xf32>
    %72 = vector.shape_cast %71 : vector<1x8x384xf32> to vector<8x384xf32>
    %c9 = arith.constant 9 : index
    %c0_92 = arith.constant 0 : index
    %c0_93 = arith.constant 0 : index
    %73 = vector.load %arg14[%c9, %c0_92, %c0_93] : memref<12x384x128xf32, #tpu.memory_space<vmem>>, vector<1x384x128xf32>
    %74 = vector.shape_cast %73 : vector<1x384x128xf32> to vector<384x128xf32>
    %cst_94 = arith.constant dense<0.000000e+00> : vector<8x128xf32>
    %75 = tpu.matmul %72, %74, %cst_94 {dimension_numbers = #tpu.dot_dimension_numbers<[1], [0], [0], [1], [0, 0, 1, 1], [], []>} : vector<8x384xf32>, vector<384x128xf32>, vector<8x128xf32> -> vector<8x128xf32>
    %76 = arith.addf %70, %75 : vector<8x128xf32>
    %c0_95 = arith.constant 0 : index
    %c0_96 = arith.constant 0 : index
    %77 = vector.load %arg18[%c0_95, %c0_96] : memref<8x128xf32, #tpu.memory_space<vmem>>, vector<8x128xf32>
    tpu.vector_store %arg18[%c0_95, %c0_96], %76 {strides = array<i32>} : memref<8x128xf32, #tpu.memory_space<vmem>>, vector<8x128xf32>,
    %c0_97 = arith.constant 0 : index
    %c0_98 = arith.constant 0 : index
    %78 = vector.load %arg18[%c0_97, %c0_98] : memref<8x128xf32, #tpu.memory_space<vmem>>, vector<8x128xf32>
    %c0_99 = arith.constant 0 : index
    %c0_100 = arith.constant 0 : index
    %c0_101 = arith.constant 0 : index
    %79 = vector.load %arg11[%c0_99, %c0_100, %c0_101] : memref<1x8x384xf32, #tpu.memory_space<vmem>>, vector<1x8x384xf32>
    %80 = vector.shape_cast %79 : vector<1x8x384xf32> to vector<8x384xf32>
    %c10 = arith.constant 10 : index
    %c0_102 = arith.constant 0 : index
    %c0_103 = arith.constant 0 : index
    %81 = vector.load %arg14[%c10, %c0_102, %c0_103] : memref<12x384x128xf32, #tpu.memory_space<vmem>>, vector<1x384x128xf32>
    %82 = vector.shape_cast %81 : vector<1x384x128xf32> to vector<384x128xf32>
    %cst_104 = arith.constant dense<0.000000e+00> : vector<8x128xf32>
    %83 = tpu.matmul %80, %82, %cst_104 {dimension_numbers = #tpu.dot_dimension_numbers<[1], [0], [0], [1], [0, 0, 1, 1], [], []>} : vector<8x384xf32>, vector<384x128xf32>, vector<8x128xf32> -> vector<8x128xf32>
    %84 = arith.addf %78, %83 : vector<8x128xf32>
    %c0_105 = arith.constant 0 : index
    %c0_106 = arith.constant 0 : index
    %85 = vector.load %arg18[%c0_105, %c0_106] : memref<8x128xf32, #tpu.memory_space<vmem>>, vector<8x128xf32>
    tpu.vector_store %arg18[%c0_105, %c0_106], %84 {strides = array<i32>} : memref<8x128xf32, #tpu.memory_space<vmem>>, vector<8x128xf32>,
    %c0_107 = arith.constant 0 : index
    %c0_108 = arith.constant 0 : index
    %86 = vector.load %arg18[%c0_107, %c0_108] : memref<8x128xf32, #tpu.memory_space<vmem>>, vector<8x128xf32>
    %c0_109 = arith.constant 0 : index
    %c0_110 = arith.constant 0 : index
    %c0_111 = arith.constant 0 : index
    %87 = vector.load %arg12[%c0_109, %c0_110, %c0_111] : memref<1x8x384xf32, #tpu.memory_space<vmem>>, vector<1x8x384xf32>
    %88 = vector.shape_cast %87 : vector<1x8x384xf32> to vector<8x384xf32>
    %c11 = arith.constant 11 : index
    %c0_112 = arith.constant 0 : index
    %c0_113 = arith.constant 0 : index
    %89 = vector.load %arg14[%c11, %c0_112, %c0_113] : memref<12x384x128xf32, #tpu.memory_space<vmem>>, vector<1x384x128xf32>
    %90 = vector.shape_cast %89 : vector<1x384x128xf32> to vector<384x128xf32>
    %cst_114 = arith.constant dense<0.000000e+00> : vector<8x128xf32>
    %91 = tpu.matmul %88, %90, %cst_114 {dimension_numbers = #tpu.dot_dimension_numbers<[1], [0], [0], [1], [0, 0, 1, 1], [], []>} : vector<8x384xf32>, vector<384x128xf32>, vector<8x128xf32> -> vector<8x128xf32>
    %92 = arith.addf %86, %91 : vector<8x128xf32>
    %c0_115 = arith.constant 0 : index
    %c0_116 = arith.constant 0 : index
    %93 = vector.load %arg18[%c0_115, %c0_116] : memref<8x128xf32, #tpu.memory_space<vmem>>, vector<8x128xf32>
    tpu.vector_store %arg18[%c0_115, %c0_116], %92 {strides = array<i32>} : memref<8x128xf32, #tpu.memory_space<vmem>>, vector<8x128xf32>,
    %c0_117 = arith.constant 0 : index
    %c0_118 = arith.constant 0 : index
    %94 = vector.load %arg18[%c0_117, %c0_118] : memref<8x128xf32, #tpu.memory_space<vmem>>, vector<8x128xf32>
    %c0_119 = arith.constant 0 : index
    %c0_120 = arith.constant 0 : index
    %95 = vector.load %arg15[%c0_119, %c0_120] : memref<1x128xf32, #tpu.memory_space<vmem>>, vector<1x128xf32>
    %96 = vector.broadcast %95 : vector<1x128xf32> to vector<8x128xf32>
    %97 = arith.addf %94, %96 : vector<8x128xf32>
    %c0_121 = arith.constant 0 : index
    %c0_122 = arith.constant 0 : index
    %98 = vector.load %arg16[%c0_121, %c0_122] : memref<8x128xf32, #tpu.memory_space<vmem>>, vector<8x128xf32>
    tpu.vector_store %arg16[%c0_121, %c0_122], %97 {strides = array<i32>} : memref<8x128xf32, #tpu.memory_space<vmem>>, vector<8x128xf32>,
    %c0_123 = arith.constant 0 : index
    %c0_124 = arith.constant 0 : index
    %99 = vector.load %arg13[%c0_123, %c0_124] : memref<8x384xf32, #tpu.memory_space<vmem>>, vector<8x384xf32>
    %100 = arith.mulf %99, %99 : vector<8x384xf32>
    %cst_125 = arith.constant dense<0.000000e+00> : vector<8xf32>
    %101 = vector.multi_reduction <add>, %100, %cst_125 [1] : vector<8x384xf32> to vector<8xf32>
    %102 = vector.shape_cast %101 : vector<8xf32> to vector<8x1xf32>
    %cst_126 = arith.constant 1.000000e-24 : f32
    %103 = vector.broadcast %cst_126 : f32 to vector<8x1xf32>
    %104 = arith.maximumf %102, %103 : vector<8x1xf32>
    %105 = math.rsqrt %104 : vector<8x1xf32>
    %106 = vector.broadcast %105 : vector<8x1xf32> to vector<8x384xf32>
    %107 = arith.mulf %99, %106 : vector<8x384xf32>
    %c0_127 = arith.constant 0 : index
    %c0_128 = arith.constant 0 : index
    %108 = vector.load %arg17[%c0_127, %c0_128] : memref<8x384xf32, #tpu.memory_space<vmem>>, vector<8x384xf32>
    tpu.vector_store %arg17[%c0_127, %c0_128], %107 {strides = array<i32>} : memref<8x384xf32, #tpu.memory_space<vmem>>, vector<8x384xf32>,
    return
  }
  func.func @transform_0(%arg0: i32) -> (i32, i32, i32) {
    %c1_i32 = arith.constant 1 : i32
    %c0_i32 = arith.constant 0 : i32
    %c0_i32_0 = arith.constant 0 : i32
    return %c1_i32, %arg0, %c0_i32 : i32, i32, i32
  }
  func.func @transform_1(%arg0: i32) -> (i32, i32, i32) {
    %c2_i32 = arith.constant 2 : i32
    %c0_i32 = arith.constant 0 : i32
    %c0_i32_0 = arith.constant 0 : i32
    return %c2_i32, %arg0, %c0_i32 : i32, i32, i32
  }
  func.func @transform_2(%arg0: i32) -> (i32, i32, i32) {
    %c3_i32 = arith.constant 3 : i32
    %c0_i32 = arith.constant 0 : i32
    %c0_i32_0 = arith.constant 0 : i32
    return %c3_i32, %arg0, %c0_i32 : i32, i32, i32
  }
  func.func @transform_3(%arg0: i32) -> (i32, i32, i32) {
    %c4_i32 = arith.constant 4 : i32
    %c0_i32 = arith.constant 0 : i32
    %c0_i32_0 = arith.constant 0 : i32
    return %c4_i32, %arg0, %c0_i32 : i32, i32, i32
  }
  func.func @transform_4(%arg0: i32) -> (i32, i32, i32) {
    %c5_i32 = arith.constant 5 : i32
    %c0_i32 = arith.constant 0 : i32
    %c0_i32_0 = arith.constant 0 : i32
    return %c5_i32, %arg0, %c0_i32 : i32, i32, i32
  }
  func.func @transform_5(%arg0: i32) -> (i32, i32, i32) {
    %c6_i32 = arith.constant 6 : i32
    %c0_i32 = arith.constant 0 : i32
    %c0_i32_0 = arith.constant 0 : i32
    return %c6_i32, %arg0, %c0_i32 : i32, i32, i32
  }
  func.func @transform_6(%arg0: i32) -> (i32, i32, i32) {
    %c7_i32 = arith.constant 7 : i32
    %c0_i32 = arith.constant 0 : i32
    %c0_i32_0 = arith.constant 0 : i32
    return %c7_i32, %arg0, %c0_i32 : i32, i32, i32
  }
  func.func @transform_7(%arg0: i32) -> (i32, i32, i32) {
    %c8_i32 = arith.constant 8 : i32
    %c0_i32 = arith.constant 0 : i32
    %c0_i32_0 = arith.constant 0 : i32
    return %c8_i32, %arg0, %c0_i32 : i32, i32, i32
  }
  func.func @transform_8(%arg0: i32) -> (i32, i32, i32) {
    %c9_i32 = arith.constant 9 : i32
    %c0_i32 = arith.constant 0 : i32
    %c0_i32_0 = arith.constant 0 : i32
    return %c9_i32, %arg0, %c0_i32 : i32, i32, i32
  }
  func.func @transform_9(%arg0: i32) -> (i32, i32, i32) {
    %c10_i32 = arith.constant 10 : i32
    %c0_i32 = arith.constant 0 : i32
    %c0_i32_0 = arith.constant 0 : i32
    return %c10_i32, %arg0, %c0_i32 : i32, i32, i32
  }
  func.func @transform_10(%arg0: i32) -> (i32, i32, i32) {
    %c11_i32 = arith.constant 11 : i32
    %c0_i32 = arith.constant 0 : i32
    %c0_i32_0 = arith.constant 0 : i32
    return %c11_i32, %arg0, %c0_i32 : i32, i32, i32
  }
  func.func @transform_11(%arg0: i32) -> (i32, i32, i32) {
    %c12_i32 = arith.constant 12 : i32
    %c0_i32 = arith.constant 0 : i32
    %c0_i32_0 = arith.constant 0 : i32
    return %c12_i32, %arg0, %c0_i32 : i32, i32, i32
  }
  func.func @transform_12(%arg0: i32) -> (i32, i32) {
    %c0_i32 = arith.constant 0 : i32
    %c0_i32_0 = arith.constant 0 : i32
    return %arg0, %c0_i32 : i32, i32
  }
  func.func @transform_13(%arg0: i32) -> (i32, i32, i32) {
    %c0_i32 = arith.constant 0 : i32
    %c0_i32_0 = arith.constant 0 : i32
    %c0_i32_1 = arith.constant 0 : i32
    %c0_i32_2 = arith.constant 0 : i32
    return %c0_i32, %c0_i32_0, %c0_i32_1 : i32, i32, i32
  }
  func.func @transform_14(%arg0: i32) -> (i32, i32) {
    %c0_i32 = arith.constant 0 : i32
    %c0_i32_0 = arith.constant 0 : i32
    %c0_i32_1 = arith.constant 0 : i32
    return %c0_i32, %c0_i32_0 : i32, i32
  }
  func.func @transform_15(%arg0: i32) -> (i32, i32) {
    %c0_i32 = arith.constant 0 : i32
    %c0_i32_0 = arith.constant 0 : i32
    return %arg0, %c0_i32 : i32, i32
  }
  func.func @transform_16(%arg0: i32) -> (i32, i32) {
    %c0_i32 = arith.constant 0 : i32
    %c0_i32_0 = arith.constant 0 : i32
    return %arg0, %c0_i32 : i32, i32
  }
}

</mosaic_0001>

<bundles_post_ra>
// kernel: _lambda_.1
= control target key start
LH: loop header
LB: loop body
LE: loop exit
PB: predicated region body
PF: predicated region fallthrough
CT: control target
= control target key end

     0   :  { %s8087_s0 = inlined_call_operand.vmem [shape: f32[13,16,3072], index: 0, kind: input, shape index: {}, may-alias: {0,1,2,3,4,5,6,7,8,9,10,11}]   ;;  %s8088_s1 = inlined_call_operand.vmem [shape: f32[13,16,3072], index: 1, kind: input, shape index: {}, may-alias: {0,1,2,3,4,5,6,7,8,9,10,11}]   ;;  %s8089_s2 = inlined_call_operand.vmem [shape: f32[13,16,3072], index: 2, kind: input, shape index: {}, may-alias: {0,1,2,3,4,5,6,7,8,9,10,11}]   ;;  %s8090_s3 = inlined_call_operand.vmem [shape: f32[13,16,3072], index: 3, kind: input, shape index: {}, may-alias: {0,1,2,3,4,5,6,7,8,9,10,11}]   ;;  %s8091_s4 = inlined_call_operand.vmem [shape: f32[13,16,3072], index: 4, kind: input, shape index: {}, may-alias: {0,1,2,3,4,5,6,7,8,9,10,11}]   ;;  %s8092_s5 = inlined_call_operand.vmem [shape: f32[13,16,3072], index: 5, kind: input, shape index: {}, may-alias: {0,1,2,3,4,5,6,7,8,9,10,11}]   ;;  %s8093_s6 = inlined_call_operand.vmem [shape: f32[13,16,3072], index: 6, kind: input, shape index: {}, may-alias: {0,1,2,3,4,5,6,7,8,9,10,11}]   ;;  %s8094_s7 = inlined_call_operand.vmem [shape: f32[13,16,3072], index: 7, kind: input, shape index: {}, may-alias: {0,1,2,3,4,5,6,7,8,9,10,11}]   ;;  %s8095_s8 = inlined_call_operand.vmem [shape: f32[13,16,3072], index: 8, kind: input, shape index: {}, may-alias: {0,1,2,3,4,5,6,7,8,9,10,11}]   ;;  %s8096_s9 = inlined_call_operand.vmem [shape: f32[13,16,3072], index: 9, kind: input, shape index: {}, may-alias: {0,1,2,3,4,5,6,7,8,9,10,11}]   ;;  %s8097_s10 = inlined_call_operand.vmem [shape: f32[13,16,3072], index: 10, kind: input, shape index: {}, may-alias: {0,1,2,3,4,5,6,7,8,9,10,11}]   ;;  %s8098_s11 = inlined_call_operand.vmem [shape: f32[13,16,3072], index: 11, kind: input, shape index: {}, may-alias: {0,1,2,3,4,5,6,7,8,9,10,11}]   ;;  %s8099_s12 = inlined_call_operand.vmem [shape: f32[16,384], index: 12, kind: input, shape index: {}]   ;;  %s8100_s13 = inlined_call_operand.vmem [shape: f32[12,384,128], index: 13, kind: input, shape index: {}]   ;;  %s8101_s14 = inlined_call_operand.vmem [shape: f32[1,128], index: 14, kind: input, shape index: {}]   ;;  %s8102_s15 = inlined_call_operand.vmem [shape: f32[16,128], index: 15, kind: output, shape index: {0}]   ;;  %s8103_s16 = inlined_call_operand.hbm [shape: f32[16,384], index: 16, kind: output, shape index: {1}]  }
   0x1   :  { %8110 = sst [smem:[#allocation12_spill]] %s8087_s0 }
   0x2   :  { %8111 = sst [smem:[#allocation13_spill]] %s8102_s15 }
   0x3   :  { %22 = vsyncpa [#allocation4], 0 }
   0x4   :  { %24 = vsyncpa [#allocation4 + $0x1], 0  ;;  %s5995_s21 = smov 0   ;;  %s5997_s22 = smov 0  }
   0x5   :  { %s5999_s23 = smov 0   ;;  %s6001_s24 = smov 0  }
   0x6 LB: > { %8112 = sst [smem:[#allocation6_spill]] %s5892_s21  ;;  %s6016_s25 = sadd.s32 4294967295, %s5904_s24   ;;  %s5904_s24 = sphi %s6001_s24, %s8125_s24   ;;  %s5900_s23 = sphi %s5999_s23, %s8127_s23   ;;  %s5896_s22 = sphi %s5997_s22, %s8129_s22   ;;  %s5892_s21 = sphi %s5995_s21, %s8128_s21  }
   0x7   : > { %8113 = sst [smem:[#allocation7_spill]] %s5900_s23  ;;  %s3493_s26 = sadd.s32 4294967294, %s5904_s24  }
   0x8   : > { %8114 = sst [smem:[#allocation8_spill]] %s5904_s24  ;;  %s6020_s27 = sadd.s32 1, %s5904_s24  }
   0x9   : > { %8115 = sst [smem:[#allocation9_spill]] %s6020_s27  ;;  %s443_s28 = sadd.s32 1, %s5900_s23 }
   0xa   : > { %s440_s29 = ssub.s32 %s5904_s24, %s6020_s27  ;;  %p453_p0 = scmp.ne.s32.totalorder %s5900_s23, %s5896_s22 }
   0xb   : > { %p441_p1 = scmp.eq.s32.totalorder %s440_s29, 0  ;;  %p454_p2 = scmp.eq.s32.totalorder %s6016_s25, 1 }
   0xc   : > { %p459_p3 = scmp.ne.s32.totalorder %s5896_s22, %s5892_s21  ;;  %p460_p4 = scmp.eq.s32.totalorder %s3493_s26, 1 }
   0xd   : > { %s6031_s30 = scalar_select %p441_p1, %s5900_s23, %s443_s28  }
   0xe   : > { %p6033_p5 = por %p454_p2, %p453_p0  ;;  %p6037_p6 = por %p460_p4, %p459_p3 }
   0xf   : > { %8116 = sst [smem:[#allocation10_spill]] %s6031_s30  ;;  %p3496_p7 = scmp.ge.s32.totalorder %s5904_s24, 1 }
  0x10   : > { %s8118_s17 = scalar_select %p6037_p6, 1, 0 }
  0x11   : > { %p600_p8 = scmp.lt.s32.totalorder %s5904_s24, 3 }
  0x12   : > { %8119 = sst [smem:[#allocation11_spill]] %s8118_s17 }
  0x13   : > { %p601_p9 = pnand %p3496_p7, %p600_p8 }
  0x14   : > { %v826_v0 = vld [vmem:[%s8100_s13 + $0x80] sm:$0xff] (!%p601_p9)  ;;  %v827_v1 = vld [vmem:[%s8100_s13 + $0x88] sm:$0xff] (!%p601_p9)  ;;  %p726_p10 = scmp.lt.s32.totalorder (!%p601_p9), %s6016_s25, 1  ;;  %v5906_v5 = vmov (!%p601_p9), 0.0|0.0   ;;  %v828_v10 = vld [vmem:[%s8100_s13 + $0x90] sm:$0xff] (!%p601_p9)  ;;  %vm5907_vm0 = vmmov (!%p601_p9), 0  }
  0x15   : > { %604 = sbr.rel (%p601_p9) target bundleno = 629 (0x275), region = 80  ;;  %v810_v2 = vld [vmem:[%s8100_s13] sm:$0xff] (!%p601_p9)  ;;  %v5123_v3 = vpack.c.bf16 (!%p601_p9), %v827_v1, %v826_v0  ;;  %v811_v4 = vld [vmem:[%s8100_s13 + $0x8] sm:$0xff] (!%p601_p9)  ;;  %5155 = vmatprep.subr.bf16.mxu1 (!%p601_p9), %v5906_v5  ;;  %v829_v11 = vld [vmem:[%s8100_s13 + $0x98] sm:$0xff] (!%p601_p9)  ;;  %v5908_v13 = vmov (!%p601_p9), 0.0   ;;  %s8120_s30 = sld [smem:[#allocation12_spill]] (!%p601_p9) }
  0x16   : > { %v842_v6 = vld [vmem:[%s8100_s13 + $0x100] sm:$0xff] (!%p601_p9)  ;;  %v843_v7 = vld [vmem:[%s8100_s13 + $0x108] sm:$0xff] (!%p601_p9)  ;;  %v5125_v8 = vpack.c.bf16 (!%p601_p9), %v811_v4, %v810_v2  ;;  %v812_v12 = vld [vmem:[%s8100_s13 + $0x10] sm:$0xff] (!%p601_p9)  ;;  %4735 = vmatprep.mubr.msk.f32.mxu1 (!%p601_p9), %vm5907_vm0, %v5908_v13  ;;  %v5127_v14 = vpack.c.bf16 (!%p601_p9), %v829_v11, %v828_v10  ;;  %s5909_s21 = smov (!%p601_p9), [#allocation3]  }
  0x17   : > { %v5156_v9 = vpack.c.bf16 (!%p601_p9), %v843_v7, %v842_v6  ;;  %5124 = vmatprep.subr.bf16.mxu0 (!%p601_p9), %v5123_v3  ;;  %v813_v15 = vld [vmem:[%s8100_s13 + $0x18] sm:$0xff] (!%p601_p9)  ;;  %v844_v16 = vld [vmem:[%s8100_s13 + $0x110] sm:$0xff] (!%p601_p9)  ;;  %v830_v20 = vld [vmem:[%s8100_s13 + $0xa0] sm:$0xff] (!%p601_p9)  ;;  %s5846_s18 = sshll.u32 (!%p601_p9), %s5909_s21, 4  ;;  %s5847_s18 = int_to_ptr.vmem [resolvable:$false] %s5846_s18 }
  0x18   : > { %v845_v17 = vld [vmem:[%s8100_s13 + $0x118] sm:$0xff] (!%p601_p9)  ;;  %5126 = vmatpush3.bf16.msra.mxu0 (!%p601_p9), %v5125_v8  ;;  %v5129_v18 = vpack.c.bf16 (!%p601_p9), %v813_v15, %v812_v12  ;;  %v831_v21 = vld [vmem:[%s8100_s13 + $0xa8] sm:$0xff] (!%p601_p9)  ;;  %v814_v22 = vld [vmem:[%s8100_s13 + $0x20] sm:$0xff] (!%p601_p9) }
  0x19   : > { %5157 = vmatpush3.bf16.msra.mxu1 (!%p601_p9), %v5156_v9  ;;  %v5159_v19 = vpack.c.bf16 (!%p601_p9), %v845_v17, %v844_v16  ;;  %5128 = vmatprep.subr.bf16.mxu0 (!%p601_p9), %v5127_v14  ;;  %v5131_v23 = vpack.c.bf16 (!%p601_p9), %v831_v21, %v830_v20  ;;  %v815_v24 = vld [vmem:[%s8100_s13 + $0x28] sm:$0xff] (!%p601_p9)  ;;  %v846_v25 = vld [vmem:[%s8100_s13 + $0x120] sm:$0xff] (!%p601_p9)  ;;  %v832_v27 = vld [vmem:[%s8100_s13 + $0xb0] sm:$0xff] (!%p601_p9) }
  0x1a   : > { %5158 = vmatprep.subr.bf16.mxu1 (!%p601_p9), %v5906_v5  ;;  %v847_v26 = vld [vmem:[%s8100_s13 + $0x128] sm:$0xff] (!%p601_p9)  ;;  %v833_v28 = vld [vmem:[%s8100_s13 + $0xb8] sm:$0xff] (!%p601_p9)  ;;  %v5133_v29 = vpack.c.bf16 (!%p601_p9), %v815_v24, %v814_v22  ;;  %v816_v31 = vld [vmem:[%s8100_s13 + $0x30] sm:$0xff] (!%p601_p9) }
  0x1b   : > { %v5162_v30 = vpack.c.bf16 (!%p601_p9), %v847_v26, %v846_v25  ;;  %v5135_v32 = vpack.c.bf16 (!%p601_p9), %v833_v28, %v832_v27  ;;  %v817_v33 = vld [vmem:[%s8100_s13 + $0x38] sm:$0xff] (!%p601_p9)  ;;  %v848_v34 = vld [vmem:[%s8100_s13 + $0x130] sm:$0xff] (!%p601_p9)  ;;  %v834_v36 = vld [vmem:[%s8100_s13 + $0xc0] sm:$0xff] (!%p601_p9) }
  0x1c   : > { %s6095_s19 = scalar_select %p726_p10, %s6016_s25, 1  ;;  %5130 = vmatpush3.bf16.msra.mxu0 %v5129_v18  ;;  %v849_v35 = vld [vmem:[%s8100_s13 + $0x138] sm:$0xff]  ;;  %v835_v37 = vld [vmem:[%s8100_s13 + $0xc8] sm:$0xff]  ;;  %v5137_v38 = vpack.c.bf16 %v817_v33, %v816_v31  ;;  %v818_v40 = vld [vmem:[%s8100_s13 + $0x40] sm:$0xff] }
  0x1d   : > { %5160 = vmatpush3.bf16.msra.mxu1 %v5159_v19  ;;  %5132 = vmatprep.subr.bf16.mxu0 %v5131_v23  ;;  %v5165_v39 = vpack.c.bf16 %v849_v35, %v848_v34  ;;  %v5139_v41 = vpack.c.bf16 %v835_v37, %v834_v36  ;;  %v819_v42 = vld [vmem:[%s8100_s13 + $0x48] sm:$0xff]  ;;  %v850_v43 = vld [vmem:[%s8100_s13 + $0x140] sm:$0xff]  ;;  %v836_v45 = vld [vmem:[%s8100_s13 + $0xd0] sm:$0xff] }
  0x1e   : > { %s6117_s17 = smul.u32 192, %s6095_s19  ;;  %5161 = vmatprep.subr.bf16.mxu1 %v5906_v5  ;;  %v851_v44 = vld [vmem:[%s8100_s13 + $0x148] sm:$0xff]  ;;  %v837_v46 = vld [vmem:[%s8100_s13 + $0xd8] sm:$0xff]  ;;  %v5141_v48 = vpack.c.bf16 %v819_v42, %v818_v40  ;;  %v820_v50 = vld [vmem:[%s8100_s13 + $0x50] sm:$0xff] }
  0x1f   : > { %v5168_v49 = vpack.c.bf16 %v851_v44, %v850_v43  ;;  %v5143_v51 = vpack.c.bf16 %v837_v46, %v836_v45  ;;  %v821_v52 = vld [vmem:[%s8100_s13 + $0x58] sm:$0xff]  ;;  %v852_v53 = vld [vmem:[%s8100_s13 + $0x150] sm:$0xff]  ;;  %v838_v55 = vld [vmem:[%s8100_s13 + $0xe0] sm:$0xff] }
  0x20   : > { %5134 = vmatpush3.bf16.msra.mxu0 %v5133_v29  ;;  %s6142_s27 = scalar_lea.vmem %s8120_s30, %s6117_s17  ;;  %v853_v54 = vld [vmem:[%s8100_s13 + $0x158] sm:$0xff]  ;;  %v839_v56 = vld [vmem:[%s8100_s13 + $0xe8] sm:$0xff]  ;;  %v5145_v57 = vpack.c.bf16 %v821_v52, %v820_v50  ;;  %v822_v59 = vld [vmem:[%s8100_s13 + $0x60] sm:$0xff]  ;;  %s6246_s20 = scalar_lea.vmem %s8088_s1, %s6117_s17 }
  0x21   : > { %5163 = vmatpush3.bf16.msra.mxu1 %v5162_v30  ;;  %5136 = vmatprep.subr.bf16.mxu0 %v5135_v32  ;;  %v3512_v47 = vld [vmem:[%s6142_s27 + $0x188] sm:$0xff]  ;;  %v5171_v58 = vpack.c.bf16 %v853_v54, %v852_v53  ;;  %v5147_v60 = vpack.c.bf16 %v839_v56, %v838_v55  ;;  %v854_v62 = vld [vmem:[%s8100_s13 + $0x160] sm:$0xff]  ;;  %v840_v0 = vld [vmem:[%s8100_s13 + $0xf0] sm:$0xff]  ;;  %s6409_s24 = scalar_lea.vmem %s8089_s2, %s6117_s17  ;;  %s6572_s23 = scalar_lea.vmem %s8090_s3, %s6117_s17 }
  0x22   : > { %5164 = vmatprep.subr.bf16.mxu1 %v5906_v5  ;;  %922 = vmatprep.mubr.f32.mxu0 %v3512_v47  ;;  %v823_v61 = vld [vmem:[%s8100_s13 + $0x68] sm:$0xff]  ;;  %v841_v1 = vld [vmem:[%s8100_s13 + $0xf8] sm:$0xff]  ;;  %v824_v4 = vld [vmem:[%s8100_s13 + $0x70] sm:$0xff]  ;;  %s6735_s29 = scalar_lea.vmem %s8091_s4, %s6117_s17  ;;  %s7903_s30 = scalar_lea.vmem %s8098_s11, %s6117_s17 }
  0x23   : > { %v855_v63 = vld [vmem:[%s8100_s13 + $0x168] sm:$0xff]  ;;  %v5149_v2 = vpack.c.bf16 %v823_v61, %v822_v59  ;;  %v5151_v6 = vpack.c.bf16 %v841_v1, %v840_v0  ;;  %v825_v7 = vld [vmem:[%s8100_s13 + $0x78] sm:$0xff]  ;;  %v856_v8 = vld [vmem:[%s8100_s13 + $0x170] sm:$0xff] }
  0x24   : > { %5138 = vmatpush3.bf16.msra.mxu0 %v5137_v38  ;;  %v5174_v3 = vpack.c.bf16 %v855_v63, %v854_v62  ;;  %v857_v9 = vld [vmem:[%s8100_s13 + $0x178] sm:$0xff]  ;;  %v3533_v10 = vld [vmem:[%s8100_s13 + $0x200] sm:$0xff]  ;;  %v3534_v11 = vld [vmem:[%s8100_s13 + $0x208] sm:$0xff]  ;;  %v5153_v12 = vpack.c.bf16 %v825_v7, %v824_v4 }
  0x25   : > { %5166 = vmatpush3.bf16.msra.mxu1 %v5165_v39  ;;  %5140 = vmatprep.subr.bf16.mxu0 %v5139_v41  ;;  %v5177_v14 = vpack.c.bf16 %v857_v9, %v856_v8  ;;  %v3517_v15 = vld [vmem:[%s8100_s13 + $0x180] sm:$0xff]  ;;  %v5179_v16 = vpack.c.bf16 %v3534_v11, %v3533_v10  ;;  %v3518_v17 = vld [vmem:[%s8100_s13 + $0x188] sm:$0xff]  ;;  %v3535_v20 = vld [vmem:[%s8100_s13 + $0x210] sm:$0xff] }
  0x26   : > { %5167 = vmatprep.subr.bf16.mxu1 %v5906_v5  ;;  %v3549_v18 = vld [vmem:[%s8100_s13 + $0x280] sm:$0xff]  ;;  %v3550_v19 = vld [vmem:[%s8100_s13 + $0x288] sm:$0xff]  ;;  %v3536_v21 = vld [vmem:[%s8100_s13 + $0x218] sm:$0xff]  ;;  %v5181_v23 = vpack.c.bf16 %v3518_v17, %v3517_v15 }
  0x27   : > { %v3511_v22 = vld [vmem:[%s6142_s27 + $0x180] sm:$0xff]  ;;  %v3513_v24 = vld [vmem:[%s6142_s27 + $0x190] sm:$0xff]  ;;  %v5212_v25 = vpack.c.bf16 %v3550_v19, %v3549_v18  ;;  %v5183_v27 = vpack.c.bf16 %v3536_v21, %v3535_v20  ;;  %v3520_v28 = vld [vmem:[%s8100_s13 + $0x198] sm:$0xff]  ;;  %s6898_s27 = scalar_lea.vmem %s8092_s5, %s6117_s17 }
  0x28   : > { %5142 = vmatpush3.bf16.msra.mxu0 %v5141_v48  ;;  %v3519_v26 = vld [vmem:[%s8100_s13 + $0x190] sm:$0xff]  ;;  %v3552_v30 = vld [vmem:[%s8100_s13 + $0x298] sm:$0xff]  ;;  %v3537_v31 = vld [vmem:[%s8100_s13 + $0x220] sm:$0xff] }
  0x29   : > { %5169 = vmatpush3.bf16.msra.mxu1 %v5168_v49  ;;  %5144 = vmatprep.subr.bf16.mxu0 %v5143_v51  ;;  %v3551_v29 = vld [vmem:[%s8100_s13 + $0x290] sm:$0xff]  ;;  %v3538_v32 = vld [vmem:[%s8100_s13 + $0x228] sm:$0xff]  ;;  %v5185_v34 = vpack.c.bf16 %v3520_v28, %v3519_v26  ;;  %v3521_v36 = vld [vmem:[%s8100_s13 + $0x1a0] sm:$0xff] }
  0x2a   : > { %5170 = vmatprep.subr.bf16.mxu1 %v5906_v5  ;;  %v3515_v33 = vld [vmem:[%s6246_s20 + $0x308] sm:$0xff]  ;;  %v5215_v35 = vpack.c.bf16 %v3552_v30, %v3551_v29  ;;  %v5187_v37 = vpack.c.bf16 %v3538_v32, %v3537_v31  ;;  %v3553_v39 = vld [vmem:[%s8100_s13 + $0x2a0] sm:$0xff]  ;;  %v3539_v41 = vld [vmem:[%s8100_s13 + $0x230] sm:$0xff] }
  0x2b   : > { %v3522_v38 = vld [vmem:[%s8100_s13 + $0x1a8] sm:$0xff]  ;;  %v3540_v42 = vld [vmem:[%s8100_s13 + $0x238] sm:$0xff]  ;;  %v3523_v45 = vld [vmem:[%s8100_s13 + $0x1b0] sm:$0xff] }
  0x2c   : > { %5146 = vmatpush3.bf16.msra.mxu0 %v5145_v57  ;;  %v3554_v40 = vld [vmem:[%s8100_s13 + $0x2a8] sm:$0xff]  ;;  %v5189_v43 = vpack.c.bf16 %v3522_v38, %v3521_v36  ;;  %v5191_v46 = vpack.c.bf16 %v3540_v42, %v3539_v41  ;;  %v3524_v47 = vld [vmem:[%s8100_s13 + $0x1b8] sm:$0xff]  ;;  %v3555_v48 = vld [vmem:[%s8100_s13 + $0x2b0] sm:$0xff] }
  0x2d   : > { %5172 = vmatpush3.bf16.msra.mxu1 %v5171_v58  ;;  %5148 = vmatprep.subr.bf16.mxu0 %v5147_v60  ;;  %v5218_v44 = vpack.c.bf16 %v3554_v40, %v3553_v39  ;;  %v3556_v49 = vld [vmem:[%s8100_s13 + $0x2b8] sm:$0xff]  ;;  %v3541_v50 = vld [vmem:[%s8100_s13 + $0x240] sm:$0xff]  ;;  %v3542_v51 = vld [vmem:[%s8100_s13 + $0x248] sm:$0xff]  ;;  %v5193_v52 = vpack.c.bf16 %v3524_v47, %v3523_v45 }
  0x2e   : > { %5173 = vmatprep.subr.bf16.mxu1 %v5906_v5  ;;  %v5221_v53 = vpack.c.bf16 %v3556_v49, %v3555_v48  ;;  %v3525_v54 = vld [vmem:[%s8100_s13 + $0x1c0] sm:$0xff]  ;;  %v5195_v55 = vpack.c.bf16 %v3542_v51, %v3541_v50  ;;  %v3526_v56 = vld [vmem:[%s8100_s13 + $0x1c8] sm:$0xff]  ;;  %v3543_v59 = vld [vmem:[%s8100_s13 + $0x250] sm:$0xff] }
  0x2f   : > { %v3557_v57 = vld [vmem:[%s8100_s13 + $0x2c0] sm:$0xff]  ;;  %v3558_v58 = vld [vmem:[%s8100_s13 + $0x2c8] sm:$0xff]  ;;  %v3544_v60 = vld [vmem:[%s8100_s13 + $0x258] sm:$0xff]  ;;  %v5197_v61 = vpack.c.bf16 %v3526_v56, %v3525_v54 }
  0x30   : > { %5150 = vmatpush3.bf16.msra.mxu0 %v5149_v2  ;;  %v5224_v62 = vpack.c.bf16 %v3558_v58, %v3557_v57  ;;  %v3527_v63 = vld [vmem:[%s8100_s13 + $0x1d0] sm:$0xff]  ;;  %v5199_v0 = vpack.c.bf16 %v3544_v60, %v3543_v59  ;;  %v3528_v1 = vld [vmem:[%s8100_s13 + $0x1d8] sm:$0xff]  ;;  %v3545_v4 = vld [vmem:[%s8100_s13 + $0x260] sm:$0xff] }
  0x31   : > { %5175 = vmatpush3.bf16.msra.mxu1 %v5174_v3  ;;  %5152 = vmatprep.subr.bf16.mxu0 %v5151_v6  ;;  %v3559_v2 = vld [vmem:[%s8100_s13 + $0x2d0] sm:$0xff]  ;;  %v3560_v3 = vld [vmem:[%s8100_s13 + $0x2d8] sm:$0xff]  ;;  %v3546_v6 = vld [vmem:[%s8100_s13 + $0x268] sm:$0xff]  ;;  %v5201_v7 = vpack.c.bf16 %v3528_v1, %v3527_v63 }
  0x32   : > { %5176 = vmatprep.subr.bf16.mxu1 %v5906_v5  ;;  %v5227_v8 = vpack.c.bf16 %v3560_v3, %v3559_v2  ;;  %v3529_v9 = vld [vmem:[%s8100_s13 + $0x1e0] sm:$0xff]  ;;  %v5203_v10 = vpack.c.bf16 %v3546_v6, %v3545_v4  ;;  %v3530_v11 = vld [vmem:[%s8100_s13 + $0x1e8] sm:$0xff]  ;;  %v3547_v15 = vld [vmem:[%s8100_s13 + $0x270] sm:$0xff] }
  0x33   : > { %v5205_v17 = vpack.c.bf16 %v3530_v11, %v3529_v9  ;;  %v3531_v19 = vld [vmem:[%s8100_s13 + $0x1f0] sm:$0xff]  ;;  %v3532_v21 = vld [vmem:[%s8100_s13 + $0x1f8] sm:$0xff]  ;;  %v3568_v28 = vld [vmem:[%s8100_s13 + $0x300] sm:$0xff] }
  0x34   : > { %5154 = vmatpush3.bf16.msra.mxu0 %v5153_v12  ;;  %v3561_v12 = vld [vmem:[%s8100_s13 + $0x2e0] sm:$0xff]  ;;  %v5209_v26 = vpack.c.bf16 %v3532_v21, %v3531_v19  ;;  %v3569_v30 = vld [vmem:[%s8100_s13 + $0x308] sm:$0xff]  ;;  %v3570_v39 = vld [vmem:[%s8100_s13 + $0x310] sm:$0xff] }
  0x35   : > { %5178 = vmatpush3.bf16.msra.mxu1 %v5177_v14  ;;  %5180 = vmatprep.subr.bf16.mxu0 %v5179_v16  ;;  %v3562_v14 = vld [vmem:[%s8100_s13 + $0x2e8] sm:$0xff]  ;;  %v3548_v16 = vld [vmem:[%s8100_s13 + $0x278] sm:$0xff]  ;;  %v3600_v31 = vld [vmem:[%s8100_s13 + $0x400] sm:$0xff]  ;;  %v5237_v36 = vpack.c.bf16 %v3569_v30, %v3568_v28 }
  0x36   : > { %5211 = vmatprep.subr.bf16.mxu1 %v5906_v5  ;;  %v5230_v18 = vpack.c.bf16 %v3562_v14, %v3561_v12  ;;  %v5207_v20 = vpack.c.bf16 %v3548_v16, %v3547_v15  ;;  %v3601_v32 = vld [vmem:[%s8100_s13 + $0x408] sm:$0xff]  ;;  %v3571_v41 = vld [vmem:[%s8100_s13 + $0x318] sm:$0xff]  ;;  %v3602_v42 = vld [vmem:[%s8100_s13 + $0x410] sm:$0xff] }
  0x37   : > { %923 = vmatmul.mubr.f32.vlgmr.msra.gmra.mrb[0].mxu0 %v3511_v22  ;;  %v3563_v22 = vld [vmem:[%s8100_s13 + $0x2f0] sm:$0xff]  ;;  %v5268_v38 = vpack.c.bf16 %v3601_v32, %v3600_v31  ;;  %v3589_v45 = vld [vmem:[%s8100_s13 + $0x3a8] sm:$0xff]  ;;  %v5241_v47 = vpack.c.bf16 %v3571_v41, %v3570_v39  ;;  %v3572_v49 = vld [vmem:[%s8100_s13 + $0x320] sm:$0xff] }
  0x38   : > { %4736 = vmatmul.mubr.f32.vlgmr.msra.gmra.mrb[0].mxu1 %v3513_v24  ;;  %5182 = vmatpush3.bf16.msra.mxu0 %v5181_v23  ;;  %v3564_v23 = vld [vmem:[%s8100_s13 + $0x2f8] sm:$0xff]  ;;  %v3584_v24 = vld [vmem:[%s8100_s13 + $0x380] sm:$0xff]  ;;  %v3573_v51 = vld [vmem:[%s8100_s13 + $0x328] sm:$0xff] }
  0x39   : > { %5213 = vmatpush3.bf16.msra.mxu1 %v5212_v25  ;;  %5184 = vmatprep.subr.bf16.mxu0 %v5183_v27  ;;  %v3585_v25 = vld [vmem:[%s8100_s13 + $0x388] sm:$0xff]  ;;  %v5233_v27 = vpack.c.bf16 %v3564_v23, %v3563_v22  ;;  %v3590_v54 = vld [vmem:[%s8100_s13 + $0x3b0] sm:$0xff]  ;;  %v5245_v56 = vpack.c.bf16 %v3573_v51, %v3572_v49  ;;  %v3575_v60 = vld [vmem:[%s8100_s13 + $0x338] sm:$0xff] }
  0x3a   : > { %5214 = vmatprep.subr.bf16.mxu1 %v5906_v5  ;;  %1116 = vmatprep.mubr.f32.mxu0 %v3515_v33  ;;  %v5235_v29 = vpack.c.bf16 %v3585_v25, %v3584_v24  ;;  %v3586_v33 = vld [vmem:[%s8100_s13 + $0x390] sm:$0xff]  ;;  %v3592_v63 = vld [vmem:[%s8100_s13 + $0x3c0] sm:$0xff]  ;;  %v3577_v6 = vld [vmem:[%s8100_s13 + $0x348] sm:$0xff] }
  0x3b   : > { %4770 = vmatprep.mubr.msk.f32.mxu1 %vm5907_vm0, %v5908_v13  ;;  %v3574_v58 = vld [vmem:[%s8100_s13 + $0x330] sm:$0xff]  ;;  %v3576_v3 = vld [vmem:[%s8100_s13 + $0x340] sm:$0xff]  ;;  %v3579_v16 = vld [vmem:[%s8100_s13 + $0x358] sm:$0xff] }
  0x3c   : > { %5186 = vmatpush3.bf16.msra.mxu0 %v5185_v34  ;;  %v3587_v34 = vld [vmem:[%s8100_s13 + $0x398] sm:$0xff]  ;;  %v5249_v1 = vpack.c.bf16 %v3575_v60, %v3574_v58  ;;  %v3594_v9 = vld [vmem:[%s8100_s13 + $0x3d0] sm:$0xff]  ;;  %v5253_v11 = vpack.c.bf16 %v3577_v6, %v3576_v3  ;;  %v3596_v19 = vld [vmem:[%s8100_s13 + $0x3e0] sm:$0xff] }
  0x3d   : > { %5216 = vmatpush3.bf16.msra.mxu1 %v5215_v35  ;;  %5188 = vmatprep.subr.bf16.mxu0 %v5187_v37  ;;  %v3514_v35 = vld [vmem:[%s6246_s20 + $0x300] sm:$0xff]  ;;  %v3516_v37 = vld [vmem:[%s6246_s20 + $0x310] sm:$0xff]  ;;  %v5239_v40 = vpack.c.bf16 %v3587_v34, %v3586_v33  ;;  %v3581_v25 = vld [vmem:[%s8100_s13 + $0x368] sm:$0xff]  ;;  %s7061_s20 = scalar_lea.vmem %s8093_s6, %s6117_s17 }
  0x3e   : > { %5217 = vmatprep.subr.bf16.mxu1 %v5906_v5  ;;  %v3578_v14 = vld [vmem:[%s8100_s13 + $0x350] sm:$0xff]  ;;  %v3580_v23 = vld [vmem:[%s8100_s13 + $0x360] sm:$0xff]  ;;  %v3583_v34 = vld [vmem:[%s8100_s13 + $0x378] sm:$0xff] }
  0x3f   : > { %v5257_v21 = vpack.c.bf16 %v3579_v16, %v3578_v14  ;;  %v3598_v28 = vld [vmem:[%s8100_s13 + $0x3f0] sm:$0xff]  ;;  %v5261_v30 = vpack.c.bf16 %v3581_v25, %v3580_v23  ;;  %v3619_v41 = vld [vmem:[%s8100_s13 + $0x480] sm:$0xff]  ;;  %v3640_v58 = vld [vmem:[%s8100_s13 + $0x528] sm:$0xff] }
  0x40   : > { %5190 = vmatpush3.bf16.msra.mxu0 %v5189_v43  ;;  %v3603_v43 = vld [vmem:[%s8100_s13 + $0x418] sm:$0xff]  ;;  %v3582_v32 = vld [vmem:[%s8100_s13 + $0x370] sm:$0xff]  ;;  %v3643_v14 = vld [vmem:[%s8100_s13 + $0x540] sm:$0xff] }
  0x41   : > { %5219 = vmatpush3.bf16.msra.mxu1 %v5218_v44  ;;  %5192 = vmatprep.subr.bf16.mxu0 %v5191_v46  ;;  %v3588_v44 = vld [vmem:[%s8100_s13 + $0x3a0] sm:$0xff]  ;;  %v3566_v46 = vld [vmem:[%s6409_s24 + $0x488] sm:$0xff]  ;;  %v5271_v48 = vpack.c.bf16 %v3603_v43, %v3602_v42  ;;  %v5265_v39 = vpack.c.bf16 %v3583_v34, %v3582_v32  ;;  %v3641_v3 = vld [vmem:[%s8100_s13 + $0x530] sm:$0xff] }
  0x42   : > { %5220 = vmatprep.subr.bf16.mxu1 %v5906_v5  ;;  %v5243_v50 = vpack.c.bf16 %v3589_v45, %v3588_v44  ;;  %v3620_v43 = vld [vmem:[%s8100_s13 + $0x488] sm:$0xff]  ;;  %v3651_v44 = vld [vmem:[%s8100_s13 + $0x580] sm:$0xff]  ;;  %v3645_v23 = vld [vmem:[%s8100_s13 + $0x550] sm:$0xff] }
  0x43   : > { %v3652_v45 = vld [vmem:[%s8100_s13 + $0x588] sm:$0xff]  ;;  %v5293_v49 = vpack.c.bf16 %v3620_v43, %v3619_v41  ;;  %v3647_v32 = vld [vmem:[%s8100_s13 + $0x560] sm:$0xff]  ;;  %v3649_v41 = vld [vmem:[%s8100_s13 + $0x570] sm:$0xff] }
  0x44   : > { %5194 = vmatpush3.bf16.msra.mxu0 %v5193_v52  ;;  %v3604_v52 = vld [vmem:[%s8100_s13 + $0x420] sm:$0xff]  ;;  %v5324_v51 = vpack.c.bf16 %v3652_v45, %v3651_v44  ;;  %v3633_v45 = vld [vmem:[%s8100_s13 + $0x4f0] sm:$0xff] }
  0x45   : > { %5222 = vmatpush3.bf16.msra.mxu1 %v5221_v53  ;;  %5196 = vmatprep.subr.bf16.mxu0 %v5195_v55  ;;  %v3605_v53 = vld [vmem:[%s8100_s13 + $0x428] sm:$0xff]  ;;  %v3591_v55 = vld [vmem:[%s8100_s13 + $0x3b8] sm:$0xff] }
  0x46   : > { %5223 = vmatprep.subr.bf16.mxu1 %v5906_v5  ;;  %v5274_v57 = vpack.c.bf16 %v3605_v53, %v3604_v52  ;;  %v5247_v59 = vpack.c.bf16 %v3591_v55, %v3590_v54  ;;  %v3621_v52 = vld [vmem:[%s8100_s13 + $0x490] sm:$0xff]  ;;  %v3622_v54 = vld [vmem:[%s8100_s13 + $0x498] sm:$0xff] }
  0x47   : > { %v3653_v55 = vld [vmem:[%s8100_s13 + $0x590] sm:$0xff]  ;;  %v5297_v60 = vpack.c.bf16 %v3622_v54, %v3621_v52  ;;  %v3670_v54 = vld [vmem:[%s8100_s13 + $0x600] sm:$0xff] }
  0x48   : > { %5198 = vmatpush3.bf16.msra.mxu0 %v5197_v61  ;;  %v3606_v61 = vld [vmem:[%s8100_s13 + $0x430] sm:$0xff] }
  0x49   : > { %5225 = vmatpush3.bf16.msra.mxu1 %v5224_v62  ;;  %5200 = vmatprep.subr.bf16.mxu0 %v5199_v0  ;;  %v3607_v62 = vld [vmem:[%s8100_s13 + $0x438] sm:$0xff]  ;;  %v3593_v0 = vld [vmem:[%s8100_s13 + $0x3c8] sm:$0xff] }
  0x4a   : > { %5226 = vmatprep.subr.bf16.mxu1 %v5906_v5  ;;  %v5277_v2 = vpack.c.bf16 %v3607_v62, %v3606_v61  ;;  %v5251_v4 = vpack.c.bf16 %v3593_v0, %v3592_v63  ;;  %v3623_v62 = vld [vmem:[%s8100_s13 + $0x4a0] sm:$0xff]  ;;  %v3624_v0 = vld [vmem:[%s8100_s13 + $0x4a8] sm:$0xff] }
  0x4b   : > { %v5301_v6 = vpack.c.bf16 %v3624_v0, %v3623_v62 }
  0x4c   : > { %5202 = vmatpush3.bf16.msra.mxu0 %v5201_v7  ;;  %v3608_v7 = vld [vmem:[%s8100_s13 + $0x440] sm:$0xff] }
  0x4d   : > { %5228 = vmatpush3.bf16.msra.mxu1 %v5227_v8  ;;  %5204 = vmatprep.subr.bf16.mxu0 %v5203_v10  ;;  %v3609_v8 = vld [vmem:[%s8100_s13 + $0x448] sm:$0xff]  ;;  %v3595_v10 = vld [vmem:[%s8100_s13 + $0x3d8] sm:$0xff] }
  0x4e   : > { %5229 = vmatprep.subr.bf16.mxu1 %v5906_v5  ;;  %v5280_v12 = vpack.c.bf16 %v3609_v8, %v3608_v7  ;;  %v5255_v15 = vpack.c.bf16 %v3595_v10, %v3594_v9  ;;  %v3625_v8 = vld [vmem:[%s8100_s13 + $0x4b0] sm:$0xff]  ;;  %v3626_v10 = vld [vmem:[%s8100_s13 + $0x4b8] sm:$0xff] }
  0x4f   : > { %v5305_v16 = vpack.c.bf16 %v3626_v10, %v3625_v8  ;;  %v3691_v8 = vld [vmem:[%s8100_s13 + $0x6a8] sm:$0xff] }
  0x50   : > { %5206 = vmatpush3.bf16.msra.mxu0 %v5205_v17  ;;  %v3610_v17 = vld [vmem:[%s8100_s13 + $0x450] sm:$0xff] }
  0x51   : > { %5231 = vmatpush3.bf16.msra.mxu1 %v5230_v18  ;;  %5208 = vmatprep.subr.bf16.mxu0 %v5207_v20  ;;  %v3611_v18 = vld [vmem:[%s8100_s13 + $0x458] sm:$0xff]  ;;  %v3597_v20 = vld [vmem:[%s8100_s13 + $0x3e8] sm:$0xff] }
  0x52   : > { %5232 = vmatprep.subr.bf16.mxu1 %v5906_v5  ;;  %v5283_v22 = vpack.c.bf16 %v3611_v18, %v3610_v17  ;;  %v5259_v24 = vpack.c.bf16 %v3597_v20, %v3596_v19  ;;  %v3627_v18 = vld [vmem:[%s8100_s13 + $0x4c0] sm:$0xff]  ;;  %v3628_v20 = vld [vmem:[%s8100_s13 + $0x4c8] sm:$0xff] }
  0x53   : > { %v5309_v25 = vpack.c.bf16 %v3628_v20, %v3627_v18  ;;  %v3692_v18 = vld [vmem:[%s8100_s13 + $0x6b0] sm:$0xff] }
  0x54   : > { %5210 = vmatpush3.bf16.msra.mxu0 %v5209_v26  ;;  %v3612_v26 = vld [vmem:[%s8100_s13 + $0x460] sm:$0xff] }
  0x55   : > { %5234 = vmatpush3.bf16.msra.mxu1 %v5233_v27  ;;  %5236 = vmatprep.subr.bf16.mxu0 %v5235_v29  ;;  %v3613_v27 = vld [vmem:[%s8100_s13 + $0x468] sm:$0xff]  ;;  %v3599_v29 = vld [vmem:[%s8100_s13 + $0x3f8] sm:$0xff] }
  0x56   : > { %5267 = vmatprep.subr.bf16.mxu1 %v5906_v5  ;;  %v5286_v31 = vpack.c.bf16 %v3613_v27, %v3612_v26  ;;  %v5263_v33 = vpack.c.bf16 %v3599_v29, %v3598_v28  ;;  %v3629_v27 = vld [vmem:[%s8100_s13 + $0x4d0] sm:$0xff]  ;;  %v3630_v29 = vld [vmem:[%s8100_s13 + $0x4d8] sm:$0xff] }
  0x57   : > { %1117 = vmatmul.mubr.f32.vlgmr.msra.gmra.mrb[2].mxu0 %v3514_v35  ;;  %v3614_v35 = vld [vmem:[%s8100_s13 + $0x470] sm:$0xff]  ;;  %v5313_v34 = vpack.c.bf16 %v3630_v29, %v3629_v27  ;;  %v3694_v27 = vld [vmem:[%s8100_s13 + $0x6c0] sm:$0xff] }
  0x58   : > { %4771 = vmatmul.mubr.f32.vlgmr.msra.gmra.mrb[2].mxu1 %v3516_v37  ;;  %5238 = vmatpush3.bf16.msra.mxu0 %v5237_v36  ;;  %v3615_v36 = vld [vmem:[%s8100_s13 + $0x478] sm:$0xff]  ;;  %v3635_v37 = vld [vmem:[%s8100_s13 + $0x500] sm:$0xff] }
  0x59   : > { %5269 = vmatpush3.bf16.msra.mxu1 %v5268_v38  ;;  %5240 = vmatprep.subr.bf16.mxu0 %v5239_v40  ;;  %v3636_v38 = vld [vmem:[%s8100_s13 + $0x508] sm:$0xff]  ;;  %v5289_v40 = vpack.c.bf16 %v3615_v36, %v3614_v35  ;;  %v3631_v36 = vld [vmem:[%s8100_s13 + $0x4e0] sm:$0xff] }
  0x5a   : > { %5270 = vmatprep.subr.bf16.mxu1 %v5906_v5  ;;  %1311 = vmatprep.mubr.f32.mxu0 %v3566_v46  ;;  %v5291_v42 = vpack.c.bf16 %v3636_v38, %v3635_v37  ;;  %v3637_v46 = vld [vmem:[%s8100_s13 + $0x510] sm:$0xff]  ;;  %v3632_v38 = vld [vmem:[%s8100_s13 + $0x4e8] sm:$0xff] }
  0x5b   : > { %4805 = vmatprep.mubr.msk.f32.mxu1 %vm5907_vm0, %v5908_v13  ;;  %v5317_v43 = vpack.c.bf16 %v3632_v38, %v3631_v36  ;;  %v3696_v36 = vld [vmem:[%s8100_s13 + $0x6d0] sm:$0xff] }
  0x5c   : > { %5242 = vmatpush3.bf16.msra.mxu0 %v5241_v47  ;;  %v3638_v47 = vld [vmem:[%s8100_s13 + $0x518] sm:$0xff] }
  0x5d   : > { %5272 = vmatpush3.bf16.msra.mxu1 %v5271_v48  ;;  %5244 = vmatprep.subr.bf16.mxu0 %v5243_v50  ;;  %v3565_v48 = vld [vmem:[%s6409_s24 + $0x480] sm:$0xff]  ;;  %v3567_v50 = vld [vmem:[%s6409_s24 + $0x490] sm:$0xff]  ;;  %v5295_v53 = vpack.c.bf16 %v3638_v47, %v3637_v46  ;;  %v3634_v47 = vld [vmem:[%s8100_s13 + $0x4f8] sm:$0xff]  ;;  %s7224_s24 = scalar_lea.vmem %s8094_s7, %s6117_s17 }
  0x5e   : > { %5273 = vmatprep.subr.bf16.mxu1 %v5906_v5  ;;  %v5321_v52 = vpack.c.bf16 %v3634_v47, %v3633_v45  ;;  %v3698_v45 = vld [vmem:[%s8100_s13 + $0x6e0] sm:$0xff] }
  0x60   : > { %5246 = vmatpush3.bf16.msra.mxu0 %v5245_v56  ;;  %v3654_v56 = vld [vmem:[%s8100_s13 + $0x598] sm:$0xff] }
  0x61   : > { %5275 = vmatpush3.bf16.msra.mxu1 %v5274_v57  ;;  %5248 = vmatprep.subr.bf16.mxu0 %v5247_v59  ;;  %v3639_v57 = vld [vmem:[%s8100_s13 + $0x520] sm:$0xff]  ;;  %v3617_v59 = vld [vmem:[%s6572_s23 + $0x608] sm:$0xff]  ;;  %v5327_v61 = vpack.c.bf16 %v3654_v56, %v3653_v55 }
  0x62   : > { %5276 = vmatprep.subr.bf16.mxu1 %v5906_v5  ;;  %v5299_v63 = vpack.c.bf16 %v3640_v58, %v3639_v57  ;;  %v3671_v56 = vld [vmem:[%s8100_s13 + $0x608] sm:$0xff]  ;;  %v3702_v57 = vld [vmem:[%s8100_s13 + $0x700] sm:$0xff] }
  0x63   : > { %v3703_v58 = vld [vmem:[%s8100_s13 + $0x708] sm:$0xff]  ;;  %v5349_v62 = vpack.c.bf16 %v3671_v56, %v3670_v54  ;;  %v3700_v54 = vld [vmem:[%s8100_s13 + $0x6f0] sm:$0xff] }
  0x64   : > { %5250 = vmatpush3.bf16.msra.mxu0 %v5249_v1  ;;  %v3655_v1 = vld [vmem:[%s8100_s13 + $0x5a0] sm:$0xff]  ;;  %v5380_v0 = vpack.c.bf16 %v3703_v58, %v3702_v57  ;;  %v3684_v58 = vld [vmem:[%s8100_s13 + $0x670] sm:$0xff] }
  0x65   : > { %5278 = vmatpush3.bf16.msra.mxu1 %v5277_v2  ;;  %5252 = vmatprep.subr.bf16.mxu0 %v5251_v4  ;;  %v3656_v2 = vld [vmem:[%s8100_s13 + $0x5a8] sm:$0xff]  ;;  %v3642_v4 = vld [vmem:[%s8100_s13 + $0x538] sm:$0xff] }
  0x66   : > { %5279 = vmatprep.subr.bf16.mxu1 %v5906_v5  ;;  %v5330_v7 = vpack.c.bf16 %v3656_v2, %v3655_v1  ;;  %v5303_v9 = vpack.c.bf16 %v3642_v4, %v3641_v3  ;;  %v3672_v1 = vld [vmem:[%s8100_s13 + $0x610] sm:$0xff]  ;;  %v3673_v3 = vld [vmem:[%s8100_s13 + $0x618] sm:$0xff] }
  0x67   : > { %v3704_v4 = vld [vmem:[%s8100_s13 + $0x710] sm:$0xff]  ;;  %v5353_v10 = vpack.c.bf16 %v3673_v3, %v3672_v1  ;;  %v3721_v3 = vld [vmem:[%s8100_s13 + $0x780] sm:$0xff] }
  0x68   : > { %5254 = vmatpush3.bf16.msra.mxu0 %v5253_v11  ;;  %v3657_v11 = vld [vmem:[%s8100_s13 + $0x5b0] sm:$0xff] }
  0x69   : > { %5281 = vmatpush3.bf16.msra.mxu1 %v5280_v12  ;;  %5256 = vmatprep.subr.bf16.mxu0 %v5255_v15  ;;  %v3658_v12 = vld [vmem:[%s8100_s13 + $0x5b8] sm:$0xff]  ;;  %v3644_v15 = vld [vmem:[%s8100_s13 + $0x548] sm:$0xff] }
  0x6a   : > { %5282 = vmatprep.subr.bf16.mxu1 %v5906_v5  ;;  %v5333_v17 = vpack.c.bf16 %v3658_v12, %v3657_v11  ;;  %v5307_v19 = vpack.c.bf16 %v3644_v15, %v3643_v14  ;;  %v3674_v12 = vld [vmem:[%s8100_s13 + $0x620] sm:$0xff]  ;;  %v3675_v15 = vld [vmem:[%s8100_s13 + $0x628] sm:$0xff] }
  0x6b   : > { %v5357_v20 = vpack.c.bf16 %v3675_v15, %v3674_v12 }
  0x6c   : > { %5258 = vmatpush3.bf16.msra.mxu0 %v5257_v21  ;;  %v3659_v21 = vld [vmem:[%s8100_s13 + $0x5c0] sm:$0xff] }
  0x6d   : > { %5284 = vmatpush3.bf16.msra.mxu1 %v5283_v22  ;;  %5260 = vmatprep.subr.bf16.mxu0 %v5259_v24  ;;  %v3660_v22 = vld [vmem:[%s8100_s13 + $0x5c8] sm:$0xff]  ;;  %v3646_v24 = vld [vmem:[%s8100_s13 + $0x558] sm:$0xff] }
  0x6e   : > { %5285 = vmatprep.subr.bf16.mxu1 %v5906_v5  ;;  %v5336_v26 = vpack.c.bf16 %v3660_v22, %v3659_v21  ;;  %v5311_v28 = vpack.c.bf16 %v3646_v24, %v3645_v23  ;;  %v3676_v22 = vld [vmem:[%s8100_s13 + $0x630] sm:$0xff]  ;;  %v3677_v24 = vld [vmem:[%s8100_s13 + $0x638] sm:$0xff] }
  0x6f   : > { %v5361_v29 = vpack.c.bf16 %v3677_v24, %v3676_v22  ;;  %v3742_v22 = vld [vmem:[%s8100_s13 + $0x828] sm:$0xff] }
  0x70   : > { %5262 = vmatpush3.bf16.msra.mxu0 %v5261_v30  ;;  %v3661_v30 = vld [vmem:[%s8100_s13 + $0x5d0] sm:$0xff] }
  0x71   : > { %5287 = vmatpush3.bf16.msra.mxu1 %v5286_v31  ;;  %5264 = vmatprep.subr.bf16.mxu0 %v5263_v33  ;;  %v3662_v31 = vld [vmem:[%s8100_s13 + $0x5d8] sm:$0xff]  ;;  %v3648_v33 = vld [vmem:[%s8100_s13 + $0x568] sm:$0xff] }
  0x72   : > { %5288 = vmatprep.subr.bf16.mxu1 %v5906_v5  ;;  %v5339_v35 = vpack.c.bf16 %v3662_v31, %v3661_v30  ;;  %v5315_v37 = vpack.c.bf16 %v3648_v33, %v3647_v32  ;;  %v3678_v31 = vld [vmem:[%s8100_s13 + $0x640] sm:$0xff]  ;;  %v3679_v33 = vld [vmem:[%s8100_s13 + $0x648] sm:$0xff] }
  0x73   : > { %v5365_v38 = vpack.c.bf16 %v3679_v33, %v3678_v31  ;;  %v3743_v31 = vld [vmem:[%s8100_s13 + $0x830] sm:$0xff] }
  0x74   : > { %5266 = vmatpush3.bf16.msra.mxu0 %v5265_v39  ;;  %v3663_v39 = vld [vmem:[%s8100_s13 + $0x5e0] sm:$0xff] }
  0x75   : > { %5290 = vmatpush3.bf16.msra.mxu1 %v5289_v40  ;;  %5292 = vmatprep.subr.bf16.mxu0 %v5291_v42  ;;  %v3664_v40 = vld [vmem:[%s8100_s13 + $0x5e8] sm:$0xff]  ;;  %v3650_v42 = vld [vmem:[%s8100_s13 + $0x578] sm:$0xff] }
  0x76   : > { %5323 = vmatprep.subr.bf16.mxu1 %v5906_v5  ;;  %v5342_v44 = vpack.c.bf16 %v3664_v40, %v3663_v39  ;;  %v5319_v46 = vpack.c.bf16 %v3650_v42, %v3649_v41  ;;  %v3680_v40 = vld [vmem:[%s8100_s13 + $0x650] sm:$0xff]  ;;  %v3681_v42 = vld [vmem:[%s8100_s13 + $0x658] sm:$0xff] }
  0x77   : > { %1312 = vmatmul.mubr.f32.vlgmr.msra.gmra.mrb[4].mxu0 %v3565_v48  ;;  %v3665_v48 = vld [vmem:[%s8100_s13 + $0x5f0] sm:$0xff]  ;;  %v5369_v47 = vpack.c.bf16 %v3681_v42, %v3680_v40  ;;  %v3745_v40 = vld [vmem:[%s8100_s13 + $0x840] sm:$0xff] }
  0x78   : > { %4806 = vmatmul.mubr.f32.vlgmr.msra.gmra.mrb[4].mxu1 %v3567_v50  ;;  %5294 = vmatpush3.bf16.msra.mxu0 %v5293_v49  ;;  %v3666_v49 = vld [vmem:[%s8100_s13 + $0x5f8] sm:$0xff]  ;;  %v3686_v50 = vld [vmem:[%s8100_s13 + $0x680] sm:$0xff] }
  0x79   : > { %5325 = vmatpush3.bf16.msra.mxu1 %v5324_v51  ;;  %5296 = vmatprep.subr.bf16.mxu0 %v5295_v53  ;;  %v3687_v51 = vld [vmem:[%s8100_s13 + $0x688] sm:$0xff]  ;;  %v5345_v53 = vpack.c.bf16 %v3666_v49, %v3665_v48  ;;  %v3682_v49 = vld [vmem:[%s8100_s13 + $0x660] sm:$0xff] }
  0x7a   : > { %5326 = vmatprep.subr.bf16.mxu1 %v5906_v5  ;;  %1506 = vmatprep.mubr.f32.mxu0 %v3617_v59  ;;  %v5347_v55 = vpack.c.bf16 %v3687_v51, %v3686_v50  ;;  %v3688_v59 = vld [vmem:[%s8100_s13 + $0x690] sm:$0xff]  ;;  %v3683_v51 = vld [vmem:[%s8100_s13 + $0x668] sm:$0xff] }
  0x7b   : > { %4840 = vmatprep.mubr.msk.f32.mxu1 %vm5907_vm0, %v5908_v13  ;;  %v5373_v56 = vpack.c.bf16 %v3683_v51, %v3682_v49  ;;  %v3747_v49 = vld [vmem:[%s8100_s13 + $0x850] sm:$0xff] }
  0x7c   : > { %5298 = vmatpush3.bf16.msra.mxu0 %v5297_v60  ;;  %v3689_v60 = vld [vmem:[%s8100_s13 + $0x698] sm:$0xff] }
  0x7d   : > { %5328 = vmatpush3.bf16.msra.mxu1 %v5327_v61  ;;  %5300 = vmatprep.subr.bf16.mxu0 %v5299_v63  ;;  %v3616_v61 = vld [vmem:[%s6572_s23 + $0x600] sm:$0xff]  ;;  %v3618_v63 = vld [vmem:[%s6572_s23 + $0x610] sm:$0xff]  ;;  %v5351_v2 = vpack.c.bf16 %v3689_v60, %v3688_v59  ;;  %v3685_v60 = vld [vmem:[%s8100_s13 + $0x678] sm:$0xff]  ;;  %s7389_s23 = scalar_lea.vmem %s8095_s8, %s6117_s17 }
  0x7e   : > { %5329 = vmatprep.subr.bf16.mxu1 %v5906_v5  ;;  %v5377_v1 = vpack.c.bf16 %v3685_v60, %v3684_v58  ;;  %v3749_v58 = vld [vmem:[%s8100_s13 + $0x860] sm:$0xff] }
  0x80   : > { %5302 = vmatpush3.bf16.msra.mxu0 %v5301_v6  ;;  %v3705_v6 = vld [vmem:[%s8100_s13 + $0x718] sm:$0xff] }
  0x81   : > { %5331 = vmatpush3.bf16.msra.mxu1 %v5330_v7  ;;  %5304 = vmatprep.subr.bf16.mxu0 %v5303_v9  ;;  %v3690_v7 = vld [vmem:[%s8100_s13 + $0x6a0] sm:$0xff]  ;;  %v3668_v9 = vld [vmem:[%s6735_s29 + $0x788] sm:$0xff]  ;;  %v5383_v11 = vpack.c.bf16 %v3705_v6, %v3704_v4 }
  0x82   : > { %5332 = vmatprep.subr.bf16.mxu1 %v5906_v5  ;;  %v5355_v14 = vpack.c.bf16 %v3691_v8, %v3690_v7  ;;  %v3722_v6 = vld [vmem:[%s8100_s13 + $0x788] sm:$0xff]  ;;  %v3753_v7 = vld [vmem:[%s8100_s13 + $0x880] sm:$0xff] }
  0x83   : > { %v3754_v8 = vld [vmem:[%s8100_s13 + $0x888] sm:$0xff]  ;;  %v5405_v12 = vpack.c.bf16 %v3722_v6, %v3721_v3  ;;  %v3751_v3 = vld [vmem:[%s8100_s13 + $0x870] sm:$0xff] }
  0x84   : > { %5306 = vmatpush3.bf16.msra.mxu0 %v5305_v16  ;;  %v3706_v16 = vld [vmem:[%s8100_s13 + $0x720] sm:$0xff]  ;;  %v5436_v15 = vpack.c.bf16 %v3754_v8, %v3753_v7  ;;  %v3735_v8 = vld [vmem:[%s8100_s13 + $0x7f0] sm:$0xff] }
  0x85   : > { %5334 = vmatpush3.bf16.msra.mxu1 %v5333_v17  ;;  %5308 = vmatprep.subr.bf16.mxu0 %v5307_v19  ;;  %v3707_v17 = vld [vmem:[%s8100_s13 + $0x728] sm:$0xff]  ;;  %v3693_v19 = vld [vmem:[%s8100_s13 + $0x6b8] sm:$0xff] }
  0x86   : > { %5335 = vmatprep.subr.bf16.mxu1 %v5906_v5  ;;  %v5386_v21 = vpack.c.bf16 %v3707_v17, %v3706_v16  ;;  %v5359_v23 = vpack.c.bf16 %v3693_v19, %v3692_v18  ;;  %v3723_v16 = vld [vmem:[%s8100_s13 + $0x790] sm:$0xff]  ;;  %v3724_v18 = vld [vmem:[%s8100_s13 + $0x798] sm:$0xff] }
  0x87   : > { %v3755_v19 = vld [vmem:[%s8100_s13 + $0x890] sm:$0xff]  ;;  %v5409_v24 = vpack.c.bf16 %v3724_v18, %v3723_v16  ;;  %v3772_v18 = vld [vmem:[%s8100_s13 + $0x900] sm:$0xff] }
  0x88   : > { %5310 = vmatpush3.bf16.msra.mxu0 %v5309_v25  ;;  %v3708_v25 = vld [vmem:[%s8100_s13 + $0x730] sm:$0xff] }
  0x89   : > { %5337 = vmatpush3.bf16.msra.mxu1 %v5336_v26  ;;  %5312 = vmatprep.subr.bf16.mxu0 %v5311_v28  ;;  %v3709_v26 = vld [vmem:[%s8100_s13 + $0x738] sm:$0xff]  ;;  %v3695_v28 = vld [vmem:[%s8100_s13 + $0x6c8] sm:$0xff] }
  0x8a   : > { %5338 = vmatprep.subr.bf16.mxu1 %v5906_v5  ;;  %v5389_v30 = vpack.c.bf16 %v3709_v26, %v3708_v25  ;;  %v5363_v32 = vpack.c.bf16 %v3695_v28, %v3694_v27  ;;  %v3725_v26 = vld [vmem:[%s8100_s13 + $0x7a0] sm:$0xff]  ;;  %v3726_v28 = vld [vmem:[%s8100_s13 + $0x7a8] sm:$0xff] }
  0x8b   : > { %v5413_v33 = vpack.c.bf16 %v3726_v28, %v3725_v26 }
  0x8c   : > { %5314 = vmatpush3.bf16.msra.mxu0 %v5313_v34  ;;  %v3710_v34 = vld [vmem:[%s8100_s13 + $0x740] sm:$0xff] }
  0x8d   : > { %5340 = vmatpush3.bf16.msra.mxu1 %v5339_v35  ;;  %5316 = vmatprep.subr.bf16.mxu0 %v5315_v37  ;;  %v3711_v35 = vld [vmem:[%s8100_s13 + $0x748] sm:$0xff]  ;;  %v3697_v37 = vld [vmem:[%s8100_s13 + $0x6d8] sm:$0xff] }
  0x8e   : > { %5341 = vmatprep.subr.bf16.mxu1 %v5906_v5  ;;  %v5392_v39 = vpack.c.bf16 %v3711_v35, %v3710_v34  ;;  %v5367_v41 = vpack.c.bf16 %v3697_v37, %v3696_v36  ;;  %v3727_v35 = vld [vmem:[%s8100_s13 + $0x7b0] sm:$0xff]  ;;  %v3728_v37 = vld [vmem:[%s8100_s13 + $0x7b8] sm:$0xff] }
  0x8f   : > { %v5417_v42 = vpack.c.bf16 %v3728_v37, %v3727_v35  ;;  %v3793_v35 = vld [vmem:[%s8100_s13 + $0x9a8] sm:$0xff] }
  0x90   : > { %5318 = vmatpush3.bf16.msra.mxu0 %v5317_v43  ;;  %v3712_v43 = vld [vmem:[%s8100_s13 + $0x750] sm:$0xff] }
  0x91   : > { %5343 = vmatpush3.bf16.msra.mxu1 %v5342_v44  ;;  %5320 = vmatprep.subr.bf16.mxu0 %v5319_v46  ;;  %v3713_v44 = vld [vmem:[%s8100_s13 + $0x758] sm:$0xff]  ;;  %v3699_v46 = vld [vmem:[%s8100_s13 + $0x6e8] sm:$0xff] }
  0x92   : > { %5344 = vmatprep.subr.bf16.mxu1 %v5906_v5  ;;  %v5395_v48 = vpack.c.bf16 %v3713_v44, %v3712_v43  ;;  %v5371_v50 = vpack.c.bf16 %v3699_v46, %v3698_v45  ;;  %v3729_v44 = vld [vmem:[%s8100_s13 + $0x7c0] sm:$0xff]  ;;  %v3730_v46 = vld [vmem:[%s8100_s13 + $0x7c8] sm:$0xff] }
  0x93   : > { %v5421_v51 = vpack.c.bf16 %v3730_v46, %v3729_v44  ;;  %v3794_v44 = vld [vmem:[%s8100_s13 + $0x9b0] sm:$0xff] }
  0x94   : > { %5322 = vmatpush3.bf16.msra.mxu0 %v5321_v52  ;;  %v3714_v52 = vld [vmem:[%s8100_s13 + $0x760] sm:$0xff] }
  0x95   : > { %5346 = vmatpush3.bf16.msra.mxu1 %v5345_v53  ;;  %5348 = vmatprep.subr.bf16.mxu0 %v5347_v55  ;;  %v3715_v53 = vld [vmem:[%s8100_s13 + $0x768] sm:$0xff]  ;;  %v3701_v55 = vld [vmem:[%s8100_s13 + $0x6f8] sm:$0xff] }
  0x96   : > { %5379 = vmatprep.subr.bf16.mxu1 %v5906_v5  ;;  %v5398_v57 = vpack.c.bf16 %v3715_v53, %v3714_v52  ;;  %v5375_v59 = vpack.c.bf16 %v3701_v55, %v3700_v54  ;;  %v3731_v53 = vld [vmem:[%s8100_s13 + $0x7d0] sm:$0xff]  ;;  %v3732_v55 = vld [vmem:[%s8100_s13 + $0x7d8] sm:$0xff] }
  0x97   : > { %1507 = vmatmul.mubr.f32.vlgmr.msra.gmra.mrb[6].mxu0 %v3616_v61  ;;  %v3716_v61 = vld [vmem:[%s8100_s13 + $0x770] sm:$0xff]  ;;  %v5425_v60 = vpack.c.bf16 %v3732_v55, %v3731_v53  ;;  %v3796_v53 = vld [vmem:[%s8100_s13 + $0x9c0] sm:$0xff] }
  0x98   : > { %4841 = vmatmul.mubr.f32.vlgmr.msra.gmra.mrb[6].mxu1 %v3618_v63  ;;  %5350 = vmatpush3.bf16.msra.mxu0 %v5349_v62  ;;  %v3717_v62 = vld [vmem:[%s8100_s13 + $0x778] sm:$0xff]  ;;  %v3737_v63 = vld [vmem:[%s8100_s13 + $0x800] sm:$0xff] }
  0x99   : > { %5381 = vmatpush3.bf16.msra.mxu1 %v5380_v0  ;;  %5352 = vmatprep.subr.bf16.mxu0 %v5351_v2  ;;  %v3738_v0 = vld [vmem:[%s8100_s13 + $0x808] sm:$0xff]  ;;  %v5401_v2 = vpack.c.bf16 %v3717_v62, %v3716_v61  ;;  %v3733_v62 = vld [vmem:[%s8100_s13 + $0x7e0] sm:$0xff] }
  0x9a   : > { %5382 = vmatprep.subr.bf16.mxu1 %v5906_v5  ;;  %1701 = vmatprep.mubr.f32.mxu0 %v3668_v9  ;;  %v5403_v4 = vpack.c.bf16 %v3738_v0, %v3737_v63  ;;  %v3739_v9 = vld [vmem:[%s8100_s13 + $0x810] sm:$0xff]  ;;  %v3734_v0 = vld [vmem:[%s8100_s13 + $0x7e8] sm:$0xff] }
  0x9b   : > { %4875 = vmatprep.mubr.msk.f32.mxu1 %vm5907_vm0, %v5908_v13  ;;  %v5429_v6 = vpack.c.bf16 %v3734_v0, %v3733_v62  ;;  %v3798_v62 = vld [vmem:[%s8100_s13 + $0x9d0] sm:$0xff] }
  0x9c   : > { %5354 = vmatpush3.bf16.msra.mxu0 %v5353_v10  ;;  %v3740_v10 = vld [vmem:[%s8100_s13 + $0x818] sm:$0xff] }
  0x9d   : > { %5384 = vmatpush3.bf16.msra.mxu1 %v5383_v11  ;;  %5356 = vmatprep.subr.bf16.mxu0 %v5355_v14  ;;  %v3667_v11 = vld [vmem:[%s6735_s29 + $0x780] sm:$0xff]  ;;  %v3669_v14 = vld [vmem:[%s6735_s29 + $0x790] sm:$0xff]  ;;  %v5407_v17 = vpack.c.bf16 %v3740_v10, %v3739_v9  ;;  %v3736_v10 = vld [vmem:[%s8100_s13 + $0x7f8] sm:$0xff]  ;;  %s7555_s29 = scalar_lea.vmem %s8096_s9, %s6117_s17 }
  0x9e   : > { %5385 = vmatprep.subr.bf16.mxu1 %v5906_v5  ;;  %v5433_v16 = vpack.c.bf16 %v3736_v10, %v3735_v8  ;;  %v3800_v8 = vld [vmem:[%s8100_s13 + $0x9e0] sm:$0xff] }
  0xa0   : > { %5358 = vmatpush3.bf16.msra.mxu0 %v5357_v20  ;;  %v3756_v20 = vld [vmem:[%s8100_s13 + $0x898] sm:$0xff] }
  0xa1   : > { %5387 = vmatpush3.bf16.msra.mxu1 %v5386_v21  ;;  %5360 = vmatprep.subr.bf16.mxu0 %v5359_v23  ;;  %v3741_v21 = vld [vmem:[%s8100_s13 + $0x820] sm:$0xff]  ;;  %v3719_v23 = vld [vmem:[%s6898_s27 + $0x908] sm:$0xff]  ;;  %v5439_v25 = vpack.c.bf16 %v3756_v20, %v3755_v19 }
  0xa2   : > { %5388 = vmatprep.subr.bf16.mxu1 %v5906_v5  ;;  %v5411_v27 = vpack.c.bf16 %v3742_v22, %v3741_v21  ;;  %v3773_v20 = vld [vmem:[%s8100_s13 + $0x908] sm:$0xff]  ;;  %v3804_v21 = vld [vmem:[%s8100_s13 + $0xa00] sm:$0xff] }
  0xa3   : > { %v3805_v22 = vld [vmem:[%s8100_s13 + $0xa08] sm:$0xff]  ;;  %v5461_v26 = vpack.c.bf16 %v3773_v20, %v3772_v18  ;;  %v3802_v18 = vld [vmem:[%s8100_s13 + $0x9f0] sm:$0xff] }
  0xa4   : > { %5362 = vmatpush3.bf16.msra.mxu0 %v5361_v29  ;;  %v3757_v29 = vld [vmem:[%s8100_s13 + $0x8a0] sm:$0xff]  ;;  %v5492_v28 = vpack.c.bf16 %v3805_v22, %v3804_v21  ;;  %v3786_v22 = vld [vmem:[%s8100_s13 + $0x970] sm:$0xff] }
  0xa5   : > { %5390 = vmatpush3.bf16.msra.mxu1 %v5389_v30  ;;  %5364 = vmatprep.subr.bf16.mxu0 %v5363_v32  ;;  %v3758_v30 = vld [vmem:[%s8100_s13 + $0x8a8] sm:$0xff]  ;;  %v3744_v32 = vld [vmem:[%s8100_s13 + $0x838] sm:$0xff] }
  0xa6   : > { %5391 = vmatprep.subr.bf16.mxu1 %v5906_v5  ;;  %v5442_v34 = vpack.c.bf16 %v3758_v30, %v3757_v29  ;;  %v5415_v36 = vpack.c.bf16 %v3744_v32, %v3743_v31  ;;  %v3774_v29 = vld [vmem:[%s8100_s13 + $0x910] sm:$0xff]  ;;  %v3775_v31 = vld [vmem:[%s8100_s13 + $0x918] sm:$0xff] }
  0xa7   : > { %v3806_v32 = vld [vmem:[%s8100_s13 + $0xa10] sm:$0xff]  ;;  %v5465_v37 = vpack.c.bf16 %v3775_v31, %v3774_v29  ;;  %v3823_v31 = vld [vmem:[%s8100_s13 + $0xa80] sm:$0xff] }
  0xa8   : > { %5366 = vmatpush3.bf16.msra.mxu0 %v5365_v38  ;;  %v3759_v38 = vld [vmem:[%s8100_s13 + $0x8b0] sm:$0xff] }
  0xa9   : > { %5393 = vmatpush3.bf16.msra.mxu1 %v5392_v39  ;;  %5368 = vmatprep.subr.bf16.mxu0 %v5367_v41  ;;  %v3760_v39 = vld [vmem:[%s8100_s13 + $0x8b8] sm:$0xff]  ;;  %v3746_v41 = vld [vmem:[%s8100_s13 + $0x848] sm:$0xff] }
  0xaa   : > { %5394 = vmatprep.subr.bf16.mxu1 %v5906_v5  ;;  %v5445_v43 = vpack.c.bf16 %v3760_v39, %v3759_v38  ;;  %v5419_v45 = vpack.c.bf16 %v3746_v41, %v3745_v40  ;;  %v3776_v39 = vld [vmem:[%s8100_s13 + $0x920] sm:$0xff]  ;;  %v3777_v41 = vld [vmem:[%s8100_s13 + $0x928] sm:$0xff] }
  0xab   : > { %v5469_v46 = vpack.c.bf16 %v3777_v41, %v3776_v39 }
  0xac   : > { %5370 = vmatpush3.bf16.msra.mxu0 %v5369_v47  ;;  %v3761_v47 = vld [vmem:[%s8100_s13 + $0x8c0] sm:$0xff] }
  0xad   : > { %5396 = vmatpush3.bf16.msra.mxu1 %v5395_v48  ;;  %5372 = vmatprep.subr.bf16.mxu0 %v5371_v50  ;;  %v3762_v48 = vld [vmem:[%s8100_s13 + $0x8c8] sm:$0xff]  ;;  %v3748_v50 = vld [vmem:[%s8100_s13 + $0x858] sm:$0xff] }
  0xae   : > { %5397 = vmatprep.subr.bf16.mxu1 %v5906_v5  ;;  %v5448_v52 = vpack.c.bf16 %v3762_v48, %v3761_v47  ;;  %v5423_v54 = vpack.c.bf16 %v3748_v50, %v3747_v49  ;;  %v3778_v48 = vld [vmem:[%s8100_s13 + $0x930] sm:$0xff]  ;;  %v3779_v50 = vld [vmem:[%s8100_s13 + $0x938] sm:$0xff] }
  0xaf   : > { %v5473_v55 = vpack.c.bf16 %v3779_v50, %v3778_v48  ;;  %v3844_v48 = vld [vmem:[%s8100_s13 + $0xb28] sm:$0xff] }
  0xb0   : > { %5374 = vmatpush3.bf16.msra.mxu0 %v5373_v56  ;;  %v3763_v56 = vld [vmem:[%s8100_s13 + $0x8d0] sm:$0xff] }
  0xb1   : > { %5399 = vmatpush3.bf16.msra.mxu1 %v5398_v57  ;;  %5376 = vmatprep.subr.bf16.mxu0 %v5375_v59  ;;  %v3764_v57 = vld [vmem:[%s8100_s13 + $0x8d8] sm:$0xff]  ;;  %v3750_v59 = vld [vmem:[%s8100_s13 + $0x868] sm:$0xff] }
  0xb2   : > { %5400 = vmatprep.subr.bf16.mxu1 %v5906_v5  ;;  %v5451_v61 = vpack.c.bf16 %v3764_v57, %v3763_v56  ;;  %v5427_v63 = vpack.c.bf16 %v3750_v59, %v3749_v58  ;;  %v3780_v57 = vld [vmem:[%s8100_s13 + $0x940] sm:$0xff]  ;;  %v3781_v59 = vld [vmem:[%s8100_s13 + $0x948] sm:$0xff] }
  0xb3   : > { %v5477_v0 = vpack.c.bf16 %v3781_v59, %v3780_v57  ;;  %v3845_v57 = vld [vmem:[%s8100_s13 + $0xb30] sm:$0xff] }
  0xb4   : > { %5378 = vmatpush3.bf16.msra.mxu0 %v5377_v1  ;;  %v3765_v1 = vld [vmem:[%s8100_s13 + $0x8e0] sm:$0xff] }
  0xb5   : > { %5402 = vmatpush3.bf16.msra.mxu1 %v5401_v2  ;;  %5404 = vmatprep.subr.bf16.mxu0 %v5403_v4  ;;  %v3766_v2 = vld [vmem:[%s8100_s13 + $0x8e8] sm:$0xff]  ;;  %v3752_v4 = vld [vmem:[%s8100_s13 + $0x878] sm:$0xff] }
  0xb6   : > { %5435 = vmatprep.subr.bf16.mxu1 %v5906_v5  ;;  %v5454_v7 = vpack.c.bf16 %v3766_v2, %v3765_v1  ;;  %v5431_v9 = vpack.c.bf16 %v3752_v4, %v3751_v3  ;;  %v3782_v2 = vld [vmem:[%s8100_s13 + $0x950] sm:$0xff]  ;;  %v3783_v4 = vld [vmem:[%s8100_s13 + $0x958] sm:$0xff] }
  0xb7   : > { %1702 = vmatmul.mubr.f32.vlgmr.msra.gmra.mrb[8].mxu0 %v3667_v11  ;;  %v3767_v11 = vld [vmem:[%s8100_s13 + $0x8f0] sm:$0xff]  ;;  %v5481_v10 = vpack.c.bf16 %v3783_v4, %v3782_v2  ;;  %v3847_v2 = vld [vmem:[%s8100_s13 + $0xb40] sm:$0xff] }
  0xb8   : > { %4876 = vmatmul.mubr.f32.vlgmr.msra.gmra.mrb[8].mxu1 %v3669_v14  ;;  %5406 = vmatpush3.bf16.msra.mxu0 %v5405_v12  ;;  %v3768_v12 = vld [vmem:[%s8100_s13 + $0x8f8] sm:$0xff]  ;;  %v3788_v14 = vld [vmem:[%s8100_s13 + $0x980] sm:$0xff] }
  0xb9   : > { %5437 = vmatpush3.bf16.msra.mxu1 %v5436_v15  ;;  %5408 = vmatprep.subr.bf16.mxu0 %v5407_v17  ;;  %v3789_v15 = vld [vmem:[%s8100_s13 + $0x988] sm:$0xff]  ;;  %v5457_v17 = vpack.c.bf16 %v3768_v12, %v3767_v11  ;;  %v3784_v12 = vld [vmem:[%s8100_s13 + $0x960] sm:$0xff] }
  0xba   : > { %5438 = vmatprep.subr.bf16.mxu1 %v5906_v5  ;;  %1896 = vmatprep.mubr.f32.mxu0 %v3719_v23  ;;  %v5459_v19 = vpack.c.bf16 %v3789_v15, %v3788_v14  ;;  %v3790_v23 = vld [vmem:[%s8100_s13 + $0x990] sm:$0xff]  ;;  %v3785_v15 = vld [vmem:[%s8100_s13 + $0x968] sm:$0xff] }
  0xbb   : > { %4910 = vmatprep.mubr.msk.f32.mxu1 %vm5907_vm0, %v5908_v13  ;;  %v5485_v20 = vpack.c.bf16 %v3785_v15, %v3784_v12  ;;  %v3849_v12 = vld [vmem:[%s8100_s13 + $0xb50] sm:$0xff] }
  0xbc   : > { %5410 = vmatpush3.bf16.msra.mxu0 %v5409_v24  ;;  %v3791_v24 = vld [vmem:[%s8100_s13 + $0x998] sm:$0xff] }
  0xbd   : > { %5440 = vmatpush3.bf16.msra.mxu1 %v5439_v25  ;;  %5412 = vmatprep.subr.bf16.mxu0 %v5411_v27  ;;  %v3718_v25 = vld [vmem:[%s6898_s27 + $0x900] sm:$0xff]  ;;  %v3720_v27 = vld [vmem:[%s6898_s27 + $0x910] sm:$0xff]  ;;  %v5463_v30 = vpack.c.bf16 %v3791_v24, %v3790_v23  ;;  %v3787_v24 = vld [vmem:[%s8100_s13 + $0x978] sm:$0xff]  ;;  %s5796_s27 = smul.u32 24, %s6095_s19 }
  0xbe   : > { %5441 = vmatprep.subr.bf16.mxu1 %v5906_v5  ;;  %v5489_v29 = vpack.c.bf16 %v3787_v24, %v3786_v22  ;;  %v3851_v22 = vld [vmem:[%s8100_s13 + $0xb60] sm:$0xff] }
  0xbf   : > { %s802_s28 = scalar_lea.vmem %s8099_s12, %s5796_s27 }
  0xc0   : > { %5414 = vmatpush3.bf16.msra.mxu0 %v5413_v33  ;;  %v3807_v33 = vld [vmem:[%s8100_s13 + $0xa18] sm:$0xff] }
  0xc1   : > { %5443 = vmatpush3.bf16.msra.mxu1 %v5442_v34  ;;  %5416 = vmatprep.subr.bf16.mxu0 %v5415_v36  ;;  %v3792_v34 = vld [vmem:[%s8100_s13 + $0x9a0] sm:$0xff]  ;;  %v3770_v36 = vld [vmem:[%s7061_s20 + $0xa88] sm:$0xff]  ;;  %v5495_v38 = vpack.c.bf16 %v3807_v33, %v3806_v32 }
  0xc2   : > { %5444 = vmatprep.subr.bf16.mxu1 %v5906_v5  ;;  %v5467_v40 = vpack.c.bf16 %v3793_v35, %v3792_v34  ;;  %v3824_v33 = vld [vmem:[%s8100_s13 + $0xa88] sm:$0xff]  ;;  %v3855_v34 = vld [vmem:[%s8100_s13 + $0xb80] sm:$0xff] }
  0xc3   : > { %v3856_v35 = vld [vmem:[%s8100_s13 + $0xb88] sm:$0xff]  ;;  %v5517_v39 = vpack.c.bf16 %v3824_v33, %v3823_v31  ;;  %v3853_v33 = vld [vmem:[%s8100_s13 + $0xb70] sm:$0xff] }
  0xc4   : > { %5418 = vmatpush3.bf16.msra.mxu0 %v5417_v42  ;;  %v3808_v42 = vld [vmem:[%s8100_s13 + $0xa20] sm:$0xff]  ;;  %v5548_v41 = vpack.c.bf16 %v3856_v35, %v3855_v34  ;;  %v3854_v34 = vld [vmem:[%s8100_s13 + $0xb78] sm:$0xff] }
  0xc5   : > { %5446 = vmatpush3.bf16.msra.mxu1 %v5445_v43  ;;  %5420 = vmatprep.subr.bf16.mxu0 %v5419_v45  ;;  %v3809_v43 = vld [vmem:[%s8100_s13 + $0xa28] sm:$0xff]  ;;  %v3795_v45 = vld [vmem:[%s8100_s13 + $0x9b8] sm:$0xff] }
  0xc6   : > { %5447 = vmatprep.subr.bf16.mxu1 %v5906_v5  ;;  %v5498_v47 = vpack.c.bf16 %v3809_v43, %v3808_v42  ;;  %v5471_v49 = vpack.c.bf16 %v3795_v45, %v3794_v44  ;;  %v3825_v42 = vld [vmem:[%s8100_s13 + $0xa90] sm:$0xff]  ;;  %v3826_v44 = vld [vmem:[%s8100_s13 + $0xa98] sm:$0xff] }
  0xc7   : > { %v3857_v45 = vld [vmem:[%s8100_s13 + $0xb90] sm:$0xff]  ;;  %v5521_v50 = vpack.c.bf16 %v3826_v44, %v3825_v42  ;;  %v3838_v42 = vld [vmem:[%s8100_s13 + $0xaf8] sm:$0xff] }
  0xc8   : > { %5422 = vmatpush3.bf16.msra.mxu0 %v5421_v51  ;;  %v3810_v51 = vld [vmem:[%s8100_s13 + $0xa30] sm:$0xff]  ;;  %v3870_v44 = vld [vmem:[%s8100_s13 + $0xbf8] sm:$0xff] }
  0xc9   : > { %5449 = vmatpush3.bf16.msra.mxu1 %v5448_v52  ;;  %5424 = vmatprep.subr.bf16.mxu0 %v5423_v54  ;;  %v3811_v52 = vld [vmem:[%s8100_s13 + $0xa38] sm:$0xff]  ;;  %v3797_v54 = vld [vmem:[%s8100_s13 + $0x9c8] sm:$0xff] }
  0xca   : > { %5450 = vmatprep.subr.bf16.mxu1 %v5906_v5  ;;  %v5501_v56 = vpack.c.bf16 %v3811_v52, %v3810_v51  ;;  %v5475_v58 = vpack.c.bf16 %v3797_v54, %v3796_v53  ;;  %v3827_v52 = vld [vmem:[%s8100_s13 + $0xaa0] sm:$0xff]  ;;  %v3828_v54 = vld [vmem:[%s8100_s13 + $0xaa8] sm:$0xff] }
  0xcb   : > { %v5525_v59 = vpack.c.bf16 %v3828_v54, %v3827_v52  ;;  %v3875_v52 = vld [vmem:[%s8100_s13 + $0xc08] sm:$0xff] }
  0xcc   : > { %5426 = vmatpush3.bf16.msra.mxu0 %v5425_v60  ;;  %v3812_v60 = vld [vmem:[%s8100_s13 + $0xa40] sm:$0xff]  ;;  %v3907_v54 = vld [vmem:[%s8100_s13 + $0xd08] sm:$0xff] }
  0xcd   : > { %5452 = vmatpush3.bf16.msra.mxu1 %v5451_v61  ;;  %5428 = vmatprep.subr.bf16.mxu0 %v5427_v63  ;;  %v3813_v61 = vld [vmem:[%s8100_s13 + $0xa48] sm:$0xff]  ;;  %v3799_v63 = vld [vmem:[%s8100_s13 + $0x9d8] sm:$0xff] }
  0xce   : > { %5453 = vmatprep.subr.bf16.mxu1 %v5906_v5  ;;  %v5504_v1 = vpack.c.bf16 %v3813_v61, %v3812_v60  ;;  %v5479_v3 = vpack.c.bf16 %v3799_v63, %v3798_v62  ;;  %v3829_v61 = vld [vmem:[%s8100_s13 + $0xab0] sm:$0xff]  ;;  %v3830_v63 = vld [vmem:[%s8100_s13 + $0xab8] sm:$0xff] }
  0xcf   : > { %v5529_v4 = vpack.c.bf16 %v3830_v63, %v3829_v61  ;;  %v3876_v61 = vld [vmem:[%s8100_s13 + $0xc10] sm:$0xff]  ;;  %v3877_v63 = vld [vmem:[%s8100_s13 + $0xc18] sm:$0xff] }
  0xd0   : > { %5430 = vmatpush3.bf16.msra.mxu0 %v5429_v6  ;;  %v3814_v6 = vld [vmem:[%s8100_s13 + $0xa50] sm:$0xff] }
  0xd1   : > { %5455 = vmatpush3.bf16.msra.mxu1 %v5454_v7  ;;  %5432 = vmatprep.subr.bf16.mxu0 %v5431_v9  ;;  %v3815_v7 = vld [vmem:[%s8100_s13 + $0xa58] sm:$0xff]  ;;  %v3801_v9 = vld [vmem:[%s8100_s13 + $0x9e8] sm:$0xff] }
  0xd2   : > { %5456 = vmatprep.subr.bf16.mxu1 %v5906_v5  ;;  %v5507_v11 = vpack.c.bf16 %v3815_v7, %v3814_v6  ;;  %v5483_v14 = vpack.c.bf16 %v3801_v9, %v3800_v8  ;;  %v3831_v7 = vld [vmem:[%s8100_s13 + $0xac0] sm:$0xff]  ;;  %v3832_v9 = vld [vmem:[%s8100_s13 + $0xac8] sm:$0xff] }
  0xd3   : > { %v5533_v15 = vpack.c.bf16 %v3832_v9, %v3831_v7 }
  0xd4   : > { %5434 = vmatpush3.bf16.msra.mxu0 %v5433_v16  ;;  %v3816_v16 = vld [vmem:[%s8100_s13 + $0xa60] sm:$0xff] }
  0xd5   : > { %5458 = vmatpush3.bf16.msra.mxu1 %v5457_v17  ;;  %5460 = vmatprep.subr.bf16.mxu0 %v5459_v19  ;;  %v3817_v17 = vld [vmem:[%s8100_s13 + $0xa68] sm:$0xff]  ;;  %v3803_v19 = vld [vmem:[%s8100_s13 + $0x9f8] sm:$0xff] }
  0xd6   : > { %5491 = vmatprep.subr.bf16.mxu1 %v5906_v5  ;;  %v5510_v21 = vpack.c.bf16 %v3817_v17, %v3816_v16  ;;  %v5487_v23 = vpack.c.bf16 %v3803_v19, %v3802_v18  ;;  %v3833_v17 = vld [vmem:[%s8100_s13 + $0xad0] sm:$0xff]  ;;  %v3834_v19 = vld [vmem:[%s8100_s13 + $0xad8] sm:$0xff] }
  0xd7   : > { %1897 = vmatmul.mubr.f32.vlgmr.msra.gmra.mrb[10].mxu0 %v3718_v25  ;;  %v3818_v25 = vld [vmem:[%s8100_s13 + $0xa70] sm:$0xff]  ;;  %v5537_v24 = vpack.c.bf16 %v3834_v19, %v3833_v17 }
  0xd8   : > { %4911 = vmatmul.mubr.f32.vlgmr.msra.gmra.mrb[10].mxu1 %v3720_v27  ;;  %5462 = vmatpush3.bf16.msra.mxu0 %v5461_v26  ;;  %v3819_v26 = vld [vmem:[%s8100_s13 + $0xa78] sm:$0xff]  ;;  %v3839_v27 = vld [vmem:[%s8100_s13 + $0xb00] sm:$0xff] }
  0xd9   : > { %5493 = vmatpush3.bf16.msra.mxu1 %v5492_v28  ;;  %5464 = vmatprep.subr.bf16.mxu0 %v5463_v30  ;;  %v3840_v28 = vld [vmem:[%s8100_s13 + $0xb08] sm:$0xff]  ;;  %v5513_v30 = vpack.c.bf16 %v3819_v26, %v3818_v25  ;;  %v3835_v26 = vld [vmem:[%s8100_s13 + $0xae0] sm:$0xff] }
  0xda   : > { %5494 = vmatprep.subr.bf16.mxu1 %v5906_v5  ;;  %2091 = vmatprep.mubr.f32.mxu0 %v3770_v36  ;;  %v5515_v32 = vpack.c.bf16 %v3840_v28, %v3839_v27  ;;  %v3841_v36 = vld [vmem:[%s8100_s13 + $0xb10] sm:$0xff]  ;;  %v3836_v28 = vld [vmem:[%s8100_s13 + $0xae8] sm:$0xff] }
  0xdb   : > { %4945 = vmatprep.mubr.msk.f32.mxu1 %vm5907_vm0, %v5908_v13 }
  0xdc   : > { %5466 = vmatpush3.bf16.msra.mxu0 %v5465_v37  ;;  %v3842_v37 = vld [vmem:[%s8100_s13 + $0xb18] sm:$0xff] }
  0xdd   : > { %5496 = vmatpush3.bf16.msra.mxu1 %v5495_v38  ;;  %5468 = vmatprep.subr.bf16.mxu0 %v5467_v40  ;;  %v3769_v38 = vld [vmem:[%s7061_s20 + $0xa80] sm:$0xff]  ;;  %v3771_v40 = vld [vmem:[%s7061_s20 + $0xa90] sm:$0xff]  ;;  %v5519_v43 = vpack.c.bf16 %v3842_v37, %v3841_v36 }
  0xde   : > { %5497 = vmatprep.subr.bf16.mxu1 %v5906_v5 }
  0xe0   : > { %5470 = vmatpush3.bf16.msra.mxu0 %v5469_v46  ;;  %v3858_v46 = vld [vmem:[%s8100_s13 + $0xb98] sm:$0xff] }
  0xe1   : > { %5499 = vmatpush3.bf16.msra.mxu1 %v5498_v47  ;;  %5472 = vmatprep.subr.bf16.mxu0 %v5471_v49  ;;  %v3843_v47 = vld [vmem:[%s8100_s13 + $0xb20] sm:$0xff]  ;;  %v3821_v49 = vld [vmem:[%s7224_s24 + $0xc08] sm:$0xff]  ;;  %v5551_v51 = vpack.c.bf16 %v3858_v46, %v3857_v45 }
  0xe2   : > { %5500 = vmatprep.subr.bf16.mxu1 %v5906_v5  ;;  %v5523_v53 = vpack.c.bf16 %v3844_v48, %v3843_v47  ;;  %v3890_v46 = vld [vmem:[%s8100_s13 + $0xc80] sm:$0xff]  ;;  %v3891_v47 = vld [vmem:[%s8100_s13 + $0xc88] sm:$0xff] }
  0xe4   : > { %5474 = vmatpush3.bf16.msra.mxu0 %v5473_v55  ;;  %v3859_v55 = vld [vmem:[%s8100_s13 + $0xba0] sm:$0xff] }
  0xe5   : > { %5502 = vmatpush3.bf16.msra.mxu1 %v5501_v56  ;;  %5476 = vmatprep.subr.bf16.mxu0 %v5475_v58  ;;  %v3860_v56 = vld [vmem:[%s8100_s13 + $0xba8] sm:$0xff]  ;;  %v3846_v58 = vld [vmem:[%s8100_s13 + $0xb38] sm:$0xff] }
  0xe6   : > { %5503 = vmatprep.subr.bf16.mxu1 %v5906_v5  ;;  %v5554_v60 = vpack.c.bf16 %v3860_v56, %v3859_v55  ;;  %v5527_v62 = vpack.c.bf16 %v3846_v58, %v3845_v57  ;;  %v3892_v55 = vld [vmem:[%s8100_s13 + $0xc90] sm:$0xff]  ;;  %v3893_v56 = vld [vmem:[%s8100_s13 + $0xc98] sm:$0xff]  ;;  %v3820_v57 = vld [vmem:[%s7224_s24 + $0xc00] sm:$0xff] }
  0xe8   : > { %5478 = vmatpush3.bf16.msra.mxu0 %v5477_v0  ;;  %v3861_v0 = vld [vmem:[%s8100_s13 + $0xbb0] sm:$0xff] }
  0xe9   : > { %5505 = vmatpush3.bf16.msra.mxu1 %v5504_v1  ;;  %5480 = vmatprep.subr.bf16.mxu0 %v5479_v3  ;;  %v3862_v1 = vld [vmem:[%s8100_s13 + $0xbb8] sm:$0xff]  ;;  %v3848_v3 = vld [vmem:[%s8100_s13 + $0xb48] sm:$0xff] }
  0xea   : > { %5506 = vmatprep.subr.bf16.mxu1 %v5906_v5  ;;  %v5557_v6 = vpack.c.bf16 %v3862_v1, %v3861_v0  ;;  %v5531_v8 = vpack.c.bf16 %v3848_v3, %v3847_v2  ;;  %v3908_v0 = vld [vmem:[%s8100_s13 + $0xd10] sm:$0xff]  ;;  %v3909_v1 = vld [vmem:[%s8100_s13 + $0xd18] sm:$0xff]  ;;  %v3894_v2 = vld [vmem:[%s8100_s13 + $0xca0] sm:$0xff] }
  0xeb   : > { %v3895_v3 = vld [vmem:[%s8100_s13 + $0xca8] sm:$0xff]  ;;  %v5607_v7 = vpack.c.bf16 %v3909_v1, %v3908_v0  ;;  %v3921_v0 = vld [vmem:[%s8100_s13 + $0xd78] sm:$0xff] }
  0xec   : > { %5482 = vmatpush3.bf16.msra.mxu0 %v5481_v10  ;;  %v3863_v10 = vld [vmem:[%s8100_s13 + $0xbc0] sm:$0xff]  ;;  %v5579_v9 = vpack.c.bf16 %v3895_v3, %v3894_v2  ;;  %v3942_v3 = vld [vmem:[%s8100_s13 + $0xe08] sm:$0xff] }
  0xed   : > { %5508 = vmatpush3.bf16.msra.mxu1 %v5507_v11  ;;  %5484 = vmatprep.subr.bf16.mxu0 %v5483_v14  ;;  %v3864_v11 = vld [vmem:[%s8100_s13 + $0xbc8] sm:$0xff]  ;;  %v3850_v14 = vld [vmem:[%s8100_s13 + $0xb58] sm:$0xff]  ;;  %v3941_v2 = vld [vmem:[%s8100_s13 + $0xe00] sm:$0xff] }
  0xee   : > { %5509 = vmatprep.subr.bf16.mxu1 %v5906_v5  ;;  %v5560_v16 = vpack.c.bf16 %v3864_v11, %v3863_v10  ;;  %v5535_v18 = vpack.c.bf16 %v3850_v14, %v3849_v12  ;;  %v3879_v10 = vld [vmem:[%s8100_s13 + $0xc28] sm:$0xff]  ;;  %v3910_v11 = vld [vmem:[%s8100_s13 + $0xd20] sm:$0xff]  ;;  %v3896_v14 = vld [vmem:[%s8100_s13 + $0xcb0] sm:$0xff] }
  0xef   : > { %v3911_v12 = vld [vmem:[%s8100_s13 + $0xd28] sm:$0xff] }
  0xf0   : > { %5486 = vmatpush3.bf16.msra.mxu0 %v5485_v20  ;;  %v3865_v20 = vld [vmem:[%s8100_s13 + $0xbd0] sm:$0xff]  ;;  %v5610_v17 = vpack.c.bf16 %v3911_v12, %v3910_v11  ;;  %v3958_v11 = vld [vmem:[%s8100_s13 + $0xe88] sm:$0xff] }
  0xf1   : > { %5511 = vmatpush3.bf16.msra.mxu1 %v5510_v21  ;;  %5488 = vmatprep.subr.bf16.mxu0 %v5487_v23  ;;  %v3866_v21 = vld [vmem:[%s8100_s13 + $0xbd8] sm:$0xff]  ;;  %v3852_v23 = vld [vmem:[%s8100_s13 + $0xb68] sm:$0xff]  ;;  %v3943_v12 = vld [vmem:[%s8100_s13 + $0xe10] sm:$0xff] }
  0xf2   : > { %5512 = vmatprep.subr.bf16.mxu1 %v5906_v5  ;;  %v5563_v25 = vpack.c.bf16 %v3866_v21, %v3865_v20  ;;  %v5539_v27 = vpack.c.bf16 %v3852_v23, %v3851_v22  ;;  %v3881_v20 = vld [vmem:[%s8100_s13 + $0xc38] sm:$0xff]  ;;  %v3912_v21 = vld [vmem:[%s8100_s13 + $0xd30] sm:$0xff]  ;;  %v3898_v23 = vld [vmem:[%s8100_s13 + $0xcc0] sm:$0xff] }
  0xf3   : > { %v3913_v22 = vld [vmem:[%s8100_s13 + $0xd38] sm:$0xff] }
  0xf4   : > { %5490 = vmatpush3.bf16.msra.mxu0 %v5489_v29  ;;  %v3867_v29 = vld [vmem:[%s8100_s13 + $0xbe0] sm:$0xff] }
  0xf5   : > { %5514 = vmatpush3.bf16.msra.mxu1 %v5513_v30  ;;  %5516 = vmatprep.subr.bf16.mxu0 %v5515_v32  ;;  %v3868_v30 = vld [vmem:[%s8100_s13 + $0xbe8] sm:$0xff] }
  0xf6   : > { %5547 = vmatprep.subr.bf16.mxu1 %v5906_v5 }
  0xf7   : > { %2092 = vmatmul.mubr.f32.vlgmr.msra.gmra.mrb[12].mxu0 %v3769_v38  ;;  %v5541_v38 = vpack.c.bf16 %v3836_v28, %v3835_v26  ;;  %v5613_v26 = vpack.c.bf16 %v3913_v22, %v3912_v21  ;;  %v3928_v21 = vld [vmem:[%s8100_s13 + $0xd98] sm:$0xff]  ;;  %v3959_v22 = vld [vmem:[%s8100_s13 + $0xe90] sm:$0xff] }
  0xf8   : > { %4946 = vmatmul.mubr.f32.vlgmr.msra.gmra.mrb[12].mxu1 %v3771_v40  ;;  %5518 = vmatpush3.bf16.msra.mxu0 %v5517_v39  ;;  %v5566_v39 = vpack.c.bf16 %v3868_v30, %v3867_v29  ;;  %v3837_v40 = vld [vmem:[%s8100_s13 + $0xaf0] sm:$0xff]  ;;  %v3883_v29 = vld [vmem:[%s8100_s13 + $0xc48] sm:$0xff]  ;;  %v3914_v30 = vld [vmem:[%s8100_s13 + $0xd40] sm:$0xff] }
  0xf9   : > { %5549 = vmatpush3.bf16.msra.mxu1 %v5548_v41  ;;  %5520 = vmatprep.subr.bf16.mxu0 %v5519_v43  ;;  %v5543_v41 = vpack.c.bf16 %v3854_v34, %v3853_v33  ;;  %v3869_v43 = vld [vmem:[%s8100_s13 + $0xbf0] sm:$0xff]  ;;  %v5545_v48 = vpack.c.bf16 %v3838_v42, %v3837_v40  ;;  %v3901_v33 = vld [vmem:[%s8100_s13 + $0xcd8] sm:$0xff]  ;;  %v3903_v42 = vld [vmem:[%s8100_s13 + $0xce8] sm:$0xff] }
  0xfa   : > { %5550 = vmatprep.subr.bf16.mxu1 %v5906_v5  ;;  %2286 = vmatprep.mubr.f32.mxu0 %v3821_v49  ;;  %v5569_v49 = vpack.c.bf16 %v3870_v44, %v3869_v43  ;;  %v3917_v40 = vld [vmem:[%s8100_s13 + $0xd58] sm:$0xff] }
  0xfb   : > { %4980 = vmatprep.mubr.msk.f32.mxu1 %vm5907_vm0, %v5908_v13 }
  0xfc   : > { %5522 = vmatpush3.bf16.msra.mxu0 %v5521_v50  ;;  %v3874_v50 = vld [vmem:[%s8100_s13 + $0xc00] sm:$0xff] }
  0xfd   : > { %5552 = vmatpush3.bf16.msra.mxu1 %v5551_v51  ;;  %5524 = vmatprep.subr.bf16.mxu0 %v5523_v53  ;;  %v5571_v51 = vpack.c.bf16 %v3891_v47, %v3890_v46  ;;  %v3906_v53 = vld [vmem:[%s8100_s13 + $0xd00] sm:$0xff]  ;;  %v5573_v58 = vpack.c.bf16 %v3875_v52, %v3874_v50  ;;  %v3919_v50 = vld [vmem:[%s8100_s13 + $0xd68] sm:$0xff] }
  0xfe   : > { %5553 = vmatprep.subr.bf16.mxu1 %v5906_v5  ;;  %v3886_v46 = vld [vmem:[%s8100_s13 + $0xc60] sm:$0xff] }
 0x100   : > { %5526 = vmatpush3.bf16.msra.mxu0 %v5525_v59  ;;  %v3822_v59 = vld [vmem:[%s7224_s24 + $0xc10] sm:$0xff] }
 0x101   : > { %5555 = vmatpush3.bf16.msra.mxu1 %v5554_v60  ;;  %5528 = vmatprep.subr.bf16.mxu0 %v5527_v62  ;;  %v5604_v60 = vpack.c.bf16 %v3907_v54, %v3906_v53  ;;  %v5575_v62 = vpack.c.bf16 %v3893_v56, %v3892_v55  ;;  %v3904_v53 = vld [vmem:[%s8100_s13 + $0xcf0] sm:$0xff]  ;;  %v3905_v54 = vld [vmem:[%s8100_s13 + $0xcf8] sm:$0xff] }
 0x102   : > { %5556 = vmatprep.subr.bf16.mxu1 %v5906_v5 }
 0x104   : > { %5530 = vmatpush3.bf16.msra.mxu0 %v5529_v4  ;;  %v3872_v4 = vld [vmem:[%s7389_s23 + $0xd88] sm:$0xff] }
 0x105   : > { %5558 = vmatpush3.bf16.msra.mxu1 %v5557_v6  ;;  %5532 = vmatprep.subr.bf16.mxu0 %v5531_v8  ;;  %v5577_v6 = vpack.c.bf16 %v3877_v63, %v3876_v61  ;;  %v3878_v8 = vld [vmem:[%s8100_s13 + $0xc20] sm:$0xff]  ;;  %v5599_v61 = vpack.c.bf16 %v3905_v54, %v3904_v53  ;;  %v3920_v63 = vld [vmem:[%s8100_s13 + $0xd70] sm:$0xff]  ;;  %v3952_v54 = vld [vmem:[%s8100_s13 + $0xe58] sm:$0xff] }
 0x106   : > { %5559 = vmatprep.subr.bf16.mxu1 %v5906_v5  ;;  %v3951_v53 = vld [vmem:[%s8100_s13 + $0xe50] sm:$0xff] }
 0x108   : > { %5534 = vmatpush3.bf16.msra.mxu0 %v5533_v15  ;;  %v3897_v15 = vld [vmem:[%s8100_s13 + $0xcb8] sm:$0xff] }
 0x109   : > { %5561 = vmatpush3.bf16.msra.mxu1 %v5560_v16  ;;  %5536 = vmatprep.subr.bf16.mxu0 %v5535_v18  ;;  %v5581_v16 = vpack.c.bf16 %v3879_v10, %v3878_v8  ;;  %v3880_v18 = vld [vmem:[%s8100_s13 + $0xc30] sm:$0xff]  ;;  %v5583_v19 = vpack.c.bf16 %v3897_v15, %v3896_v14  ;;  %v3925_v8 = vld [vmem:[%s8100_s13 + $0xd80] sm:$0xff]  ;;  %v3944_v14 = vld [vmem:[%s8100_s13 + $0xe18] sm:$0xff] }
 0x10a   : > { %5562 = vmatprep.subr.bf16.mxu1 %v5906_v5  ;;  %v4111_v31 = vpop.f32.mrb[0].mxu0  ;;  %v3957_v10 = vld [vmem:[%s8100_s13 + $0xe80] sm:$0xff] }
 0x10b   : > { %v994_v32 = vpop.f32.mrb[0].mxu1  ;;  %v4112_v35 = vpop.f32.mrb[1].mxu0  ;;  %v3871_v15 = vld [vmem:[%s7389_s23 + $0xd80] sm:$0xff] }
 0x10c   : > { %v4737_v36 = vpop.f32.mrb[1].mxu1  ;;  %v4113_v37 = vadd.f32 %v4112_v35, %v4111_v31  ;;  %5538 = vmatpush3.bf16.msra.mxu0 %v5537_v24  ;;  %v3899_v24 = vld [vmem:[%s8100_s13 + $0xcc8] sm:$0xff] }
 0x10d   : > { %5564 = vmatpush3.bf16.msra.mxu1 %v5563_v25  ;;  %5540 = vmatprep.subr.bf16.mxu0 %v5539_v27  ;;  %v5585_v25 = vpack.c.bf16 %v3881_v20, %v3880_v18  ;;  %v3882_v27 = vld [vmem:[%s8100_s13 + $0xc40] sm:$0xff]  ;;  %v5587_v28 = vpack.c.bf16 %v3899_v24, %v3898_v23  ;;  %v3915_v31 = vld [vmem:[%s8100_s13 + $0xd48] sm:$0xff]  ;;  %v3884_v36 = vld [vmem:[%s8100_s13 + $0xc50] sm:$0xff]  ;;  %v5660_v18 = vpack.c.bf16 %v3958_v11, %v3957_v10 }
 0x10e   : > { %5565 = vmatprep.subr.bf16.mxu1 %v5906_v5  ;;  %v7353_v45 = vadd.f32 %v4113_v37, %v994_v32  ;;  %v3900_v32 = vld [vmem:[%s8100_s13 + $0xcd0] sm:$0xff]  ;;  %v5589_v34 = vpack.c.bf16 %v3883_v29, %v3882_v27  ;;  %v5616_v35 = vpack.c.bf16 %v3915_v31, %v3914_v30  ;;  %v5631_v20 = vpack.c.bf16 %v3944_v14, %v3943_v12  ;;  %v3960_v23 = vld [vmem:[%s8100_s13 + $0xe98] sm:$0xff]  ;;  %v3945_v24 = vld [vmem:[%s8100_s13 + $0xe20] sm:$0xff] }
 0x10f   : > { %v5591_v37 = vpack.c.bf16 %v3901_v33, %v3900_v32  ;;  %v3929_v29 = vld [vmem:[%s8100_s13 + $0xda0] sm:$0xff]  ;;  %v3930_v31 = vld [vmem:[%s8100_s13 + $0xda8] sm:$0xff]  ;;  %v3955_v10 = vld [vmem:[%s8100_s13 + $0xe70] sm:$0xff] }
 0x110   : > { %5542 = vmatpush3.bf16.msra.mxu0 %v5541_v38  ;;  %v3885_v38 = vld [vmem:[%s8100_s13 + $0xc58] sm:$0xff]  ;;  %v3961_v32 = vld [vmem:[%s8100_s13 + $0xea0] sm:$0xff]  ;;  %v3962_v33 = vld [vmem:[%s8100_s13 + $0xea8] sm:$0xff] }
 0x111   : > { %5567 = vmatpush3.bf16.msra.mxu1 %v5566_v39  ;;  %5544 = vmatprep.subr.bf16.mxu0 %v5543_v41  ;;  %v3916_v39 = vld [vmem:[%s8100_s13 + $0xd50] sm:$0xff]  ;;  %v3902_v41 = vld [vmem:[%s8100_s13 + $0xce0] sm:$0xff]  ;;  %v5593_v43 = vpack.c.bf16 %v3885_v38, %v3884_v36  ;;  %v5637_v36 = vpack.c.bf16 %v3930_v31, %v3929_v29  ;;  %v3956_v11 = vld [vmem:[%s8100_s13 + $0xe78] sm:$0xff] }
 0x112   : > { %5568 = vmatprep.subr.bf16.mxu1 %v5906_v5  ;;  %v5619_v44 = vpack.c.bf16 %v3917_v40, %v3916_v39  ;;  %v5595_v47 = vpack.c.bf16 %v3903_v42, %v3902_v41  ;;  %v3931_v38 = vld [vmem:[%s8100_s13 + $0xdb0] sm:$0xff]  ;;  %v3932_v40 = vld [vmem:[%s8100_s13 + $0xdb8] sm:$0xff]  ;;  %v7696_v29 = vld [vmem:[%s802_s28 + $0x8] sm:$0xff] }
 0x113   : > { %v3963_v41 = vld [vmem:[%s8100_s13 + $0xeb0] sm:$0xff]  ;;  %v3964_v42 = vld [vmem:[%s8100_s13 + $0xeb8] sm:$0xff]  ;;  %v3976_v31 = vld [vmem:[%s8100_s13 + $0xf00] sm:$0xff] }
 0x114   : > { %5546 = vmatpush3.bf16.msra.mxu0 %v5545_v48  ;;  %v3887_v48 = vld [vmem:[%s8100_s13 + $0xc68] sm:$0xff] }
 0x115   : > { %5570 = vmatpush3.bf16.msra.mxu1 %v5569_v49  ;;  %5572 = vmatprep.subr.bf16.mxu0 %v5571_v51  ;;  %v3918_v49 = vld [vmem:[%s8100_s13 + $0xd60] sm:$0xff] }
 0x116   : > { %5603 = vmatprep.subr.bf16.mxu1 %v5906_v5 }
 0x117   : > { %2287 = vmatmul.mubr.f32.vlgmr.msra.gmra.mrb[14].mxu0 %v3820_v57 }
 0x118   : > { %4981 = vmatmul.mubr.f32.vlgmr.msra.gmra.mrb[14].mxu1 %v3822_v59  ;;  %5574 = vmatpush3.bf16.msra.mxu0 %v5573_v58  ;;  %v5597_v58 = vpack.c.bf16 %v3887_v48, %v3886_v46  ;;  %v5622_v59 = vpack.c.bf16 %v3919_v50, %v3918_v49  ;;  %v5641_v46 = vpack.c.bf16 %v3932_v40, %v3931_v38  ;;  %v3933_v48 = vld [vmem:[%s8100_s13 + $0xdc0] sm:$0xff]  ;;  %v3934_v50 = vld [vmem:[%s8100_s13 + $0xdc8] sm:$0xff]  ;;  %v3995_v40 = vld [vmem:[%s8100_s13 + $0xf98] sm:$0xff] }
 0x119   : > { %5605 = vmatpush3.bf16.msra.mxu1 %v5604_v60  ;;  %5576 = vmatprep.subr.bf16.mxu0 %v5575_v62  ;;  %v3888_v60 = vld [vmem:[%s8100_s13 + $0xc70] sm:$0xff]  ;;  %v3889_v62 = vld [vmem:[%s8100_s13 + $0xc78] sm:$0xff] }
 0x11a   : > { %5606 = vmatprep.subr.bf16.mxu1 %v5906_v5  ;;  %2481 = vmatprep.mubr.f32.mxu0 %v3872_v4 }
 0x11b   : > { %5015 = vmatprep.mubr.msk.f32.mxu1 %vm5907_vm0, %v5908_v13 }
 0x11c   : > { %5578 = vmatpush3.bf16.msra.mxu0 %v5577_v6  ;;  %v5601_v6 = vpack.c.bf16 %v3889_v62, %v3888_v60  ;;  %v3967_v60 = vld [vmem:[%s8100_s13 + $0xed0] sm:$0xff]  ;;  %v3953_v62 = vld [vmem:[%s8100_s13 + $0xe60] sm:$0xff] }
 0x11d   : > { %5608 = vmatpush3.bf16.msra.mxu1 %v5607_v7  ;;  %5580 = vmatprep.subr.bf16.mxu0 %v5579_v9  ;;  %v5625_v7 = vpack.c.bf16 %v3921_v0, %v3920_v63  ;;  %v5627_v9 = vpack.c.bf16 %v3942_v3, %v3941_v2  ;;  %v3954_v63 = vld [vmem:[%s8100_s13 + $0xe68] sm:$0xff]  ;;  %v3937_v2 = vld [vmem:[%s8100_s13 + $0xde0] sm:$0xff] }
 0x11e   : > { %5609 = vmatprep.subr.bf16.mxu1 %v5906_v5  ;;  %v5651_v3 = vpack.c.bf16 %v3954_v63, %v3953_v62  ;;  %v4013_v62 = vld [vmem:[%s8100_s13 + $0x1028] sm:$0xff]  ;;  %v3998_v63 = vld [vmem:[%s8100_s13 + $0xfb0] sm:$0xff] }
 0x120   : > { %5582 = vmatpush3.bf16.msra.mxu0 %v5581_v16 }
 0x121   : > { %5611 = vmatpush3.bf16.msra.mxu1 %v5610_v17  ;;  %5584 = vmatprep.subr.bf16.mxu0 %v5583_v19  ;;  %v3873_v17 = vld [vmem:[%s7389_s23 + $0xd90] sm:$0xff]  ;;  %s7737_s23 = scalar_lea.vmem %s8097_s10, %s6117_s17 }
 0x122   : > { %5612 = vmatprep.subr.bf16.mxu1 %v5906_v5  ;;  %v3927_v19 = vld [vmem:[%s8100_s13 + $0xd90] sm:$0xff] }
 0x123   : > { %v5633_v27 = vpack.c.bf16 %v3928_v21, %v3927_v19  ;;  %v3940_v19 = vld [vmem:[%s8100_s13 + $0xdf8] sm:$0xff] }
 0x124   : > { %5586 = vmatpush3.bf16.msra.mxu0 %v5585_v25  ;;  %v3946_v25 = vld [vmem:[%s8100_s13 + $0xe28] sm:$0xff]  ;;  %v3972_v21 = vld [vmem:[%s8100_s13 + $0xef8] sm:$0xff] }
 0x125   : > { %5614 = vmatpush3.bf16.msra.mxu1 %v5613_v26  ;;  %5588 = vmatprep.subr.bf16.mxu0 %v5587_v28  ;;  %v3923_v26 = vld [vmem:[%s7555_s29 + $0xf08] sm:$0xff]  ;;  %v5663_v28 = vpack.c.bf16 %v3960_v23, %v3959_v22  ;;  %v5635_v30 = vpack.c.bf16 %v3946_v25, %v3945_v24  ;;  %v5655_v22 = vpack.c.bf16 %v3956_v11, %v3955_v10  ;;  %v3992_v24 = vld [vmem:[%s8100_s13 + $0xf80] sm:$0xff] }
 0x126   : > { %5615 = vmatprep.subr.bf16.mxu1 %v5906_v5  ;;  %v3993_v25 = vld [vmem:[%s8100_s13 + $0xf88] sm:$0xff] }
 0x127   : > { %v4001_v10 = vld [vmem:[%s8100_s13 + $0xfc8] sm:$0xff] }
 0x128   : > { %5590 = vmatpush3.bf16.msra.mxu0 %v5589_v34  ;;  %v3947_v34 = vld [vmem:[%s8100_s13 + $0xe30] sm:$0xff] }
 0x129   : > { %5617 = vmatpush3.bf16.msra.mxu1 %v5616_v35  ;;  %5592 = vmatprep.subr.bf16.mxu0 %v5591_v37  ;;  %v3948_v35 = vld [vmem:[%s8100_s13 + $0xe38] sm:$0xff]  ;;  %v5666_v37 = vpack.c.bf16 %v3962_v33, %v3961_v32  ;;  %v7704_v32 = vld [vmem:[%s802_s28 + $0x10] sm:$0xff] }
 0x12a   : > { %5618 = vmatprep.subr.bf16.mxu1 %v5906_v5  ;;  %v4163_v51 = vpop.f32.mrb[2].mxu0  ;;  %v5639_v39 = vpack.c.bf16 %v3948_v35, %v3947_v34  ;;  %v3158_v34 = vmul.f32 %v7696_v29, %v7696_v29  ;;  %v3977_v35 = vld [vmem:[%s8100_s13 + $0xf08] sm:$0xff]  ;;  %v3159_v38 = vmul.f32 %v7704_v32, %v7704_v32 }
 0x12b   : > { %v1188_v52 = vpop.f32.mrb[2].mxu1  ;;  %v4164_v55 = vpop.f32.mrb[3].mxu0 }
 0x12c   : > { %v4772_v56 = vpop.f32.mrb[3].mxu1  ;;  %v4165_v57 = vadd.f32 %v4164_v55, %v4163_v51  ;;  %5594 = vmatpush3.bf16.msra.mxu0 %v5593_v43  ;;  %v3949_v43 = vld [vmem:[%s8100_s13 + $0xe40] sm:$0xff]  ;;  %v5645_v55 = vpack.c.bf16 %v3934_v50, %v3933_v48  ;;  %v3979_v50 = vld [vmem:[%s8100_s13 + $0xf18] sm:$0xff] }
 0x12d   : > { %5620 = vmatpush3.bf16.msra.mxu1 %v5619_v44  ;;  %5596 = vmatprep.subr.bf16.mxu0 %v5595_v47  ;;  %v3950_v44 = vld [vmem:[%s8100_s13 + $0xe48] sm:$0xff]  ;;  %v5669_v47 = vpack.c.bf16 %v3964_v42, %v3963_v41  ;;  %v3965_v51 = vld [vmem:[%s8100_s13 + $0xec0] sm:$0xff] }
 0x12e   : > { %5621 = vmatprep.subr.bf16.mxu1 %v5906_v5  ;;  %v1189_v1 = vadd.f32 %v4165_v57, %v1188_v52  ;;  %v5643_v49 = vpack.c.bf16 %v3950_v44, %v3949_v43  ;;  %v3966_v52 = vld [vmem:[%s8100_s13 + $0xec8] sm:$0xff]  ;;  %v3935_v57 = vld [vmem:[%s8100_s13 + $0xdd0] sm:$0xff]  ;;  %v3922_v42 = vld [vmem:[%s7555_s29 + $0xf00] sm:$0xff]  ;;  %v5685_v43 = vpack.c.bf16 %v3977_v35, %v3976_v31 }
 0x12f   : > { %v5672_v56 = vpack.c.bf16 %v3966_v52, %v3965_v51  ;;  %v3924_v44 = vld [vmem:[%s7555_s29 + $0xf10] sm:$0xff]  ;;  %v4011_v52 = vld [vmem:[%s8100_s13 + $0x1018] sm:$0xff]  ;;  %v4004_v31 = vld [vmem:[%s8100_s13 + $0xfe0] sm:$0xff] }
 0x130   : > { %v7525_v4 = vadd.f32 %v1189_v1, %v7353_v45  ;;  %5598 = vmatpush3.bf16.msra.mxu0 %v5597_v58  ;;  %v3926_v45 = vld [vmem:[%s8100_s13 + $0xd88] sm:$0xff]  ;;  %v5647_v58 = vpack.c.bf16 %v3952_v54, %v3951_v53  ;;  %v4010_v51 = vld [vmem:[%s8100_s13 + $0x1010] sm:$0xff]  ;;  %v3996_v53 = vld [vmem:[%s8100_s13 + $0xfa0] sm:$0xff] }
 0x131   : > { %5623 = vmatpush3.bf16.msra.mxu1 %v5622_v59  ;;  %5600 = vmatprep.subr.bf16.mxu0 %v5599_v61  ;;  %v5629_v16 = vpack.c.bf16 %v3926_v45, %v3925_v8  ;;  %v3936_v59 = vld [vmem:[%s8100_s13 + $0xdd8] sm:$0xff]  ;;  %v3970_v8 = vld [vmem:[%s8100_s13 + $0xee8] sm:$0xff]  ;;  %v3988_v35 = vld [vmem:[%s8100_s13 + $0xf60] sm:$0xff] }
 0x132   : > { %5624 = vmatprep.subr.bf16.mxu1 %v5906_v5  ;;  %v3968_v61 = vld [vmem:[%s8100_s13 + $0xed8] sm:$0xff]  ;;  %v5649_v0 = vpack.c.bf16 %v3936_v59, %v3935_v57  ;;  %v3997_v54 = vld [vmem:[%s8100_s13 + $0xfa8] sm:$0xff]  ;;  %v5719_v57 = vpack.c.bf16 %v4011_v52, %v4010_v51 }
 0x133   : > { %v5675_v1 = vpack.c.bf16 %v3968_v61, %v3967_v60  ;;  %v5691_v59 = vpack.c.bf16 %v3997_v54, %v3996_v53  ;;  %v3981_v60 = vld [vmem:[%s8100_s13 + $0xf28] sm:$0xff]  ;;  %v4012_v61 = vld [vmem:[%s8100_s13 + $0x1020] sm:$0xff]  ;;  %v3991_v52 = vld [vmem:[%s8100_s13 + $0xf78] sm:$0xff] }
 0x134   : > { %5602 = vmatpush3.bf16.msra.mxu0 %v5601_v6  ;;  %v3938_v6 = vld [vmem:[%s8100_s13 + $0xde8] sm:$0xff]  ;;  %v4022_v53 = vld [vmem:[%s8100_s13 + $0x1070] sm:$0xff]  ;;  %v4023_v54 = vld [vmem:[%s8100_s13 + $0x1078] sm:$0xff] }
 0x135   : > { %5626 = vmatpush3.bf16.msra.mxu1 %v5625_v7  ;;  %5628 = vmatprep.subr.bf16.mxu0 %v5627_v9  ;;  %v3969_v7 = vld [vmem:[%s8100_s13 + $0xee0] sm:$0xff] }
 0x136   : > { %5659 = vmatprep.subr.bf16.mxu1 %v5906_v5 }
 0x137   : > { %2482 = vmatmul.mubr.f32.vlgmr.msra.gmra.mrb[16].mxu0 %v3871_v15  ;;  %v3939_v15 = vld [vmem:[%s8100_s13 + $0xdf0] sm:$0xff] }
 0x138   : > { %5016 = vmatmul.mubr.f32.vlgmr.msra.gmra.mrb[16].mxu1 %v3873_v17  ;;  %5630 = vmatpush3.bf16.msra.mxu0 %v5629_v16  ;;  %v5653_v17 = vpack.c.bf16 %v3938_v6, %v3937_v2  ;;  %v5722_v2 = vpack.c.bf16 %v4013_v62, %v4012_v61  ;;  %v4027_v61 = vld [vmem:[%s8100_s13 + $0x1080] sm:$0xff] }
 0x139   : > { %5661 = vmatpush3.bf16.msra.mxu1 %v5660_v18  ;;  %5632 = vmatprep.subr.bf16.mxu0 %v5631_v20  ;;  %v5678_v18 = vpack.c.bf16 %v3970_v8, %v3969_v7  ;;  %v3971_v20 = vld [vmem:[%s8100_s13 + $0xef0] sm:$0xff]  ;;  %v3983_v7 = vld [vmem:[%s8100_s13 + $0xf38] sm:$0xff] }
 0x13a   : > { %5662 = vmatprep.subr.bf16.mxu1 %v5906_v5  ;;  %2676 = vmatprep.mubr.f32.mxu0 %v3923_v26  ;;  %v5657_v26 = vpack.c.bf16 %v3940_v19, %v3939_v15  ;;  %v4014_v8 = vld [vmem:[%s8100_s13 + $0x1030] sm:$0xff] }
 0x13b   : > { %5050 = vmatprep.mubr.msk.f32.mxu1 %vm5907_vm0, %v5908_v13  ;;  %v4002_v19 = vld [vmem:[%s8100_s13 + $0xfd0] sm:$0xff] }
 0x13c   : > { %5634 = vmatpush3.bf16.msra.mxu0 %v5633_v27  ;;  %v5681_v27 = vpack.c.bf16 %v3972_v21, %v3971_v20  ;;  %v4003_v20 = vld [vmem:[%s8100_s13 + $0xfd8] sm:$0xff] }
 0x13d   : > { %5664 = vmatpush3.bf16.msra.mxu1 %v5663_v28  ;;  %5636 = vmatprep.subr.bf16.mxu0 %v5635_v30  ;;  %v7694_v28 = vld [vmem:[%s802_s28] sm:$0xff] }
 0x13e   : > { %5665 = vmatprep.subr.bf16.mxu1 %v5906_v5  ;;  %v3157_v33 = vmul.f32 %v7694_v28, %v7694_v28 }
 0x140   : > { %5638 = vmatpush3.bf16.msra.mxu0 %v5637_v36  ;;  %v4008_v36 = vld [vmem:[%s8100_s13 + $0x1000] sm:$0xff]  ;;  %v3160_v41 = vadd.f32 %v3158_v34, %v3157_v33  ;;  %v4005_v33 = vld [vmem:[%s8100_s13 + $0xfe8] sm:$0xff] }
 0x141   : > { %5667 = vmatpush3.bf16.msra.mxu1 %v5666_v37  ;;  %5640 = vmatprep.subr.bf16.mxu0 %v5639_v39  ;;  %v4009_v37 = vld [vmem:[%s8100_s13 + $0x1008] sm:$0xff]  ;;  %v3994_v39 = vld [vmem:[%s8100_s13 + $0xf90] sm:$0xff] }
 0x142   : > { %5668 = vmatprep.subr.bf16.mxu1 %v5906_v5  ;;  %v3161_v48 = vadd.f32 %v3160_v41, %v3159_v38  ;;  %v4020_v38 = vld [vmem:[%s8100_s13 + $0x1060] sm:$0xff] }
 0x144   : > { %5642 = vmatpush3.bf16.msra.mxu0 %v5641_v46  ;;  %v5716_v46 = vpack.c.bf16 %v4009_v37, %v4008_v36  ;;  %3162 = vadd.xlane.f32.xlu0 %v3161_v48  ;;  %v5707_v36 = vpack.c.bf16 %v4005_v33, %v4004_v31  ;;  %v3989_v37 = vld [vmem:[%s8100_s13 + $0xf68] sm:$0xff]  ;;  %v4033_v31 = vld [vmem:[%s8100_s13 + $0x10b0] sm:$0xff] }
 0x145   : > { %5670 = vmatpush3.bf16.msra.mxu1 %v5669_v47  ;;  %5644 = vmatprep.subr.bf16.mxu0 %v5643_v49  ;;  %v3978_v47 = vld [vmem:[%s8100_s13 + $0xf10] sm:$0xff]  ;;  %v5687_v49 = vpack.c.bf16 %v3995_v40, %v3994_v39  ;;  %v4021_v39 = vld [vmem:[%s8100_s13 + $0x1068] sm:$0xff]  ;;  %v5709_v48 = vpack.c.bf16 %v3989_v37, %v3988_v35  ;;  %v4051_v35 = vld [vmem:[%s8100_s13 + $0x1140] sm:$0xff] }
 0x146   : > { %5671 = vmatprep.subr.bf16.mxu1 %v5906_v5 }
 0x148   : > { %5646 = vmatpush3.bf16.msra.mxu0 %v5645_v55  ;;  %v3974_v55 = vld [vmem:[%s7737_s23 + $0x1088] sm:$0xff] }
 0x149   : > { %5673 = vmatpush3.bf16.msra.mxu1 %v5672_v56  ;;  %5648 = vmatprep.subr.bf16.mxu0 %v5647_v58  ;;  %v5689_v56 = vpack.c.bf16 %v3979_v50, %v3978_v47  ;;  %v3980_v58 = vld [vmem:[%s8100_s13 + $0xf20] sm:$0xff]  ;;  %v3990_v50 = vld [vmem:[%s8100_s13 + $0xf70] sm:$0xff] }
 0x14a   : > { %5674 = vmatprep.subr.bf16.mxu1 %v5906_v5  ;;  %v4215_v9 = vpop.f32.mrb[4].mxu0 }
 0x14b   : > { %v1383_v45 = vpop.f32.mrb[4].mxu1  ;;  %v4216_v12 = vpop.f32.mrb[5].mxu0 }
 0x14c   : > { %v4807_v14 = vpop.f32.mrb[5].mxu1  ;;  %v4217_v16 = vadd.f32 %v4216_v12, %v4215_v9  ;;  %5650 = vmatpush3.bf16.msra.mxu0 %v5649_v0  ;;  %v3999_v0 = vld [vmem:[%s8100_s13 + $0xfb8] sm:$0xff] }
 0x14d   : > { %5676 = vmatpush3.bf16.msra.mxu1 %v5675_v1  ;;  %5652 = vmatprep.subr.bf16.mxu0 %v5651_v3  ;;  %v5693_v1 = vpack.c.bf16 %v3981_v60, %v3980_v58  ;;  %v3982_v3 = vld [vmem:[%s8100_s13 + $0xf30] sm:$0xff]  ;;  %v5695_v6 = vpack.c.bf16 %v3999_v0, %v3998_v63  ;;  %v4015_v9 = vld [vmem:[%s8100_s13 + $0x1038] sm:$0xff]  ;;  %v3984_v14 = vld [vmem:[%s8100_s13 + $0xf40] sm:$0xff]  ;;  %v5737_v60 = vpack.c.bf16 %v4023_v54, %v4022_v53 }
 0x14e   : > { %5677 = vmatprep.subr.bf16.mxu1 %v5906_v5  ;;  %v1384_v23 = vadd.f32 %v4217_v16, %v1383_v45  ;;  %v4000_v45 = vld [vmem:[%s8100_s13 + $0xfc0] sm:$0xff]  ;;  %v5697_v11 = vpack.c.bf16 %v3983_v7, %v3982_v3  ;;  %v5725_v12 = vpack.c.bf16 %v4015_v9, %v4014_v8  ;;  %v3985_v16 = vld [vmem:[%s8100_s13 + $0xf48] sm:$0xff]  ;;  %v3975_v7 = vld [vmem:[%s7737_s23 + $0x1090] sm:$0xff] }
 0x14f   : > { %v5699_v15 = vpack.c.bf16 %v4001_v10, %v4000_v45  ;;  %v5701_v21 = vpack.c.bf16 %v3985_v16, %v3984_v14  ;;  %v4059_v63 = vld [vmem:[%s8100_s13 + $0x1180] sm:$0xff]  ;;  %v4060_v0 = vld [vmem:[%s8100_s13 + $0x1188] sm:$0xff]  ;;  %v4029_v9 = vld [vmem:[%s8100_s13 + $0x1090] sm:$0xff] }
 0x150   : > { %v7699_v30 = vadd.f32 %v1384_v23, %v7525_v4  ;;  %5654 = vmatpush3.bf16.msra.mxu0 %v5653_v17  ;;  %v5683_v4 = vpack.c.bf16 %v3993_v25, %v3992_v24  ;;  %v4016_v17 = vld [vmem:[%s8100_s13 + $0x1040] sm:$0xff]  ;;  %v3986_v23 = vld [vmem:[%s8100_s13 + $0xf50] sm:$0xff]  ;;  %v5703_v24 = vpack.c.bf16 %v4003_v20, %v4002_v19  ;;  %v3987_v25 = vld [vmem:[%s8100_s13 + $0xf58] sm:$0xff]  ;;  %v5772_v8 = vpack.c.bf16 %v4060_v0, %v4059_v63 }
 0x151   : > { %5679 = vmatpush3.bf16.msra.mxu1 %v5678_v18  ;;  %5656 = vmatprep.subr.bf16.mxu0 %v5655_v22  ;;  %v4017_v18 = vld [vmem:[%s8100_s13 + $0x1048] sm:$0xff]  ;;  %v5705_v34 = vpack.c.bf16 %v3987_v25, %v3986_v23  ;;  %v3973_v3 = vld [vmem:[%s7737_s23 + $0x1080] sm:$0xff]  ;;  %v4030_v10 = vld [vmem:[%s8100_s13 + $0x1098] sm:$0xff]  ;;  %s5797_s23 = smul.u32 384, %s6016_s25  ;;  %s5848_s25 = scalar_lea.vmem %s5847_s18, 768 }
 0x152   : > { %5680 = vmatprep.subr.bf16.mxu1 %v5906_v5  ;;  %v5728_v22 = vpack.c.bf16 %v4017_v18, %v4016_v17  ;;  %v4047_v14 = vld [vmem:[%s8100_s13 + $0x1120] sm:$0xff]  ;;  %v4025_v16 = vld [vmem:[%s7903_s30 + $0x1208] sm:$0xff]  ;;  %v5745_v17 = vpack.c.bf16 %v4030_v10, %v4029_v9  ;;  %v4050_v25 = vld [vmem:[%s8100_s13 + $0x1138] sm:$0xff] }
 0x153   : > { %v4031_v19 = vld [vmem:[%s8100_s13 + $0x10a0] sm:$0xff]  ;;  %v4064_v23 = vld [vmem:[%s8100_s13 + $0x11a8] sm:$0xff]  ;;  %v4070_v53 = vld [vmem:[%s8100_s13 + $0x11d8] sm:$0xff]  ;;  %s8044_s17 = scalar_lea.hbm %s8103_s16, %s5797_s23 }
 0x154   : > { %5658 = vmatpush3.bf16.msra.mxu0 %v5657_v26  ;;  %v4018_v26 = vld [vmem:[%s8100_s13 + $0x1050] sm:$0xff]  ;;  %v4055_v54 = vld [vmem:[%s8100_s13 + $0x1160] sm:$0xff] }
 0x155   : > { %5682 = vmatpush3.bf16.msra.mxu1 %v5681_v27  ;;  %5684 = vmatprep.subr.bf16.mxu0 %v5683_v4  ;;  %v4019_v27 = vld [vmem:[%s8100_s13 + $0x1058] sm:$0xff] }
 0x156   : > { %5715 = vmatprep.subr.bf16.mxu1 %v5906_v5  ;;  %v5731_v4 = vpack.c.bf16 %v4019_v27, %v4018_v26 }
 0x157   : > { %2677 = vmatmul.mubr.f32.vlgmr.msra.gmra.mrb[18].mxu0 %v3922_v42  ;;  %v4006_v42 = vld [vmem:[%s8100_s13 + $0xff0] sm:$0xff] }
 0x158   : > { %5051 = vmatmul.mubr.f32.vlgmr.msra.gmra.mrb[18].mxu1 %v3924_v44  ;;  %5686 = vmatpush3.bf16.msra.mxu0 %v5685_v43  ;;  %v4007_v43 = vld [vmem:[%s8100_s13 + $0xff8] sm:$0xff] }
 0x159   : > { %5717 = vmatpush3.bf16.msra.mxu1 %v5716_v46  ;;  %5688 = vmatprep.subr.bf16.mxu0 %v5687_v49  ;;  %v5734_v49 = vpack.c.bf16 %v4021_v39, %v4020_v38  ;;  %v5711_v51 = vpack.c.bf16 %v4007_v43, %v4006_v42  ;;  %v4035_v39 = vld [vmem:[%s8100_s13 + $0x10c0] sm:$0xff]  ;;  %v4068_v43 = vld [vmem:[%s8100_s13 + $0x11c8] sm:$0xff] }
 0x15a   : > { %5718 = vmatprep.subr.bf16.mxu1 %v5906_v5  ;;  %2871 = vmatprep.mubr.f32.mxu0 %v3974_v55  ;;  %v4067_v42 = vld [vmem:[%s8100_s13 + $0x11c0] sm:$0xff] }
 0x15b   : > { %5085 = vmatprep.mubr.msk.f32.mxu1 %vm5907_vm0, %v5908_v13 }
 0x15c   : > { %5690 = vmatpush3.bf16.msra.mxu0 %v5689_v56  ;;  %v4043_v56 = vld [vmem:[%s8100_s13 + $0x1100] sm:$0xff] }
 0x15d   : > { %5720 = vmatpush3.bf16.msra.mxu1 %v5719_v57  ;;  %5692 = vmatprep.subr.bf16.mxu0 %v5691_v59  ;;  %v4044_v57 = vld [vmem:[%s8100_s13 + $0x1108] sm:$0xff]  ;;  %v5713_v59 = vpack.c.bf16 %v3991_v52, %v3990_v50  ;;  %v4069_v52 = vld [vmem:[%s8100_s13 + $0x11d0] sm:$0xff] }
 0x15e   : > { %5721 = vmatprep.subr.bf16.mxu1 %v5906_v5  ;;  %v5739_v62 = vpack.c.bf16 %v4044_v57, %v4043_v56  ;;  %v5787_v57 = vpack.c.bf16 %v4070_v53, %v4069_v52 }
 0x160   : > { %5694 = vmatpush3.bf16.msra.mxu0 %v5693_v1  ;;  %v4045_v1 = vld [vmem:[%s8100_s13 + $0x1110] sm:$0xff] }
 0x161   : > { %5723 = vmatpush3.bf16.msra.mxu1 %v5722_v2  ;;  %5696 = vmatprep.subr.bf16.mxu0 %v5695_v6  ;;  %v4046_v2 = vld [vmem:[%s8100_s13 + $0x1118] sm:$0xff] }
 0x162   : > { %5724 = vmatprep.subr.bf16.mxu1 %v5906_v5  ;;  %v5743_v45 = vpack.c.bf16 %v4046_v2, %v4045_v1  ;;  %v4057_v1 = vld [vmem:[%s8100_s13 + $0x1170] sm:$0xff]  ;;  %v4058_v2 = vld [vmem:[%s8100_s13 + $0x1178] sm:$0xff] }
 0x163   : > { %v5767_v10 = vpack.c.bf16 %v4058_v2, %v4057_v1 }
 0x164   : > { %5698 = vmatpush3.bf16.msra.mxu0 %v5697_v11  ;;  %v4061_v11 = vld [vmem:[%s8100_s13 + $0x1190] sm:$0xff] }
 0x165   : > { %5726 = vmatpush3.bf16.msra.mxu1 %v5725_v12  ;;  %5700 = vmatprep.subr.bf16.mxu0 %v5699_v15  ;;  %v4062_v12 = vld [vmem:[%s8100_s13 + $0x1198] sm:$0xff]  ;;  %v4048_v15 = vld [vmem:[%s8100_s13 + $0x1128] sm:$0xff] }
 0x166   : > { %5727 = vmatprep.subr.bf16.mxu1 %v5906_v5  ;;  %v5775_v18 = vpack.c.bf16 %v4062_v12, %v4061_v11  ;;  %v5747_v20 = vpack.c.bf16 %v4048_v15, %v4047_v14  ;;  %v4042_v11 = vld [vmem:[%s8100_s13 + $0x10f8] sm:$0xff]  ;;  %v4073_v12 = vld [vmem:[%s8100_s13 + $0x11f0] sm:$0xff] }
 0x167   : > { %v4074_v14 = vld [vmem:[%s8100_s13 + $0x11f8] sm:$0xff] }
 0x168   : > { %5702 = vmatpush3.bf16.msra.mxu0 %v5701_v21  ;;  %v4032_v21 = vld [vmem:[%s8100_s13 + $0x10a8] sm:$0xff] }
 0x169   : > { %5729 = vmatpush3.bf16.msra.mxu1 %v5728_v22  ;;  %5704 = vmatprep.subr.bf16.mxu0 %v5703_v24  ;;  %v4063_v22 = vld [vmem:[%s8100_s13 + $0x11a0] sm:$0xff]  ;;  %v4049_v24 = vld [vmem:[%s8100_s13 + $0x1130] sm:$0xff]  ;;  %v5749_v26 = vpack.c.bf16 %v4032_v21, %v4031_v19 }
 0x16a   : > { %5730 = vmatprep.subr.bf16.mxu1 %v5906_v5  ;;  %v4267_v40 = vpop.f32.mrb[6].mxu0  ;;  %v5778_v27 = vpack.c.bf16 %v4064_v23, %v4063_v22  ;;  %v5751_v33 = vpack.c.bf16 %v4050_v25, %v4049_v24  ;;  %v4024_v19 = vld [vmem:[%s7903_s30 + $0x1200] sm:$0xff] }
 0x16b   : > { %v1578_v41 = vpop.f32.mrb[6].mxu1  ;;  %v4268_v44 = vpop.f32.mrb[7].mxu0 }
 0x16c   : > { %v4842_v46 = vpop.f32.mrb[7].mxu1  ;;  %v4269_v47 = vadd.f32 %v4268_v44, %v4267_v40  ;;  %5706 = vmatpush3.bf16.msra.mxu0 %v5705_v34  ;;  %v4034_v34 = vld [vmem:[%s8100_s13 + $0x10b8] sm:$0xff]  ;;  %v4053_v44 = vld [vmem:[%s8100_s13 + $0x1150] sm:$0xff] }
 0x16d   : > { %5732 = vmatpush3.bf16.msra.mxu1 %v5731_v4  ;;  %5708 = vmatprep.subr.bf16.mxu0 %v5707_v36  ;;  %v4066_v4 = vld [vmem:[%s8100_s13 + $0x11b8] sm:$0xff]  ;;  %v4052_v36 = vld [vmem:[%s8100_s13 + $0x1148] sm:$0xff]  ;;  %v5753_v37 = vpack.c.bf16 %v4034_v34, %v4033_v31 }
 0x16e   : > { %5733 = vmatprep.subr.bf16.mxu1 %v5906_v5  ;;  %v1579_v55 = vadd.f32 %v4269_v47, %v1578_v41  ;;  %v5755_v40 = vpack.c.bf16 %v4052_v36, %v4051_v35  ;;  %v4036_v41 = vld [vmem:[%s8100_s13 + $0x10c8] sm:$0xff]  ;;  %v4054_v46 = vld [vmem:[%s8100_s13 + $0x1158] sm:$0xff] }
 0x16f   : > { %v5757_v47 = vpack.c.bf16 %v4036_v41, %v4035_v39  ;;  %v5759_v50 = vpack.c.bf16 %v4054_v46, %v4053_v44 }
 0x170   : > { %v7873_v58 = vadd.f32 %v1579_v55, %v7699_v30  ;;  %5710 = vmatpush3.bf16.msra.mxu0 %v5709_v48  ;;  %v4028_v30 = vld [vmem:[%s8100_s13 + $0x1088] sm:$0xff]  ;;  %v5784_v48 = vpack.c.bf16 %v4068_v43, %v4067_v42 }
 0x171   : > { %5735 = vmatpush3.bf16.msra.mxu1 %v5734_v49  ;;  %5712 = vmatprep.subr.bf16.mxu0 %v5711_v51  ;;  %v5741_v6 = vpack.c.bf16 %v4028_v30, %v4027_v61  ;;  %v4037_v49 = vld [vmem:[%s8100_s13 + $0x10d0] sm:$0xff]  ;;  %v4038_v51 = vld [vmem:[%s8100_s13 + $0x10d8] sm:$0xff]  ;;  %v4056_v55 = vld [vmem:[%s8100_s13 + $0x1168] sm:$0xff] }
 0x172   : > { %5736 = vmatprep.subr.bf16.mxu1 %v5906_v5  ;;  %v5761_v56 = vpack.c.bf16 %v4038_v51, %v4037_v49  ;;  %v4040_v61 = vld [vmem:[%s8100_s13 + $0x10e8] sm:$0xff] }
 0x173   : > { %v4072_v30 = vld [vmem:[%s8100_s13 + $0x11e8] sm:$0xff] }
 0x174   : > { %5714 = vmatpush3.bf16.msra.mxu0 %v5713_v59  ;;  %v4039_v59 = vld [vmem:[%s8100_s13 + $0x10e0] sm:$0xff] }
 0x175   : > { %5738 = vmatpush3.bf16.msra.mxu1 %v5737_v60  ;;  %5740 = vmatprep.subr.bf16.mxu0 %v5739_v62  ;;  %v5763_v60 = vpack.c.bf16 %v4056_v55, %v4055_v54  ;;  %v4071_v62 = vld [vmem:[%s8100_s13 + $0x11e0] sm:$0xff] }
 0x176   : > { %5771 = vmatprep.subr.bf16.mxu1 %v5906_v5  ;;  %v5790_v9 = vpack.c.bf16 %v4072_v30, %v4071_v62 }
 0x177   : > { %2872 = vmatmul.mubr.f32.vlgmr.msra.gmra.mrb[20].mxu0 %v3973_v3 }
 0x178   : > { %5086 = vmatmul.mubr.f32.vlgmr.msra.gmra.mrb[20].mxu1 %v3975_v7  ;;  %5742 = vmatpush3.bf16.msra.mxu0 %v5741_v6 }
 0x179   : > { %5773 = vmatpush3.bf16.msra.mxu1 %v5772_v8  ;;  %5744 = vmatprep.subr.bf16.mxu0 %v5743_v45  ;;  %v5765_v8 = vpack.c.bf16 %v4040_v61, %v4039_v59  ;;  %v4041_v45 = vld [vmem:[%s8100_s13 + $0x10f0] sm:$0xff] }
 0x17a   : > { %5774 = vmatprep.subr.bf16.mxu1 %v5906_v5  ;;  %3066 = vmatprep.mubr.f32.mxu0 %v4025_v16 }
 0x17b   : > { %5120 = vmatprep.mubr.msk.f32.mxu1 %vm5907_vm0, %v5908_v13  ;;  %v4065_v13 = vld [vmem:[%s8100_s13 + $0x11b0] sm:$0xff] }
 0x17c   : > { %5746 = vmatpush3.bf16.msra.mxu0 %v5745_v17  ;;  %v5781_v38 = vpack.c.bf16 %v4066_v4, %v4065_v13  ;;  %v5769_v17 = vpack.c.bf16 %v4042_v11, %v4041_v45 }
 0x17d   : > { %5776 = vmatpush3.bf16.msra.mxu1 %v5775_v18  ;;  %5748 = vmatprep.subr.bf16.mxu0 %v5747_v20  ;;  %v5793_v18 = vpack.c.bf16 %v4074_v14, %v4073_v12  ;;  %v4026_v20 = vld [vmem:[%s7903_s30 + $0x1210] sm:$0xff]  ;;  %s723_s30 = sand.u32 1, %s5896_s22  }
 0x17e   : > { %5777 = vmatprep.subr.bf16.mxu1 %v5906_v5  ;;  %s5795_s26 = smul.u32 24, %s723_s30  ;;  %s3177_s15 = scalar_lea.sflag [#allocation4], %s723_s30 }
 0x180   : > { %5750 = vmatpush3.bf16.msra.mxu0 %v5749_v26  ;;  %s725_s24 = scalar_lea.vmem [#allocation3], %s5795_s26 }
 0x181   : > { %5779 = vmatpush3.bf16.msra.mxu1 %v5778_v27  ;;  %5752 = vmatprep.subr.bf16.mxu0 %v5751_v33  ;;  %s3194_s29 = sshll.u32 %s725_s24, 4  ;;  %s3195_s29 = int_to_ptr.vmem [resolvable:$true] %s3194_s29 }
 0x182   : > { %5780 = vmatprep.subr.bf16.mxu1 %v5906_v5  ;;  %s5842_s27 = scalar_lea.vmem %s3195_s29, 384  ;;  %p5849_p0 = scmp.lt.s32.totalorder %s3195_s29, %s5847_s18 }
 0x183   : > { %p5843_p11 = scmp.ne.s32.totalorder %s3195_s29, %s5842_s27  ;;  %p5850_p1 = scmp.lt.s32.totalorder %s5848_s25, %s5842_s27 }
 0x184   : > { %5754 = vmatpush3.bf16.msra.mxu0 %v5753_v37 }
 0x185   : > { %5782 = vmatpush3.bf16.msra.mxu1 %v5781_v38  ;;  %5756 = vmatprep.subr.bf16.mxu0 %v5755_v40  ;;  %p5844_p12 = pnand %p5843_p11, %p6033_p5  ;;  %p5851_p2 = por %p5850_p1, %p5849_p0 }
 0x186   : > { %5783 = vmatprep.subr.bf16.mxu1 %v5906_v5 }
 0x187   : > { %p5845_p13 = pneg %p5844_p12 }
 0x188   : > { %5758 = vmatpush3.bf16.msra.mxu0 %v5757_v47 }
 0x189   : > { %5785 = vmatpush3.bf16.msra.mxu1 %v5784_v48  ;;  %5760 = vmatprep.subr.bf16.mxu0 %v5759_v50  ;;  %p5852_p3 = pnand %p5851_p2, %p5845_p13 }
 0x18a   : > { %5786 = vmatprep.subr.bf16.mxu1 %v5906_v5  ;;  %v4319_v63 = vpop.f32.mrb[8].mxu0 }
 0x18b   : > { %v1773_v0 = vpop.f32.mrb[8].mxu1  ;;  %v4320_v3 = vpop.f32.mrb[9].mxu0 }
 0x18c   : > { %v4877_v6 = vpop.f32.mrb[9].mxu1  ;;  %v4321_v7 = vadd.f32 %v4320_v3, %v4319_v63  ;;  %5762 = vmatpush3.bf16.msra.mxu0 %v5761_v56 }
 0x18d   : > { %5788 = vmatpush3.bf16.msra.mxu1 %v5787_v57  ;;  %5764 = vmatprep.subr.bf16.mxu0 %v5763_v60 }
 0x18e   : > { %5789 = vmatprep.subr.bf16.mxu1 %v5906_v5  ;;  %v1774_v15 = vadd.f32 %v4321_v7, %v1773_v0 }
 0x190   : > { %v1777_v16 = vadd.f32 %v1774_v15, %v7873_v58  ;;  %5766 = vmatpush3.bf16.msra.mxu0 %v5765_v8 }
 0x191   : > { %5791 = vmatpush3.bf16.msra.mxu1 %v5790_v9  ;;  %5768 = vmatprep.subr.bf16.mxu0 %v5767_v10 }
 0x192   : > { %5792 = vmatprep.subr.bf16.mxu1 %v5906_v5 }
 0x194   : > { %5770 = vmatpush3.bf16.msra.mxu0 %v5769_v17 }
 0x195   : > { %5794 = vmatpush3.bf16.msra.mxu1 %v5793_v18 }
 0x197   : > { %3067 = vmatmul.mubr.f32.vlgmr.msra.gmra.mrb[22].mxu0 %v4024_v19 }
 0x198   : > { %5121 = vmatmul.mubr.f32.vlgmr.msra.gmra.mrb[22].mxu1 %v4026_v20 }
 0x1aa   : > { %v4371_v21 = vpop.f32.mrb[10].mxu0 }
 0x1ab   : > { %v1968_v22 = vpop.f32.mrb[10].mxu1  ;;  %v4372_v23 = vpop.f32.mrb[11].mxu0 }
 0x1ac   : > { %v4912_v24 = vpop.f32.mrb[11].mxu1  ;;  %v4373_v25 = vadd.f32 %v4372_v23, %v4371_v21 }
 0x1ae   : > { %v1969_v26 = vadd.f32 %v4373_v25, %v1968_v22 }
 0x1b0   : > { %v1972_v58 = vadd.f32 %v1969_v26, %v1777_v16 }
 0x1ca   : > { %v4423_v27 = vpop.f32.mrb[12].mxu0 }
 0x1cb   : > { %v2163_v31 = vpop.f32.mrb[12].mxu1  ;;  %v4424_v33 = vpop.f32.mrb[13].mxu0 }
 0x1cc   : > { %v4947_v34 = vpop.f32.mrb[13].mxu1  ;;  %v4425_v13 = vadd.f32 %v4424_v33, %v4423_v27 }
 0x1ce   : > { %v2164_v5 = vadd.f32 %v4425_v13, %v2163_v31 }
 0x1d0   : > { %v2167_v4 = vadd.f32 %v2164_v5, %v1972_v58 }
 0x1d1   : > { %v3163_v35 = vpop.xlane.xlu0 %3162 }
 0x1d2   : > { %v3164_v36 = vmax.f32 %v3163_v35, 1e-24 }
 0x1d4   : > { %5840 = vrsqrt.f32 %v3164_v36 }
 0x1de   : > { %v5841_v43 = vpop.eup %5840 }
 0x1df   : > { %v3166_v46 = vmul.f32 %v5841_v43, %v7694_v28  ;;  %v3167_v47 = vmul.f32 %v5841_v43, %v7696_v29  ;;  %v3168_v48 = vmul.f32 %v5841_v43, %v7704_v32 }
 0x1e1   : > { %3169 = vst [vmem:[%s725_s24] sm:$0xff] %v3166_v46  ;;  %3170 = vst [vmem:[%s725_s24 + $0x8] sm:$0xff] %v3167_v47 }
 0x1e2   : > { %3171 = vst [vmem:[%s725_s24 + $0x10] sm:$0xff] %v3168_v48 }
 0x1ea   : > { %v4475_v37 = vpop.f32.mrb[14].mxu0 }
 0x1eb   : > { %v2358_v38 = vpop.f32.mrb[14].mxu1  ;;  %v4476_v39 = vpop.f32.mrb[15].mxu0 }
 0x1ec   : > { %v4982_v40 = vpop.f32.mrb[15].mxu1  ;;  %v4477_v41 = vadd.f32 %v4476_v39, %v4475_v37 }
 0x1ee   : > { %v2359_v42 = vadd.f32 %v4477_v41, %v2358_v38 }
 0x1f0   : > { %v2362_v44 = vadd.f32 %v2359_v42, %v2167_v4 }
 0x1f1   : > { %5855 = shalt.err (!%p5852_p3)
}
 0x1f2   : > { %s5856_s30 = scalar_lea.hbm %s8044_s17, 384  ;;  %s5860_s24 = scalar_lea.hbm %s8103_s16, 768 }
 0x1f3   : > { %p5857_p4 = scmp.ne.s32.totalorder %s8044_s17, %s5856_s30  ;;  %p5861_p9 = scmp.lt.u32.totalorder %s8044_s17, %s8103_s16 }
 0x1f4   : > { %p5862_p10 = scmp.lt.u32.totalorder %s5860_s24, %s5856_s30  ;;  %p5864_p12 = scmp.lt.u32.totalorder %s5856_s30, %s8044_s17 }
 0x1f5   : > { %p5858_p7 = pnand %p5857_p4, %p6033_p5 }
 0x1f6   : > { %p5863_p11 = por %p5862_p10, %p5861_p9 }
 0x1f7   : > { %p5859_p8 = pneg %p5858_p7 }
 0x1f8   : > { %p5865_p13 = por %p5864_p12, %p5863_p11 }
 0x1fa   : > { %p5866_p0 = pnand %p5865_p13, %p5859_p8 }
 0x1fc   : > { %5869 = shalt.err (!%p5866_p0)
}
 0x1fd   : > { %5798 = dma.vmem_to_hbm [thread:$0]  (%p6033_p5), %s3195_s29, 384, %s8044_s17, %s3177_s15   ;;  %v4075_v10 = vld [vmem:[%s8101_s14] ss:$0 sm:$0xff] }
 0x1fe   : > { %s3510_s0 = sshll.u32 %s6095_s19, 3  ;;  %s8121_s21 = sld [smem:[#allocation13_spill]] }
 0x204   : > { %s806_s18 = scalar_lea.vmem %s8121_s21, %s3510_s0 }
 0x20a   : > { %v4527_v28 = vpop.f32.mrb[16].mxu0 }
 0x20b   : > { %v2553_v29 = vpop.f32.mrb[16].mxu1  ;;  %v4528_v32 = vpop.f32.mrb[17].mxu0 }
 0x20c   : > { %v5017_v49 = vpop.f32.mrb[17].mxu1  ;;  %v4529_v50 = vadd.f32 %v4528_v32, %v4527_v28 }
 0x20e   : > { %v2554_v51 = vadd.f32 %v4529_v50, %v2553_v29 }
 0x210   : > { %v2557_v52 = vadd.f32 %v2554_v51, %v2362_v44 }
 0x22a   : > { %v4579_v53 = vpop.f32.mrb[18].mxu0 }
 0x22b   : > { %v2748_v54 = vpop.f32.mrb[18].mxu1  ;;  %v4580_v55 = vpop.f32.mrb[19].mxu0 }
 0x22c   : > { %v5052_v56 = vpop.f32.mrb[19].mxu1  ;;  %v4581_v57 = vadd.f32 %v4580_v55, %v4579_v53 }
 0x22e   : > { %v2749_v59 = vadd.f32 %v4581_v57, %v2748_v54 }
 0x230   : > { %v2752_v60 = vadd.f32 %v2749_v59, %v2557_v52 }
 0x24a   : > { %v4631_v61 = vpop.f32.mrb[20].mxu0 }
 0x24b   : > { %v2943_v62 = vpop.f32.mrb[20].mxu1  ;;  %v4632_v30 = vpop.f32.mrb[21].mxu0 }
 0x24c   : > { %v5087_v63 = vpop.f32.mrb[21].mxu1  ;;  %v4633_v0 = vadd.f32 %v4632_v30, %v4631_v61 }
 0x24e   : > { %v2944_v1 = vadd.f32 %v4633_v0, %v2943_v62 }
 0x250   : > { %v2947_v2 = vadd.f32 %v2944_v1, %v2752_v60 }
 0x26a   : > { %v4683_v3 = vpop.f32.mrb[22].mxu0 }
 0x26b   : > { %v3138_v6 = vpop.f32.mrb[22].mxu1  ;;  %v4684_v7 = vpop.f32.mrb[23].mxu0 }
 0x26c   : > { %v5122_v8 = vpop.f32.mrb[23].mxu1  ;;  %v4685_v9 = vadd.f32 %v4684_v7, %v4683_v3 }
 0x26e   : > { %v3139_v45 = vadd.f32 %v4685_v9, %v3138_v6 }
 0x270   : > { %v3142_v11 = vadd.f32 %v3139_v45, %v2947_v2 }
 0x272   : > { %v3152_v12 = vadd.f32 %v4075_v10, %v3142_v11 }
 0x274   : > { %3153 = vst [vmem:[%s806_s18] sm:$0xff] %v3152_v12 }
 0x275 PF: > { %s8122_s25 = sld [smem:[#allocation8_spill]]  ;;  %s8123_s30 = sld [smem:[#allocation6_spill]] }
 0x27b   : > { %p5804_p5 = scmp.ge.s32.totalorder %s8122_s25, 2  ;;  %s3213_s23 = sand.u32 1, %s8123_s30  }
 0x27c   : > { %s3214_s19 = scalar_lea.sflag [#allocation4], %s3213_s23 }
 0x27d   : > { %p5801_p1 = pnand %p5804_p5, %p6037_p6 }
 0x27f   : > { %5887 = dma.done.wait (!%p5801_p1), %s3214_s19, 384  }
 0x280   : > { %5889 = vsyncadd (!%p5801_p1), %s3214_s19, 4294966912  ;;  %s8125_s24 = sld [smem:[#allocation9_spill]]  ;;  %s8126_s28 = sld [smem:[#allocation7_spill]] }
 0x281   : > { %s8127_s23 = sld [smem:[#allocation10_spill]]  ;;  %s8128_s21 = smov %s5896_s22 }
 0x286   : > { %p27_p2 = scmp.ge.s32.totalorder %s8125_s24, 4   ;;  %s8129_s22 = smov %s8126_s28 }
 0x288   :  { %29 = sbr.rel (!%p27_p2) target bundleno = 6 (0x6), region = 174 }
 0x28f   :  { %3219 = vsyncpa [#allocation4], 1 }
 0x290   :  { %3221 = vsyncpa [#allocation4 + $0x1], 1 }

</bundles_post_ra>
